<compile_context>
chip_gen: v5e
topology: v5e:2x2
jax: 0.10.0
libtpu: 0.0.40
codegen_flags: <defaults>
</compile_context>

<pallas_src>
import functools
import math

import jax
import jax.numpy as jnp
from jax import lax
from jax.experimental import pallas as pl
from jax.experimental.pallas import tpu as pltpu

relu = jax.nn.relu
sigmoid = jax.nn.sigmoid


# ----------------------------------------------------------------------------
# Pallas MXU matmul
# ----------------------------------------------------------------------------

def _matmul_kernel(a_ref, b_ref, o_ref, *acc, apply_relu, n_k):
    a = a_ref[...]                                   # f32 tile straight from HBM
    if apply_relu:
        a = jnp.maximum(a, 0.0)                      # fused activation-side ReLU
    # f32 -> bf16 on the VPU right before the MXU (no bf16 A copy in HBM).
    prod = jnp.dot(a.astype(jnp.bfloat16), b_ref[...],
                   preferred_element_type=jnp.float32)
    if n_k == 1:
        # full-extent K: single store, no accumulator traffic at all
        o_ref[...] = prod
    else:
        acc_ref = acc[0]

        @pl.when(pl.program_id(2) == 0)
        def _():
            acc_ref[...] = prod

        @pl.when(pl.program_id(2) > 0)
        def _():
            acc_ref[...] = acc_ref[...] + prod

        @pl.when(pl.program_id(2) == n_k - 1)
        def _():
            o_ref[...] = acc_ref[...]                # write output block exactly once


_VMEM_BUDGET = 24 * 1024 * 1024     # stay under v7x's 32 MiB scoped default


def _tile_bytes(tm, tk, tn):
    # double-buffered f32 A tile + bf16 B tile, double-buffered f32 out block,
    # plus the f32 accumulator scratch
    return 2 * (tm * tk * 4 + tk * tn * 2) + 2 * tm * tn * 4 + tm * tn * 4


def _pick_tiles(M, K, N, tk_cap=None):
    tm = 128                                          # v5e MXU is 4x128x128; 256 gains nothing
    if N <= 512 or N % 128 != 0:
        tn = N                                        # full-extent N block (no masked stores)
    else:
        tn = max(t for t in (512, 256, 128) if N % t == 0)
    if K % 128 != 0 or _tile_bytes(tm, K, tn) <= _VMEM_BUDGET:
        tk = K                                        # prefer full-extent K
    else:
        tk = 128
        for t in (2048, 1024, 512, 256):
            if K % t == 0 and _tile_bytes(tm, t, tn) <= _VMEM_BUDGET:
                tk = t
                break
    if tk_cap is not None and K % tk_cap == 0:
        tk = min(tk, tk_cap)
    return tm, tk, tn


def _pallas_matmul(a, b, apply_relu, tk_cap=None):
    M, K = a.shape
    _, N = b.shape
    tm, tk, tn = _pick_tiles(M, K, N, tk_cap)
    n_k = K // tk
    kernel = functools.partial(_matmul_kernel, apply_relu=apply_relu, n_k=n_k)
    scratch = [pltpu.VMEM((tm, tn), jnp.float32)] if n_k > 1 else []
    return pl.pallas_call(
        kernel,
        out_shape=jax.ShapeDtypeStruct((M, N), jnp.float32),
        grid_spec=pltpu.PrefetchScalarGridSpec(
            num_scalar_prefetch=0,
            grid=(M // tm, N // tn, n_k),
            in_specs=[pl.BlockSpec((tm, tk), lambda i, j, k: (i, k)),
                      pl.BlockSpec((tk, tn), lambda i, j, k: (k, j))],
            out_specs=pl.BlockSpec((tm, tn), lambda i, j, k: (i, j)),
            scratch_shapes=scratch),
        compiler_params=pltpu.CompilerParams(
            dimension_semantics=("parallel", "parallel", "arbitrary")),
        # A stays f32 (cast + relu happen in-kernel); B cast to bf16 is
        # constant-folded under jit for weight operands.
    )(a.astype(jnp.float32), b.astype(jnp.bfloat16))


_PALLAS_MIN_MKN = 1 << 25     # ~34M MACs; below this XLA's small-gemm path wins


def matmul(a, b, apply_relu=False):
    """(M,K)@(K,N) -> f32.  Only genuinely MXU-shaped GEMMs use the Pallas path."""
    a = a.astype(jnp.float32)
    b = b.astype(jnp.float32)
    M, K = a.shape
    K2, N = b.shape
    assert K == K2
    use_pallas = (M >= 128 and M % 128 == 0 and K >= 128 and N >= 128
                  and M * K * N >= _PALLAS_MIN_MKN)
    if not use_pallas:
        # Tiny / narrow GEMMs stay in the jitted XLA graph (fuses with relu/BN).
        if apply_relu:
            a = jnp.maximum(a, 0.0)
        return jnp.dot(a, b, preferred_element_type=jnp.float32)
    return _pallas_matmul(a, b, apply_relu)


# ----------------------------------------------------------------------------
# Conv / BN / pooling helpers (NHWC, plain jnp/lax so XLA fuses them)
# ----------------------------------------------------------------------------

def conv1x1(x, w, stride=1, apply_relu=False):
    """1x1 conv on NHWC x via GEMM; w is (Cin, Cout)."""
    if stride != 1:
        x = x[:, ::stride, ::stride, :]
    B, H, W, Cin = x.shape
    y = matmul(x.reshape(B * H * W, Cin), w, apply_relu=apply_relu)
    return y.reshape(B, H, W, w.shape[1])


def depthwise_conv(x, w, stride, pad, dil=1):
    """Depthwise kxk conv; x NHWC, w (kh, kw, 1, C)."""
    C = x.shape[-1]
    return lax.conv_general_dilated(
        x, w, window_strides=(stride, stride),
        padding=((pad, pad), (pad, pad)),
        rhs_dilation=(dil, dil),
        dimension_numbers=('NHWC', 'HWIO', 'NHWC'),
        feature_group_count=C)


def conv_kxk(x, w, stride=1, pad=0):
    """Dense kxk conv (stem); x NHWC, w (kh, kw, Cin, Cout)."""
    return lax.conv_general_dilated(
        x, w, window_strides=(stride, stride),
        padding=((pad, pad), (pad, pad)),
        dimension_numbers=('NHWC', 'HWIO', 'NHWC'))


def batchnorm(x, gamma, beta):
    # PyTorch BatchNorm2d in (default) training mode: batch statistics, eps=1e-5.
    mean = jnp.mean(x, axis=(0, 1, 2), keepdims=True)
    var = jnp.var(x, axis=(0, 1, 2), keepdims=True)
    xn = (x - mean) * lax.rsqrt(var + 1e-5)
    return xn * gamma + beta


def maxpool2d(x, k, stride, pad):
    return lax.reduce_window(
        x, -jnp.inf, lax.max, (1, k, k, 1), (1, stride, stride, 1),
        ((0, 0), (pad, pad), (pad, pad), (0, 0)))


def avgpool2d(x, k, stride, pad):
    # count_include_pad=False semantics (DARTS AvgPool2d)
    window = (1, k, k, 1)
    strides = (1, stride, stride, 1)
    pads = ((0, 0), (pad, pad), (pad, pad), (0, 0))
    s = lax.reduce_window(x, 0.0, lax.add, window, strides, pads)
    cnt = lax.reduce_window(jnp.ones_like(x), 0.0, lax.add, window, strides, pads)
    return s / cnt


def global_avg_pool(x):         # AdaptiveAvgPool2d(1) -> (B, C)
    return jnp.mean(x, axis=(1, 2))


def global_max_pool(x):         # AdaptiveMaxPool2d(1) -> (B, C)
    return jnp.max(x, axis=(1, 2))


def channel_scale(x, y):        # x (B,H,W,C) * per-channel gate y (B,C)
    return x * y[:, None, None, :]


# ----------------------------------------------------------------------------
# Deterministic parameter init
# ----------------------------------------------------------------------------

class _KeyGen:
    def __init__(self, seed):
        self._key = jax.random.PRNGKey(seed)

    def __call__(self):
        self._key, sub = jax.random.split(self._key)
        return sub


_KG = _KeyGen(42)


def _mat_w(in_f, out_f):
    return jax.random.normal(_KG(), (in_f, out_f), jnp.float32) * (1.0 / math.sqrt(in_f))


def _dw_w(c, k):
    return jax.random.normal(_KG(), (k, k, 1, c), jnp.float32) * (1.0 / math.sqrt(k * k))


def _full_w(c_in, c_out, k):
    return jax.random.normal(_KG(), (k, k, c_in, c_out),
                             jnp.float32) * (1.0 / math.sqrt(c_in * k * k))


# ----------------------------------------------------------------------------
# DARTS search-space ops (OPS / PRIMITIVES)
# ----------------------------------------------------------------------------

PRIMITIVES = ['none', 'max_pool_3x3', 'avg_pool_3x3', 'skip_connect',
              'sep_conv_3x3', 'sep_conv_5x5', 'dil_conv_3x3', 'dil_conv_5x5']


def init_relu_conv_bn(c_in, c_out):
    # only the 1x1 stride-1 variant (preprocess) occurs in this network
    return {'kind': 'rcb', 'w': _mat_w(c_in, c_out),
            'g': jnp.ones(c_out), 'b': jnp.zeros(c_out)}


def init_factorized_reduce(c_in, c_out):
    return {'kind': 'fr',
            'w1': _mat_w(c_in, c_out // 2), 'w2': _mat_w(c_in, c_out // 2),
            'g': jnp.ones(c_out), 'b': jnp.zeros(c_out)}


def init_sep_conv(c_in, c_out, k, stride, pad):
    return {'kind': 'sep', 'stride': stride, 'pad': pad,
            'dw1': _dw_w(c_in, k), 'pw1': _mat_w(c_in, c_in),
            'g1': jnp.ones(c_in), 'b1': jnp.zeros(c_in),
            'dw2': _dw_w(c_in, k), 'pw2': _mat_w(c_in, c_out),
            'g2': jnp.ones(c_out), 'b2': jnp.zeros(c_out)}


def init_dil_conv(c_in, c_out, k, stride, pad, dil):
    return {'kind': 'dil', 'stride': stride, 'pad': pad, 'dil': dil,
            'dw': _dw_w(c_in, k), 'pw': _mat_w(c_in, c_out),
            'g': jnp.ones(c_out), 'b': jnp.zeros(c_out)}


def make_op(primitive, c, stride):
    if primitive == 'none':
        return {'kind': 'zero', 'stride': stride}
    if primitive == 'max_pool_3x3':
        return {'kind': 'maxpool', 'stride': stride}
    if primitive == 'avg_pool_3x3':
        return {'kind': 'avgpool', 'stride': stride}
    if primitive == 'skip_connect':
        return {'kind': 'identity'} if stride == 1 else init_factorized_reduce(c, c)
    if primitive == 'sep_conv_3x3':
        return init_sep_conv(c, c, 3, stride, 1)
    if primitive == 'sep_conv_5x5':
        return init_sep_conv(c, c, 5, stride, 2)
    if primitive == 'dil_conv_3x3':
        return init_dil_conv(c, c, 3, stride, 2, 2)
    if primitive == 'dil_conv_5x5':
        return init_dil_conv(c, c, 5, stride, 4, 2)
    raise ValueError(primitive)


def apply_op(p, x):
    kind = p['kind']
    if kind == 'zero':
        s = p['stride']
        return (x if s == 1 else x[:, ::s, ::s, :]) * 0.0
    if kind == 'identity':
        return x
    if kind == 'maxpool':
        return maxpool2d(x, 3, p['stride'], 1)
    if kind == 'avgpool':
        return avgpool2d(x, 3, p['stride'], 1)
    if kind == 'rcb':
        # ReLU is fused into the GEMM (in-kernel on the Pallas path)
        return batchnorm(conv1x1(x, p['w'], apply_relu=True), p['g'], p['b'])
    if kind == 'fr':
        # relu commutes with the stride-2 slicing, so fuse it into each GEMM
        o1 = conv1x1(x[:, ::2, ::2, :], p['w1'], apply_relu=True)
        o2 = conv1x1(x[:, 1::2, 1::2, :], p['w2'], apply_relu=True)
        return batchnorm(jnp.concatenate([o1, o2], axis=-1), p['g'], p['b'])
    if kind == 'sep':
        y = relu(x)
        y = depthwise_conv(y, p['dw1'], p['stride'], p['pad'])
        y = conv1x1(y, p['pw1'])
        y = batchnorm(y, p['g1'], p['b1'])
        y = relu(y)
        y = depthwise_conv(y, p['dw2'], 1, p['pad'])
        y = conv1x1(y, p['pw2'])
        return batchnorm(y, p['g2'], p['b2'])
    if kind == 'dil':
        y = relu(x)
        y = depthwise_conv(y, p['dw'], p['stride'], p['pad'], p['dil'])
        y = conv1x1(y, p['pw'])
        return batchnorm(y, p['g'], p['b'])
    if kind == 'seq_bn':                      # pool op + BatchNorm(affine=False)
        return batchnorm(apply_op(p['inner'], x), p['g'], p['b'])
    raise ValueError(kind)


# ----------------------------------------------------------------------------
# AttentionModule / ChannelAttention / MixedOp / Cell / Network
# ----------------------------------------------------------------------------

def init_attention_module(channel, ratio=16):
    return {'w1': _mat_w(channel, channel // ratio),
            'w2': _mat_w(channel // ratio, channel)}


def apply_attention_module(p, x):
    B, H, W, C = x.shape
    y = global_avg_pool(x)                                  # avg-only (max unused)
    y = sigmoid(jnp.dot(relu(jnp.dot(y, p['w1'])), p['w2']))  # (B, C) SE gate
    attention_out = channel_scale(x, y)                     # x * y.expand_as(x)
    op_channel = C // 8
    # per-op attention masses kept on device (no .item() host syncs)
    op_attention = jnp.sum(y.reshape(B, 8, op_channel), axis=(0, 2))   # (8,)
    return attention_out, op_attention


def init_channel_attention(channel, reduction=2):
    return {'w1': _mat_w(channel, channel // reduction),
            'w2': _mat_w(channel // reduction, channel)}


def apply_channel_attention(p, x):
    B = x.shape[0]
    avg = global_avg_pool(x)
    mx = global_max_pool(x)
    z = jnp.concatenate([mx, avg], axis=0)                  # fuse both SE branches
    z = jnp.dot(relu(jnp.dot(z, p['w1'])), p['w2'])
    return sigmoid(z[:B] + z[B:])                           # (B, C)


def init_mixed_op(C, stride):
    k = 16
    ch = C // k
    ops = []
    for prim in PRIMITIVES:
        op = make_op(prim, ch, stride)
        if 'pool' in prim:
            op = {'kind': 'seq_bn', 'inner': op,
                  'g': jnp.ones(ch), 'b': jnp.zeros(ch)}
        ops.append(op)
    return {'C': C, 'stride': stride, 'k': k, 'channel': ch,
            'ca': init_channel_attention(C, 2),
            'aux': (init_factorized_reduce(C, C) if stride == 2
                    else {'kind': 'identity'}),
            'ops': ops,
            'att': init_attention_module(C * 8 // k, ratio=8)}


def apply_mixed_op(p, x):
    B, H, W, C = x.shape
    num_list = apply_channel_attention(p['ca'], x)          # (B, C)
    auxiliary = apply_op(p['aux'], x)                       # on the ORIGINAL x
    x = channel_scale(x, num_list)                          # x * num_list
    kc = C // p['k']
    slist = jnp.sum(num_list, axis=0)                       # (C,)
    _, idx = lax.top_k(slist, kc)                           # sorted, largest
    onehot = jax.nn.one_hot(idx, C, dtype=jnp.float32)      # (kc, C) permutation
    # channel gather via a tiny permutation matmul (fuses in jit)
    xtemp = jnp.einsum('bhwc,jc->bhwj', x, onehot)          # (B, H, W, kc)
    # TODO(synk): batch these 8 branches into grouped convs over 8*kc channels.
    branches = [apply_op(op, xtemp) for op in p['ops']]
    temp = jnp.concatenate(branches, axis=-1)               # (B, Ho, Wo, 8*kc)
    attention_out, op_attention = apply_attention_module(p['att'], temp)
    ch = p['channel']
    Bo, Ho, Wo, _ = attention_out.shape
    # sum of the 8 op groups as one fused reduction
    out = jnp.sum(attention_out.reshape(Bo, Ho, Wo, 8, ch), axis=3)
    if Ho != H:
        x = maxpool2d(x, 2, 2, 0)                           # nn.MaxPool2d(2, 2)
    # scatter `out` back into the selected channels (mask + permutation matmul)
    sel_mask = jnp.sum(onehot, axis=0)                      # (C,), 0/1
    scattered = jnp.einsum('bhwj,jc->bhwc', out, onehot)
    x = x * (1.0 - sel_mask) + scattered
    x = x + auxiliary
    return x, op_attention


def init_cell(steps, multiplier, c_pp, c_p, c, reduction, reduction_prev):
    pre0 = (init_factorized_reduce(c_pp, c) if reduction_prev
            else init_relu_conv_bn(c_pp, c))
    pre1 = init_relu_conv_bn(c_p, c)
    ops = []
    for i in range(steps):
        for j in range(2 + i):
            stride = 2 if reduction and j < 2 else 1
            ops.append(init_mixed_op(c, stride))
    return {'reduction': reduction, 'reduction_prev': reduction_prev,
            'pre0': pre0, 'pre1': pre1, 'ops': ops,
            'steps': steps, 'multiplier': multiplier}


def apply_cell(cell, s0, s1):
    s0 = apply_op(cell['pre0'], s0)
    s1 = apply_op(cell['pre1'], s1)
    states = [s0, s1]
    offset = 0
    op_attention_all = []
    for _ in range(cell['steps']):
        s = 0
        for j, h in enumerate(states):
            temp, op_att = apply_mixed_op(cell['ops'][offset + j], h)
            s = s + temp
            op_attention_all.append(op_att)
        offset += len(states)
        states.append(s)
    if (not cell['reduction']) and (not cell['reduction_prev']):
        states.append(s1)
    return (jnp.concatenate(states[-cell['multiplier']:], axis=-1),
            op_attention_all)


def init_network(C, num_classes, layers, steps=4, multiplier=4, stem_multiplier=3):
    c_curr = stem_multiplier * C
    stem = {'w': _full_w(3, c_curr, 3),
            'g': jnp.ones(c_curr), 'b': jnp.zeros(c_curr)}
    c_pp, c_p, c_curr = c_curr, c_curr, C
    cells = []
    reduction_prev = False
    for i in range(layers):
        if i in [layers // 3, 2 * layers // 3]:
            c_curr *= 2
            reduction = True
        else:
            reduction = False
        cells.append(init_cell(steps, multiplier, c_pp, c_p, c_curr,
                               reduction, reduction_prev))
        reduction_prev = reduction
        c_pp, c_p = c_p, multiplier * c_curr
    classifier = {'w': _mat_w(c_p, num_classes), 'b': jnp.zeros(num_classes)}
    return {'stem': stem, 'cells': cells, 'classifier': classifier}


def network_forward(net, x_nchw):
    # NCHW (PyTorch layout) -> NHWC once; channels stay lane-dense afterwards.
    x = jnp.transpose(x_nchw.astype(jnp.float32), (0, 2, 3, 1))
    s = conv_kxk(x, net['stem']['w'], stride=1, pad=1)
    s = batchnorm(s, net['stem']['g'], net['stem']['b'])
    s0 = s1 = s
    op_att_normal_all, op_att_reduce_all = [], []
    for cell in net['cells']:
        s2, op_att = apply_cell(cell, s0, s1)
        if cell['reduction']:
            op_att_reduce_all.append(op_att)
        else:
            op_att_normal_all.append(op_att)
        s0, s1 = s1, s2
    avg = global_avg_pool(s1)                               # AdaptiveAvgPool2d(1)
    logits = matmul(avg, net['classifier']['w']) + net['classifier']['b']
    return logits, op_att_normal_all, op_att_reduce_all


# ----------------------------------------------------------------------------

if __name__ == "__main__":
    key = jax.random.PRNGKey(0)
    ka, kb, kx = jax.random.split(key, 3)

    # 1) Standalone checks of the Pallas MXU matmul kernel at MXU-shaped sizes
    #    (the network GEMMs at this small demo size deliberately stay on XLA's
    #    small-gemm path per the perf review, so validate the Pallas path here).
    A = jax.random.normal(ka, (512, 1024), jnp.float32)
    Bm = jax.random.normal(kb, (1024, 512), jnp.float32)
    ref = jnp.dot(jnp.maximum(A, 0.0).astype(jnp.bfloat16),
                  Bm.astype(jnp.bfloat16), preferred_element_type=jnp.float32)
    ref = jax.block_until_ready(ref)
    ref_scale = float(jnp.max(jnp.abs(ref))) + 1e-6

    # full-extent-K path (single store, no accumulator)
    out_full = jax.jit(lambda a, b: matmul(a, b, apply_relu=True))(A, Bm)
    out_full = jax.block_until_ready(out_full)
    assert out_full.shape == (512, 512)
    assert float(jnp.max(jnp.abs(out_full - ref))) / ref_scale < 5e-2

    # tiled-K path (f32 VMEM scratch accumulation, single final store)
    out_tiled = jax.jit(
        lambda a, b: _pallas_matmul(a, b, apply_relu=True, tk_cap=256))(A, Bm)
    out_tiled = jax.block_until_ready(out_tiled)
    assert float(jnp.max(jnp.abs(out_tiled - ref))) / ref_scale < 5e-2

    # 2) Full network forward.  Small but structurally faithful config: C=32 so
    #    C // k = 2 channels per MixedOp branch, layers=3 so both normal and
    #    reduction cells (incl. reduction_prev) execute.
    x = jax.random.normal(kx, (2, 3, 16, 16), dtype=jnp.float32)
    net = init_network(C=32, num_classes=10, layers=3,
                       steps=2, multiplier=2, stem_multiplier=3)

    fwd = jax.jit(functools.partial(network_forward, net))
    logits, op_att_normal_all, op_att_reduce_all = fwd(x)
    jax.block_until_ready(logits)

    assert logits.shape == (2, 10)
    assert bool(jnp.all(jnp.isfinite(logits)))
    assert len(op_att_normal_all) == 1 and len(op_att_reduce_all) == 2
    for cell_att in op_att_normal_all + op_att_reduce_all:
        assert len(cell_att) == 5                       # steps=2 -> 2 + 3 MixedOps
        for a in cell_att:
            assert a.shape == (8,)                      # one weight per primitive
    print("KERNEL_OK")
</pallas_src>

<mosaic_0001>
module attributes {stable_mosaic.version = 11 : i64} {
  func.func @_matmul_kernel(%arg0: i32, %arg1: i32, %arg2: i32, %arg3: memref<128x1024xf32, #tpu.memory_space<vmem>>, %arg4: memref<1024x512xbf16, #tpu.memory_space<vmem>>, %arg5: memref<128x512xf32, #tpu.memory_space<vmem>>) attributes {dimension_semantics = [#tpu.dimension_semantics<parallel>, #tpu.dimension_semantics<parallel>, #tpu.dimension_semantics<arbitrary>], iteration_bounds = array<i64: 4, 1, 1>, scalar_prefetch = 0 : i64, scratch_operands = 0 : i64, tpu.core_type = #tpu.core_type<tc>, window_params = [{transform_indices = @transform_0, window_bounds = array<i64: 128, 1024>}, {transform_indices = @transform_1, window_bounds = array<i64: 1024, 512>}, {transform_indices = @transform_2, window_bounds = array<i64: 128, 512>}]} {
    %c0 = arith.constant 0 : index
    %c0_0 = arith.constant 0 : index
    %0 = vector.load %arg3[%c0, %c0_0] : memref<128x1024xf32, #tpu.memory_space<vmem>>, vector<128x1024xf32>
    %cst = arith.constant 0.000000e+00 : f32
    %1 = vector.broadcast %cst : f32 to vector<128x1024xf32>
    %2 = arith.maximumf %0, %1 : vector<128x1024xf32>
    %3 = arith.truncf %2 : vector<128x1024xf32> to vector<128x1024xbf16>
    %c0_1 = arith.constant 0 : index
    %c0_2 = arith.constant 0 : index
    %4 = vector.load %arg4[%c0_1, %c0_2] : memref<1024x512xbf16, #tpu.memory_space<vmem>>, vector<1024x512xbf16>
    %cst_3 = arith.constant dense<0.000000e+00> : vector<128x512xf32>
    %5 = tpu.matmul %3, %4, %cst_3 {dimension_numbers = #tpu.dot_dimension_numbers<[1], [0], [0], [1], [0, 0, 1, 1], [], []>} : vector<128x1024xbf16>, vector<1024x512xbf16>, vector<128x512xf32> -> vector<128x512xf32>
    %c0_4 = arith.constant 0 : index
    %c0_5 = arith.constant 0 : index
    %6 = vector.load %arg5[%c0_4, %c0_5] : memref<128x512xf32, #tpu.memory_space<vmem>>, vector<128x512xf32>
    tpu.vector_store %arg5[%c0_4, %c0_5], %5 {strides = array<i32>} : memref<128x512xf32, #tpu.memory_space<vmem>>, vector<128x512xf32>,
    return
  }
  func.func @transform_0(%arg0: i32, %arg1: i32, %arg2: i32) -> (i32, i32) {
    %c0_i32 = arith.constant 0 : i32
    return %arg0, %arg2 : i32, i32
  }
  func.func @transform_1(%arg0: i32, %arg1: i32, %arg2: i32) -> (i32, i32) {
    %c0_i32 = arith.constant 0 : i32
    return %arg2, %arg1 : i32, i32
  }
  func.func @transform_2(%arg0: i32, %arg1: i32, %arg2: i32) -> (i32, i32) {
    %c0_i32 = arith.constant 0 : i32
    return %arg0, %arg1 : i32, i32
  }
}

</mosaic_0001>

<bundles_post_ra>
// kernel: _lambda_.1
= control target key start
LH: loop header
LB: loop body
LE: loop exit
PB: predicated region body
PF: predicated region fallthrough
CT: control target
= control target key end

     0   :  { %7 = vsyncpa [#allocation3], 0  ;;  %s7699_s0 = inlined_call_operand.vmem [shape: f32[512,1024], index: 0, kind: input, shape index: {}]   ;;  %s7700_s1 = inlined_call_operand.vmem [shape: bf16[1024,512], index: 1, kind: input, shape index: {}]   ;;  %s7701_s2 = inlined_call_operand.hbm [shape: f32[512,512], index: 2, kind: output, shape index: {}]  }
   0x1   :  { %9 = vsyncpa [#allocation3 + $0x1], 0  ;;  %s5290_s9 = smov 0   ;;  %s5292_s10 = smov 0  }
   0x2   :  { %s5294_s11 = smov 0   ;;  %s5296_s12 = smov 0  }
   0x3   :  { %s5298_s13 = smov 0   ;;  %s5300_s14 = smov 0  }
   0x4 LB: > { %s3837_s15 = sadd.s32 4294967295, %s5271_s14   ;;  %s3838_s16 = sadd.s32 4294967294, %s5271_s14   ;;  %s5271_s14 = sphi %s5300_s14, %s15_s14   ;;  %s5267_s13 = sphi %s5298_s13, %s7916_s13   ;;  %s5263_s12 = sphi %s5296_s12, %s7915_s12   ;;  %s5259_s11 = sphi %s5294_s11, %s7914_s11   ;;  %s5255_s10 = sphi %s5292_s10, %s7913_s10   ;;  %s5251_s9 = sphi %s5290_s9, %s7912_s9  }
   0x5   : > { %s34_s17 = sadd.s32 1, %s5267_s13  ;;  %s99_s18 = sadd.s32 1, %s5259_s11 }
   0x6   : > { %p36_p0 = scmp.ge.s32.totalorder %s34_s17, 4  ;;  %p109_p1 = scmp.ne.s32.totalorder %s5259_s11, %s5255_s10 }
   0x7   : > { %p110_p2 = scmp.eq.s32.totalorder %s3837_s15, 3  ;;  %p115_p3 = scmp.ne.s32.totalorder %s5255_s10, %s5251_s9 }
   0x8   : > { %s7918_s17 = smov (%p36_p0, %s34_s17), 0  ;;  %p116_p5 = scmp.eq.s32.totalorder %s3838_s16, 3 }
   0x9   : > { %p5330_p4 = por %p110_p2, %p109_p1  ;;  %s94_s20 = ssub.s32 %s5267_s13, %s7918_s17 }
   0xa   : > { %p3842_p6 = scmp.ge.s32.totalorder %s5271_s14, 1  ;;  %p97_p7 = scmp.eq.s32.totalorder %s94_s20, 0 }
   0xb   : > { %p5337_p8 = por %p116_p5, %p115_p3  ;;  %p164_p9 = scmp.lt.s32.totalorder %s5271_s14, 5 }
   0xc   : > { %s5343_s22 = scalar_select %p97_p7, %s5259_s11, %s99_s18  }
   0xd   : > { %p165_p10 = pnand %p3842_p6, %p164_p9 }
   0xf   : > { %168 = sbr.rel (%p165_p10) target bundleno = 1219 (0x4c3), region = 28 }
  0x14   : > { %v3961_v0 = vld [vmem:[%s7700_s1 + $0xe0] sm:$0xf]  ;;  %v4908_v1 = vld [vmem:[%s7700_s1 + $0xec] sm:$0xf0]  ;;  %s3844_s23 = sshll.u32 %s5263_s12, 4  ;;  %s198_s28 = sand.u32 1, %s5255_s10  }
  0x15   : > { %v4089_v2 = vld [vmem:[%s7700_s1 + $0x1e0] sm:$0xf]  ;;  %v3962_v3 = vor.u32 %v4908_v1, %v3961_v0  ;;  %v4940_v4 = vld [vmem:[%s7700_s1 + $0x1ec] sm:$0xf0]  ;;  %p203_p11 = scmp.lt.s32.totalorder %s3844_s23, 63  ;;  %s3843_s29 = sshll.u32 %s198_s28, 9 }
  0x16   : > { %v4217_v5 = vld [vmem:[%s7700_s1 + $0x2e0] sm:$0xf]  ;;  %v4972_v6 = vld [vmem:[%s7700_s1 + $0x2ec] sm:$0xf0]  ;;  %v4090_v7 = vor.u32 %v4940_v4, %v4089_v2  ;;  %s6354_s24 = scalar_lea.vmem [#allocation2], %s3843_s29  ;;  %s5135_s29 = sshll.u32 %s5263_s12, 9 }
  0x17   : > { %v4218_v8 = vor.u32 %v4972_v6, %v4217_v5  ;;  %v4345_v9 = vld [vmem:[%s7700_s1 + $0x3e0] sm:$0xf]  ;;  %v5004_v10 = vld [vmem:[%s7700_s1 + $0x3ec] sm:$0xf0]  ;;  %2083 = vmatpush.bf16.msra.mxu0 %v3962_v3  ;;  %s7920_s23 = smov (!%p203_p11, %s3844_s23), 63  ;;  %s3730_s4 = scalar_lea.hbm %s7701_s2, %s5135_s29 }
  0x18   : > { %v3945_v11 = vld [vmem:[%s7700_s1 + $0xc0] sm:$0xf]  ;;  %v4346_v12 = vor.u32 %v5004_v10, %v4345_v9  ;;  %v4904_v13 = vld [vmem:[%s7700_s1 + $0xcc] sm:$0xf0]  ;;  %2132 = vmatpush.bf16.msra.mxu1 %v4090_v7  ;;  %s4877_s27 = sshll.u32 %s7920_s23, 6  ;;  %s3731_s5 = sshll.u32 %s6354_s24, 4  ;;  %s3732_s5 = int_to_ptr.vmem [resolvable:$true] %s3731_s5 }
  0x19   : > { %v4073_v14 = vld [vmem:[%s7700_s1 + $0x1c0] sm:$0xf]  ;;  %v4936_v15 = vld [vmem:[%s7700_s1 + $0x1cc] sm:$0xf0]  ;;  %2181 = vmatpush.bf16.msra.mxu2 %v4218_v8  ;;  %v3946_v16 = vor.u32 %v4904_v13, %v3945_v11  ;;  %s5547_s6 = scalar_lea.vmem %s7699_s0, %s4877_s27  ;;  %s3733_s7 = sshll.u32 %s3730_s4, 4  ;;  %s3734_s7 = int_to_ptr.hbm [resolvable:$true] %s3733_s7 }
  0x1a   : > { %v4074_v17 = vor.u32 %v4936_v15, %v4073_v14  ;;  %v4201_v18 = vld [vmem:[%s7700_s1 + $0x2c0] sm:$0xf]  ;;  %v4968_v19 = vld [vmem:[%s7700_s1 + $0x2cc] sm:$0xf0]  ;;  %2230 = vmatpush.bf16.msra.mxu3 %v4346_v12  ;;  %s3716_s12 = scalar_lea.sflag [#allocation3], %s198_s28  ;;  %s5207_s8 = sshra.s32 %s3734_s7, 4  ;;  %s5208_s8 = int_to_ptr.hbm [resolvable:$true] %s5207_s8 }
  0x1b   : > { %v4329_v20 = vld [vmem:[%s7700_s1 + $0x3c0] sm:$0xf]  ;;  %v4202_v21 = vor.u32 %v4968_v19, %v4201_v18  ;;  %v5000_v22 = vld [vmem:[%s7700_s1 + $0x3cc] sm:$0xf0]  ;;  %2084 = vmatpush.bf16.msra.mxu0 %v3946_v16  ;;  %s5209_s23 = scalar_lea.hbm %s5208_s8, 512  ;;  %s5213_s18 = scalar_lea.hbm %s7701_s2, 2048 }
  0x1c   : > { %v3929_v23 = vld [vmem:[%s7700_s1 + $0xa0] sm:$0xf]  ;;  %v4900_v24 = vld [vmem:[%s7700_s1 + $0xac] sm:$0xf0]  ;;  %v4330_v25 = vor.u32 %v5000_v22, %v4329_v20  ;;  %2133 = vmatpush.bf16.msra.mxu1 %v4074_v17  ;;  %p5210_p12 = scmp.ne.s32.totalorder %s5208_s8, %s5209_s23  ;;  %p5214_p1 = scmp.lt.s32.totalorder %s5208_s8, %s7701_s2 }
  0x1d   : > { %v4057_v26 = vld [vmem:[%s7700_s1 + $0x1a0] sm:$0xf]  ;;  %v4932_v27 = vld [vmem:[%s7700_s1 + $0x1ac] sm:$0xf0]  ;;  %v3930_v29 = vor.u32 %v4900_v24, %v3929_v23  ;;  %2182 = vmatpush.bf16.msra.mxu2 %v4202_v21  ;;  %p5215_p2 = scmp.lt.s32.totalorder %s5213_s18, %s5209_s23 }
  0x1e   : > { %v4185_v28 = vld [vmem:[%s7700_s1 + $0x2a0] sm:$0xf]  ;;  %v4964_v30 = vld [vmem:[%s7700_s1 + $0x2ac] sm:$0xf0]  ;;  %v4058_v33 = vor.u32 %v4932_v27, %v4057_v26  ;;  %2231 = vmatpush.bf16.msra.mxu3 %v4330_v25  ;;  %p5211_p13 = pnand %p5210_p12, %p5330_p4 }
  0x1f   : > { %v4313_v31 = vld [vmem:[%s7700_s1 + $0x3a0] sm:$0xf]  ;;  %v4996_v32 = vld [vmem:[%s7700_s1 + $0x3ac] sm:$0xf0]  ;;  %v4186_v34 = vor.u32 %v4964_v30, %v4185_v28  ;;  %2085 = vmatpush.bf16.msra.mxu0 %v3930_v29  ;;  %p5216_p3 = por %p5215_p2, %p5214_p1 }
  0x20   : > { %v3913_v35 = vld [vmem:[%s7700_s1 + $0x80] sm:$0xf]  ;;  %v4896_v36 = vld [vmem:[%s7700_s1 + $0x8c] sm:$0xf0]  ;;  %v4314_v38 = vor.u32 %v4996_v32, %v4313_v31  ;;  %2134 = vmatpush.bf16.msra.mxu1 %v4058_v33  ;;  %p5212_p0 = pneg %p5211_p13 }
  0x21   : > { %v4041_v37 = vld [vmem:[%s7700_s1 + $0x180] sm:$0xf]  ;;  %v4928_v39 = vld [vmem:[%s7700_s1 + $0x18c] sm:$0xf0]  ;;  %v3914_v44 = vor.u32 %v4896_v36, %v3913_v35  ;;  %2183 = vmatpush.bf16.msra.mxu2 %v4186_v34 }
  0x22   : > { %v4169_v40 = vld [vmem:[%s7700_s1 + $0x280] sm:$0xf]  ;;  %v4960_v41 = vld [vmem:[%s7700_s1 + $0x28c] sm:$0xf0]  ;;  %v4042_v45 = vor.u32 %v4928_v39, %v4041_v37  ;;  %2232 = vmatpush.bf16.msra.mxu3 %v4314_v38  ;;  %p5217_p5 = pnand %p5216_p3, %p5212_p0 }
  0x23   : > { %v4297_v42 = vld [vmem:[%s7700_s1 + $0x380] sm:$0xf]  ;;  %v4992_v43 = vld [vmem:[%s7700_s1 + $0x38c] sm:$0xf0]  ;;  %v4170_v46 = vor.u32 %v4960_v41, %v4169_v40  ;;  %2086 = vmatpush.bf16.msra.mxu0 %v3914_v44  ;;  %v228_v40 = vld [vmem:[%s5547_s6 + $0x8] sm:$0xff] }
  0x24   : > { %v3897_v47 = vld [vmem:[%s7700_s1 + $0x60] sm:$0xf]  ;;  %v4892_v48 = vld [vmem:[%s7700_s1 + $0x6c] sm:$0xf0]  ;;  %v4298_v50 = vor.u32 %v4992_v43, %v4297_v42  ;;  %2135 = vmatpush.bf16.msra.mxu1 %v4042_v45 }
  0x25   : > { %v4025_v49 = vld [vmem:[%s7700_s1 + $0x160] sm:$0xf]  ;;  %v4924_v51 = vld [vmem:[%s7700_s1 + $0x16c] sm:$0xf0]  ;;  %v3898_v56 = vor.u32 %v4892_v48, %v3897_v47  ;;  %2184 = vmatpush.bf16.msra.mxu2 %v4170_v46  ;;  %v236_v47 = vld [vmem:[%s5547_s6 + $0x48] sm:$0xff]  ;;  %v356_v48 = vmax.f32 %v228_v40, 0.0 }
  0x26   : > { %v4153_v52 = vld [vmem:[%s7700_s1 + $0x260] sm:$0xf]  ;;  %v4956_v53 = vld [vmem:[%s7700_s1 + $0x26c] sm:$0xf0]  ;;  %v4026_v57 = vor.u32 %v4924_v51, %v4025_v49  ;;  %2233 = vmatpush.bf16.msra.mxu3 %v4298_v50 }
  0x27   : > { %v4281_v54 = vld [vmem:[%s7700_s1 + $0x360] sm:$0xf]  ;;  %v4988_v55 = vld [vmem:[%s7700_s1 + $0x36c] sm:$0xf0]  ;;  %v4154_v58 = vor.u32 %v4956_v53, %v4153_v52  ;;  %2087 = vmatpush.bf16.msra.mxu0 %v3898_v56  ;;  %v364_v52 = vmax.f32 %v236_v47, 0.0  ;;  %v238_v56 = vld [vmem:[%s5547_s6 + $0x58] sm:$0xff] }
  0x28   : > { %v3881_v59 = vld [vmem:[%s7700_s1 + $0x40] sm:$0xf]  ;;  %v4888_v60 = vld [vmem:[%s7700_s1 + $0x4c] sm:$0xf0]  ;;  %v4282_v62 = vor.u32 %v4988_v55, %v4281_v54  ;;  %2136 = vmatpush.bf16.msra.mxu1 %v4026_v57  ;;  %v230_v55 = vld [vmem:[%s5547_s6 + $0x18] sm:$0xff] }
  0x29   : > { %v4009_v61 = vld [vmem:[%s7700_s1 + $0x140] sm:$0xf]  ;;  %v4920_v63 = vld [vmem:[%s7700_s1 + $0x14c] sm:$0xf0]  ;;  %v3882_v4 = vor.u32 %v4888_v60, %v3881_v59  ;;  %2185 = vmatpush.bf16.msra.mxu2 %v4154_v58  ;;  %v358_v59 = vmax.f32 %v230_v55, 0.0  ;;  %v366_v60 = vmax.f32 %v238_v56, 0.0 }
  0x2a   : > { %v4137_v0 = vld [vmem:[%s7700_s1 + $0x240] sm:$0xf]  ;;  %v4952_v1 = vld [vmem:[%s7700_s1 + $0x24c] sm:$0xf0]  ;;  %v4010_v6 = vor.u32 %v4920_v63, %v4009_v61  ;;  %2234 = vmatpush.bf16.msra.mxu3 %v4282_v62  ;;  %v5589_v63 = vpack.c.bf16 %v364_v52, %v356_v48 }
  0x2b   : > { %v4265_v2 = vld [vmem:[%s7700_s1 + $0x340] sm:$0xf]  ;;  %v4984_v3 = vld [vmem:[%s7700_s1 + $0x34c] sm:$0xf0]  ;;  %v4138_v7 = vor.u32 %v4952_v1, %v4137_v0  ;;  %2088 = vmatpush.bf16.msra.mxu0 %v3882_v4 }
  0x2c   : > { %v3865_v5 = vld [vmem:[%s7700_s1 + $0x20] sm:$0xf]  ;;  %v4884_v8 = vld [vmem:[%s7700_s1 + $0x2c] sm:$0xf0]  ;;  %v4266_v11 = vor.u32 %v4984_v3, %v4265_v2  ;;  %2137 = vmatpush.bf16.msra.mxu1 %v4010_v6  ;;  %v5593_v2 = vpack.c.bf16 %v366_v60, %v358_v59  ;;  %v268_v60 = vld [vmem:[%s5547_s6 + $0x148] sm:$0xff] }
  0x2d   : > { %v3993_v9 = vld [vmem:[%s7700_s1 + $0x120] sm:$0xf]  ;;  %v4916_v10 = vld [vmem:[%s7700_s1 + $0x12c] sm:$0xf0]  ;;  %v3866_v16 = vor.u32 %v4884_v8, %v3865_v5  ;;  %2186 = vmatpush.bf16.msra.mxu2 %v4138_v7 }
  0x2e   : > { %v4121_v12 = vld [vmem:[%s7700_s1 + $0x220] sm:$0xf]  ;;  %v4948_v13 = vld [vmem:[%s7700_s1 + $0x22c] sm:$0xf0]  ;;  %v3994_v20 = vor.u32 %v4916_v10, %v3993_v9  ;;  %2235 = vmatpush.bf16.msra.mxu3 %v4266_v11 }
  0x2f   : > { %v4249_v14 = vld [vmem:[%s7700_s1 + $0x320] sm:$0xf]  ;;  %v4980_v15 = vld [vmem:[%s7700_s1 + $0x32c] sm:$0xf0]  ;;  %v4122_v21 = vor.u32 %v4948_v13, %v4121_v12  ;;  %2089 = vmatpush.bf16.msra.mxu0 %v3866_v16 }
  0x30   : > { %v3849_v17 = vld [vmem:[%s7700_s1] sm:$0xf]  ;;  %v4880_v18 = vld [vmem:[%s7700_s1 + $0xc] sm:$0xf0]  ;;  %v4250_v24 = vor.u32 %v4980_v15, %v4249_v14  ;;  %2138 = vmatpush.bf16.msra.mxu1 %v3994_v20 }
  0x31   : > { %v3977_v19 = vld [vmem:[%s7700_s1 + $0x100] sm:$0xf]  ;;  %v4912_v22 = vld [vmem:[%s7700_s1 + $0x10c] sm:$0xf0]  ;;  %v3850_v30 = vor.u32 %v4880_v18, %v3849_v17  ;;  %2187 = vmatpush.bf16.msra.mxu2 %v4122_v21  ;;  %v244_v21 = vld [vmem:[%s5547_s6 + $0x88] sm:$0xff] }
  0x32   : > { %v4105_v23 = vld [vmem:[%s7700_s1 + $0x200] sm:$0xf]  ;;  %v4944_v25 = vld [vmem:[%s7700_s1 + $0x20c] sm:$0xf0]  ;;  %v3978_v35 = vor.u32 %v4912_v22, %v3977_v19  ;;  %2236 = vmatpush.bf16.msra.mxu3 %v4250_v24 }
  0x33   : > { %v4233_v26 = vld [vmem:[%s7700_s1 + $0x300] sm:$0xf]  ;;  %v4976_v27 = vld [vmem:[%s7700_s1 + $0x30c] sm:$0xf0]  ;;  %v4106_v36 = vor.u32 %v4944_v25, %v4105_v23  ;;  %2090 = vmatpush.bf16.msra.mxu0 %v3850_v30  ;;  %v252_v25 = vld [vmem:[%s5547_s6 + $0xc8] sm:$0xff] }
  0x34   : > { %v4729_v28 = vld [vmem:[%s7700_s1 + $0x6e0] sm:$0xf]  ;;  %v5100_v29 = vld [vmem:[%s7700_s1 + $0x6ec] sm:$0xf0]  ;;  %v4234_v37 = vor.u32 %v4976_v27, %v4233_v26  ;;  %2139 = vmatpush.bf16.msra.mxu1 %v3978_v35  ;;  %v254_v30 = vld [vmem:[%s5547_s6 + $0xd8] sm:$0xff]  ;;  %v380_v35 = vmax.f32 %v252_v25, 0.0 }
  0x35   : > { %v4473_v31 = vld [vmem:[%s7700_s1 + $0x4e0] sm:$0xf]  ;;  %v5036_v32 = vld [vmem:[%s7700_s1 + $0x4ec] sm:$0xf0]  ;;  %v4730_v51 = vor.u32 %v5100_v29, %v4729_v28  ;;  %2188 = vmatpush.bf16.msra.mxu2 %v4106_v36  ;;  %v246_v29 = vld [vmem:[%s5547_s6 + $0x98] sm:$0xff] }
  0x36   : > { %v4857_v33 = vld [vmem:[%s7700_s1 + $0x7e0] sm:$0xf]  ;;  %v5132_v34 = vld [vmem:[%s7700_s1 + $0x7ec] sm:$0xf0]  ;;  %v4474_v1 = vor.u32 %v5036_v32, %v4473_v31  ;;  %2237 = vmatpush.bf16.msra.mxu3 %v4234_v37 }
  0x37   : > { %v227_v38 = vld [vmem:[%s5547_s6] sm:$0xff]  ;;  %v5068_v42 = vld [vmem:[%s7700_s1 + $0x5ec] sm:$0xf0]  ;;  %v4858_v57 = vor.u32 %v5132_v34, %v4857_v33  ;;  %2140 = vmatmul.bf16.vlgmr.msra.gmra.mxu1 %v5589_v63  ;;  %v372_v34 = vmax.f32 %v244_v21, 0.0 }
  0x38   : > { %v235_v39 = vld [vmem:[%s5547_s6 + $0x40] sm:$0xff]  ;;  %v5096_v44 = vld [vmem:[%s7700_s1 + $0x6cc] sm:$0xf0]  ;;  %v355_v45 = vmax.f32 %v227_v38, 0.0  ;;  %2279 = vmatpush.bf16.msrb.mxu0 %v4474_v1  ;;  %v374_v38 = vmax.f32 %v246_v29, 0.0  ;;  %v262_v1 = vld [vmem:[%s5547_s6 + $0x118] sm:$0xff] }
  0x39   : > { %v4601_v41 = vld [vmem:[%s7700_s1 + $0x5e0] sm:$0xf]  ;;  %v363_v46 = vmax.f32 %v235_v39, 0.0  ;;  %v229_v49 = vld [vmem:[%s5547_s6 + $0x10] sm:$0xff]  ;;  %2377 = vmatpush.bf16.msrb.mxu2 %v4730_v51  ;;  %2238 = vmatmul.bf16.vlgmr.msra.gmra.mxu3 %v5593_v2  ;;  %v382_v39 = vmax.f32 %v254_v30, 0.0  ;;  %v276_v29 = vld [vmem:[%s5547_s6 + $0x188] sm:$0xff] }
  0x3a   : > { %v4713_v43 = vld [vmem:[%s7700_s1 + $0x6c0] sm:$0xf]  ;;  %v237_v50 = vld [vmem:[%s5547_s6 + $0x50] sm:$0xff]  ;;  %v357_v53 = vmax.f32 %v229_v49, 0.0  ;;  %v4602_v3 = vor.u32 %v5068_v42, %v4601_v41  ;;  %2426 = vmatpush.bf16.msrb.mxu3 %v4858_v57  ;;  %v5645_v41 = vpack.c.bf16 %v380_v35, %v372_v34  ;;  %v260_v57 = vld [vmem:[%s5547_s6 + $0x108] sm:$0xff] }
  0x3b   : > { %v365_v54 = vmax.f32 %v237_v50, 0.0  ;;  %v5581_v58 = vpack.c.bf16 %v363_v46, %v355_v45  ;;  %v4841_v61 = vld [vmem:[%s7700_s1 + $0x7c0] sm:$0xf]  ;;  %v5128_v62 = vld [vmem:[%s7700_s1 + $0x7cc] sm:$0xf0]  ;;  %v4714_v4 = vor.u32 %v5096_v44, %v4713_v43  ;;  %v5649_v43 = vpack.c.bf16 %v382_v39, %v374_v38  ;;  %v278_v34 = vld [vmem:[%s5547_s6 + $0x198] sm:$0xff] }
  0x3c   : > { %v4457_v5 = vld [vmem:[%s7700_s1 + $0x4c0] sm:$0xf]  ;;  %v5032_v6 = vld [vmem:[%s7700_s1 + $0x4cc] sm:$0xf0]  ;;  %v4842_v7 = vor.u32 %v5128_v62, %v4841_v61  ;;  %2328 = vmatpush.bf16.msrb.mxu1 %v4602_v3  ;;  %v270_v3 = vld [vmem:[%s5547_s6 + $0x158] sm:$0xff]  ;;  %v404_v38 = vmax.f32 %v276_v29, 0.0 }
  0x3d   : > { %v5591_v0 = vpack.c.bf16 %v365_v54, %v357_v53  ;;  %2091 = vmatmul.bf16.vlgmr.msra.gmra.mxu0 %v5581_v58  ;;  %v4585_v8 = vld [vmem:[%s7700_s1 + $0x5c0] sm:$0xf]  ;;  %v5064_v9 = vld [vmem:[%s7700_s1 + $0x5cc] sm:$0xf0]  ;;  %v4458_v10 = vor.u32 %v5032_v6, %v4457_v5  ;;  %2378 = vmatpush.bf16.msrb.mxu2 %v4714_v4  ;;  %v388_v6 = vmax.f32 %v260_v57, 0.0  ;;  %v286_v35 = vld [vmem:[%s5547_s6 + $0x1d8] sm:$0xff] }
  0x3e   : > { %v4697_v11 = vld [vmem:[%s7700_s1 + $0x6a0] sm:$0xf]  ;;  %v4586_v14 = vor.u32 %v5064_v9, %v4585_v8  ;;  %v5092_v15 = vld [vmem:[%s7700_s1 + $0x6ac] sm:$0xf0]  ;;  %2427 = vmatpush.bf16.msrb.mxu3 %v4842_v7  ;;  %v396_v7 = vmax.f32 %v268_v60, 0.0 }
  0x3f   : > { %2189 = vmatmul.bf16.vlgmr.msra.gmra.mxu2 %v5591_v0  ;;  %v243_v12 = vld [vmem:[%s5547_s6 + $0x80] sm:$0xff]  ;;  %v4698_v17 = vor.u32 %v5092_v15, %v4697_v11  ;;  %v5028_v18 = vld [vmem:[%s7700_s1 + $0x4ac] sm:$0xf0]  ;;  %2280 = vmatpush.bf16.msrb.mxu0 %v4458_v10  ;;  %v390_v10 = vmax.f32 %v262_v1, 0.0  ;;  %v398_v11 = vmax.f32 %v270_v3, 0.0 }
  0x40   : > { %v251_v13 = vld [vmem:[%s5547_s6 + $0xc0] sm:$0xff]  ;;  %v5124_v20 = vld [vmem:[%s7700_s1 + $0x7ac] sm:$0xf0]  ;;  %2329 = vmatpush.bf16.msrb.mxu1 %v4586_v14  ;;  %v371_v32 = vmax.f32 %v243_v12, 0.0 }
  0x41   : > { %v4441_v16 = vld [vmem:[%s7700_s1 + $0x4a0] sm:$0xf]  ;;  %v5060_v24 = vld [vmem:[%s7700_s1 + $0x5ac] sm:$0xf0]  ;;  %2379 = vmatpush.bf16.msrb.mxu2 %v4698_v17  ;;  %v379_v33 = vmax.f32 %v251_v13, 0.0  ;;  %v5689_v13 = vpack.c.bf16 %v396_v7, %v388_v6  ;;  %v5693_v15 = vpack.c.bf16 %v398_v11, %v390_v10  ;;  %v300_v7 = vld [vmem:[%s5547_s6 + $0x248] sm:$0xff] }
  0x42   : > { %v4825_v19 = vld [vmem:[%s7700_s1 + $0x7a0] sm:$0xf]  ;;  %v245_v26 = vld [vmem:[%s5547_s6 + $0x90] sm:$0xff]  ;;  %v4442_v28 = vor.u32 %v5028_v18, %v4441_v16  ;;  %v294_v10 = vld [vmem:[%s5547_s6 + $0x218] sm:$0xff] }
  0x43   : > { %v4826_v22 = vor.u32 %v5124_v20, %v4825_v19  ;;  %v4569_v23 = vld [vmem:[%s7700_s1 + $0x5a0] sm:$0xf]  ;;  %v253_v27 = vld [vmem:[%s5547_s6 + $0xd0] sm:$0xff]  ;;  %v373_v36 = vmax.f32 %v245_v26, 0.0  ;;  %v5643_v40 = vpack.c.bf16 %v379_v33, %v371_v32  ;;  %v302_v11 = vld [vmem:[%s5547_s6 + $0x258] sm:$0xff] }
  0x44   : > { %v4570_v31 = vor.u32 %v5060_v24, %v4569_v23  ;;  %v381_v37 = vmax.f32 %v253_v27, 0.0  ;;  %2281 = vmatpush.bf16.msrb.mxu0 %v4442_v28  ;;  %v4681_v44 = vld [vmem:[%s7700_s1 + $0x680] sm:$0xf]  ;;  %v5088_v45 = vld [vmem:[%s7700_s1 + $0x68c] sm:$0xf0] }
  0x45   : > { %2428 = vmatpush.bf16.msrb.mxu3 %v4826_v22  ;;  %v4425_v46 = vld [vmem:[%s7700_s1 + $0x480] sm:$0xf]  ;;  %v4682_v47 = vor.u32 %v5088_v45, %v4681_v44  ;;  %v5024_v48 = vld [vmem:[%s7700_s1 + $0x48c] sm:$0xf0] }
  0x46   : > { %2330 = vmatpush.bf16.msrb.mxu1 %v4570_v31  ;;  %v5647_v42 = vpack.c.bf16 %v381_v37, %v373_v36  ;;  %v4809_v49 = vld [vmem:[%s7700_s1 + $0x780] sm:$0xf]  ;;  %v5120_v50 = vld [vmem:[%s7700_s1 + $0x78c] sm:$0xf0]  ;;  %v4426_v51 = vor.u32 %v5024_v48, %v4425_v46  ;;  %v284_v31 = vld [vmem:[%s5547_s6 + $0x1c8] sm:$0xff]  ;;  %v406_v46 = vmax.f32 %v278_v34, 0.0 }
  0x47   : > { %2145 = vmatmul.bf16.gmra.mxu1 %v5645_v41  ;;  %v4810_v52 = vor.u32 %v5120_v50, %v4809_v49  ;;  %v4553_v53 = vld [vmem:[%s7700_s1 + $0x580] sm:$0xf]  ;;  %v5056_v54 = vld [vmem:[%s7700_s1 + $0x58c] sm:$0xf0]  ;;  %2380 = vmatpush.bf16.msrb.mxu2 %v4682_v47  ;;  %v412_v39 = vmax.f32 %v284_v31, 0.0  ;;  %v414_v47 = vmax.f32 %v286_v35, 0.0 }
  0x48   : > { %v259_v55 = vld [vmem:[%s5547_s6 + $0x100] sm:$0xff]  ;;  %v4554_v59 = vor.u32 %v5056_v54, %v4553_v53  ;;  %v261_v61 = vld [vmem:[%s5547_s6 + $0x110] sm:$0xff]  ;;  %2282 = vmatpush.bf16.msrb.mxu0 %v4426_v51 }
  0x49   : > { %2243 = vmatmul.bf16.gmra.mxu3 %v5649_v43  ;;  %v267_v56 = vld [vmem:[%s5547_s6 + $0x140] sm:$0xff]  ;;  %v269_v62 = vld [vmem:[%s5547_s6 + $0x150] sm:$0xff]  ;;  %v387_v4 = vmax.f32 %v259_v55, 0.0  ;;  %v389_v8 = vmax.f32 %v261_v61, 0.0  ;;  %v5733_v49 = vpack.c.bf16 %v412_v39, %v404_v38  ;;  %v5737_v51 = vpack.c.bf16 %v414_v47, %v406_v46  ;;  %v316_v47 = vld [vmem:[%s5547_s6 + $0x2c8] sm:$0xff] }
  0x4a   : > { %2429 = vmatpush.bf16.msrb.mxu3 %v4810_v52  ;;  %2331 = vmatpush.bf16.msrb.mxu1 %v4554_v59  ;;  %v395_v5 = vmax.f32 %v267_v56, 0.0  ;;  %v397_v9 = vmax.f32 %v269_v62, 0.0  ;;  %v4665_v16 = vld [vmem:[%s7700_s1 + $0x660] sm:$0xf]  ;;  %v5084_v17 = vld [vmem:[%s7700_s1 + $0x66c] sm:$0xf0] }
  0x4b   : > { %v4409_v18 = vld [vmem:[%s7700_s1 + $0x460] sm:$0xf]  ;;  %v4666_v19 = vor.u32 %v5084_v17, %v4665_v16  ;;  %v5020_v20 = vld [vmem:[%s7700_s1 + $0x46c] sm:$0xf0] }
  0x4c   : > { %v5687_v12 = vpack.c.bf16 %v395_v5, %v387_v4  ;;  %v5691_v14 = vpack.c.bf16 %v397_v9, %v389_v8  ;;  %v4793_v21 = vld [vmem:[%s7700_s1 + $0x760] sm:$0xf]  ;;  %v5116_v22 = vld [vmem:[%s7700_s1 + $0x76c] sm:$0xf0]  ;;  %v4410_v23 = vor.u32 %v5020_v20, %v4409_v18  ;;  %v292_v5 = vld [vmem:[%s5547_s6 + $0x208] sm:$0xff] }
  0x4d   : > { %2096 = vmatmul.bf16.gmra.mxu0 %v5643_v40  ;;  %v4794_v24 = vor.u32 %v5116_v22, %v4793_v21  ;;  %v4537_v25 = vld [vmem:[%s7700_s1 + $0x560] sm:$0xf]  ;;  %v5052_v26 = vld [vmem:[%s7700_s1 + $0x56c] sm:$0xf0]  ;;  %2381 = vmatpush.bf16.msrb.mxu2 %v4666_v19  ;;  %v420_v18 = vmax.f32 %v292_v5, 0.0  ;;  %v428_v19 = vmax.f32 %v300_v7, 0.0 }
  0x4e   : > { %v275_v27 = vld [vmem:[%s5547_s6 + $0x180] sm:$0xff]  ;;  %v4538_v30 = vor.u32 %v5052_v26, %v4537_v25  ;;  %v277_v32 = vld [vmem:[%s5547_s6 + $0x190] sm:$0xff]  ;;  %2283 = vmatpush.bf16.msrb.mxu0 %v4410_v23  ;;  %v422_v22 = vmax.f32 %v294_v10, 0.0  ;;  %v430_v23 = vmax.f32 %v302_v11, 0.0 }
  0x4f   : > { %2194 = vmatmul.bf16.gmra.mxu2 %v5647_v42  ;;  %v283_v28 = vld [vmem:[%s5547_s6 + $0x1c0] sm:$0xff]  ;;  %v285_v33 = vld [vmem:[%s5547_s6 + $0x1d0] sm:$0xff]  ;;  %2430 = vmatpush.bf16.msrb.mxu3 %v4794_v24  ;;  %v403_v36 = vmax.f32 %v275_v27, 0.0  ;;  %v405_v44 = vmax.f32 %v277_v32, 0.0  ;;  %v5777_v25 = vpack.c.bf16 %v428_v19, %v420_v18 }
  0x50   : > { %2332 = vmatpush.bf16.msrb.mxu1 %v4538_v30  ;;  %v411_v37 = vmax.f32 %v283_v28, 0.0  ;;  %v413_v45 = vmax.f32 %v285_v33, 0.0  ;;  %v4649_v52 = vld [vmem:[%s7700_s1 + $0x640] sm:$0xf]  ;;  %v5080_v53 = vld [vmem:[%s7700_s1 + $0x64c] sm:$0xf0]  ;;  %v5781_v27 = vpack.c.bf16 %v430_v23, %v422_v22 }
  0x51   : > { %v4393_v54 = vld [vmem:[%s7700_s1 + $0x440] sm:$0xf]  ;;  %v4650_v55 = vor.u32 %v5080_v53, %v4649_v52  ;;  %v5016_v56 = vld [vmem:[%s7700_s1 + $0x44c] sm:$0xf0] }
  0x52   : > { %v5731_v48 = vpack.c.bf16 %v411_v37, %v403_v36  ;;  %v5735_v50 = vpack.c.bf16 %v413_v45, %v405_v44  ;;  %v4777_v57 = vld [vmem:[%s7700_s1 + $0x740] sm:$0xf]  ;;  %v5112_v59 = vld [vmem:[%s7700_s1 + $0x74c] sm:$0xf0]  ;;  %v4394_v60 = vor.u32 %v5016_v56, %v4393_v54  ;;  %v308_v45 = vld [vmem:[%s5547_s6 + $0x288] sm:$0xff] }
  0x53   : > { %v4778_v61 = vor.u32 %v5112_v59, %v4777_v57  ;;  %v4521_v62 = vld [vmem:[%s7700_s1 + $0x540] sm:$0xf]  ;;  %v5048_v1 = vld [vmem:[%s7700_s1 + $0x54c] sm:$0xf0]  ;;  %2382 = vmatpush.bf16.msrb.mxu2 %v4650_v55  ;;  %v310_v54 = vld [vmem:[%s5547_s6 + $0x298] sm:$0xff]  ;;  %v436_v59 = vmax.f32 %v308_v45, 0.0 }
  0x54   : > { %v291_v3 = vld [vmem:[%s5547_s6 + $0x200] sm:$0xff]  ;;  %v4522_v6 = vor.u32 %v5048_v1, %v4521_v62  ;;  %v293_v8 = vld [vmem:[%s5547_s6 + $0x210] sm:$0xff]  ;;  %2284 = vmatpush.bf16.msrb.mxu0 %v4394_v60  ;;  %v318_v55 = vld [vmem:[%s5547_s6 + $0x2d8] sm:$0xff]  ;;  %v444_v60 = vmax.f32 %v316_v47, 0.0  ;;  %v438_v1 = vmax.f32 %v310_v54, 0.0 }
  0x55   : > { %v299_v4 = vld [vmem:[%s5547_s6 + $0x240] sm:$0xff]  ;;  %v301_v9 = vld [vmem:[%s5547_s6 + $0x250] sm:$0xff]  ;;  %2431 = vmatpush.bf16.msrb.mxu3 %v4778_v61  ;;  %v419_v16 = vmax.f32 %v291_v3, 0.0  ;;  %v421_v20 = vmax.f32 %v293_v8, 0.0  ;;  %v446_v3 = vmax.f32 %v318_v55, 0.0 }
  0x56   : > { %2333 = vmatpush.bf16.msrb.mxu1 %v4522_v6  ;;  %v427_v17 = vmax.f32 %v299_v4, 0.0  ;;  %v429_v21 = vmax.f32 %v301_v9, 0.0  ;;  %v4633_v28 = vld [vmem:[%s7700_s1 + $0x620] sm:$0xf]  ;;  %v5076_v29 = vld [vmem:[%s7700_s1 + $0x62c] sm:$0xf0]  ;;  %v5821_v5 = vpack.c.bf16 %v444_v60, %v436_v59 }
  0x57   : > { %2150 = vmatmul.bf16.gmra.mxu1 %v5689_v13  ;;  %v4377_v30 = vld [vmem:[%s7700_s1 + $0x420] sm:$0xf]  ;;  %v4634_v31 = vor.u32 %v5076_v29, %v4633_v28  ;;  %v5012_v32 = vld [vmem:[%s7700_s1 + $0x42c] sm:$0xf0]  ;;  %v5825_v7 = vpack.c.bf16 %v446_v3, %v438_v1  ;;  %v324_v29 = vld [vmem:[%s5547_s6 + $0x308] sm:$0xff] }
  0x58   : > { %v5775_v24 = vpack.c.bf16 %v427_v17, %v419_v16  ;;  %v5779_v26 = vpack.c.bf16 %v429_v21, %v421_v20  ;;  %v4761_v33 = vld [vmem:[%s7700_s1 + $0x720] sm:$0xf]  ;;  %v5108_v34 = vld [vmem:[%s7700_s1 + $0x72c] sm:$0xf0]  ;;  %v4378_v35 = vor.u32 %v5012_v32, %v4377_v30  ;;  %v4906_v59 = vld [vmem:[%s7700_s1 + $0xe4] sm:$0xf] }
  0x59   : > { %2248 = vmatmul.bf16.gmra.mxu3 %v5693_v15  ;;  %v4762_v36 = vor.u32 %v5108_v34, %v4761_v33  ;;  %v4505_v37 = vld [vmem:[%s7700_s1 + $0x520] sm:$0xf]  ;;  %v5044_v38 = vld [vmem:[%s7700_s1 + $0x52c] sm:$0xf0]  ;;  %2383 = vmatpush.bf16.msrb.mxu2 %v4634_v31  ;;  %v332_v31 = vld [vmem:[%s5547_s6 + $0x348] sm:$0xff] }
  0x5a   : > { %v307_v39 = vld [vmem:[%s5547_s6 + $0x280] sm:$0xff]  ;;  %v4506_v46 = vor.u32 %v5044_v38, %v4505_v37  ;;  %v309_v52 = vld [vmem:[%s5547_s6 + $0x290] sm:$0xff]  ;;  %2285 = vmatpush.bf16.msrb.mxu0 %v4378_v35  ;;  %v326_v34 = vld [vmem:[%s5547_s6 + $0x318] sm:$0xff]  ;;  %v452_v38 = vmax.f32 %v324_v29, 0.0 }
  0x5b   : > { %v315_v44 = vld [vmem:[%s5547_s6 + $0x2c0] sm:$0xff]  ;;  %v317_v53 = vld [vmem:[%s5547_s6 + $0x2d0] sm:$0xff]  ;;  %2432 = vmatpush.bf16.msrb.mxu3 %v4762_v36  ;;  %v435_v56 = vmax.f32 %v307_v39, 0.0  ;;  %v437_v61 = vmax.f32 %v309_v52, 0.0  ;;  %v334_v35 = vld [vmem:[%s5547_s6 + $0x358] sm:$0xff]  ;;  %v460_v39 = vmax.f32 %v332_v31, 0.0 }
  0x5c   : > { %2334 = vmatpush.bf16.msrb.mxu1 %v4506_v46  ;;  %v443_v57 = vmax.f32 %v315_v44, 0.0  ;;  %v445_v62 = vmax.f32 %v317_v53, 0.0  ;;  %v4617_v8 = vld [vmem:[%s7700_s1 + $0x600] sm:$0xf]  ;;  %v5072_v9 = vld [vmem:[%s7700_s1 + $0x60c] sm:$0xf0] }
  0x5d   : > { %2101 = vmatmul.bf16.gmra.mxu0 %v5687_v12  ;;  %v4361_v10 = vld [vmem:[%s7700_s1 + $0x400] sm:$0xf]  ;;  %v4618_v11 = vor.u32 %v5072_v9, %v4617_v8  ;;  %v5008_v16 = vld [vmem:[%s7700_s1 + $0x40c] sm:$0xf0]  ;;  %v454_v46 = vmax.f32 %v326_v34, 0.0  ;;  %v462_v47 = vmax.f32 %v334_v35, 0.0  ;;  %v5865_v53 = vpack.c.bf16 %v460_v39, %v452_v38 }
  0x5e   : > { %v5819_v4 = vpack.c.bf16 %v443_v57, %v435_v56  ;;  %v5823_v6 = vpack.c.bf16 %v445_v62, %v437_v61  ;;  %v4745_v17 = vld [vmem:[%s7700_s1 + $0x700] sm:$0xf]  ;;  %v5104_v18 = vld [vmem:[%s7700_s1 + $0x70c] sm:$0xf0]  ;;  %v4362_v19 = vor.u32 %v5008_v16, %v4361_v10  ;;  %v4970_v56 = vld [vmem:[%s7700_s1 + $0x2e4] sm:$0xf] }
  0x5f   : > { %2199 = vmatmul.bf16.gmra.mxu2 %v5691_v14  ;;  %v4746_v20 = vor.u32 %v5104_v18, %v4745_v17  ;;  %v4489_v21 = vld [vmem:[%s7700_s1 + $0x500] sm:$0xf]  ;;  %v5040_v22 = vld [vmem:[%s7700_s1 + $0x50c] sm:$0xf0]  ;;  %v5869_v55 = vpack.c.bf16 %v462_v47, %v454_v46  ;;  %v4219_v57 = vld [vmem:[%s7700_s1 + $0x2f0] sm:$0xf0] }
  0x60   : > { %v323_v23 = vld [vmem:[%s5547_s6 + $0x300] sm:$0xff]  ;;  %2384 = vmatpush.bf16.msrb.mxu2 %v4618_v11  ;;  %v4490_v30 = vor.u32 %v5040_v22, %v4489_v21  ;;  %v325_v32 = vld [vmem:[%s5547_s6 + $0x310] sm:$0xff]  ;;  %2286 = vmatpush.bf16.msrb.mxu0 %v4362_v19  ;;  %v4222_v60 = vor.u32 %v4970_v56, %v4219_v57  ;;  %v340_v11 = vld [vmem:[%s5547_s6 + $0x388] sm:$0xff] }
  0x61   : > { %v331_v28 = vld [vmem:[%s5547_s6 + $0x340] sm:$0xff]  ;;  %v333_v33 = vld [vmem:[%s5547_s6 + $0x350] sm:$0xff]  ;;  %2433 = vmatpush.bf16.msrb.mxu3 %v4746_v20  ;;  %v451_v36 = vmax.f32 %v323_v23, 0.0  ;;  %v453_v44 = vmax.f32 %v325_v32, 0.0  ;;  %7779 = vst [vmem:[#allocation6_spill] sm:$0xff] %v5869_v55  ;;  %v348_v16 = vld [vmem:[%s5547_s6 + $0x3c8] sm:$0xff] }
  0x62   : > { %2335 = vmatpush.bf16.msrb.mxu1 %v4490_v30  ;;  %v459_v37 = vmax.f32 %v331_v28, 0.0  ;;  %v461_v45 = vmax.f32 %v333_v33, 0.0  ;;  %v3963_v61 = vld [vmem:[%s7700_s1 + $0xf0] sm:$0xf0]  ;;  %v5002_v62 = vld [vmem:[%s7700_s1 + $0x3e4] sm:$0xf] }
  0x63   : > { %v4347_v1 = vld [vmem:[%s7700_s1 + $0x3f0] sm:$0xf0]  ;;  %v339_v3 = vld [vmem:[%s5547_s6 + $0x380] sm:$0xff]  ;;  %v3966_v8 = vor.u32 %v4906_v59, %v3963_v61  ;;  %v342_v19 = vld [vmem:[%s5547_s6 + $0x398] sm:$0xff]  ;;  %v468_v30 = vmax.f32 %v340_v11, 0.0  ;;  %v476_v31 = vmax.f32 %v348_v16, 0.0 }
  0x64   : > { %v5863_v52 = vpack.c.bf16 %v459_v37, %v451_v36  ;;  %v5867_v54 = vpack.c.bf16 %v461_v45, %v453_v44  ;;  %v4350_v9 = vor.u32 %v5002_v62, %v4347_v1  ;;  %v347_v10 = vld [vmem:[%s5547_s6 + $0x3c0] sm:$0xff]  ;;  %2573 = vmatpush.bf16.msra.mxu2 %v4222_v60  ;;  %v341_v17 = vld [vmem:[%s5547_s6 + $0x390] sm:$0xff]  ;;  %v350_v20 = vld [vmem:[%s5547_s6 + $0x3d8] sm:$0xff]  ;;  %v467_v23 = vmax.f32 %v339_v3, 0.0 }
  0x65   : > { %v349_v18 = vld [vmem:[%s5547_s6 + $0x3d0] sm:$0xff]  ;;  %2475 = vmatpush.bf16.msra.mxu0 %v3966_v8  ;;  %v4938_v21 = vld [vmem:[%s7700_s1 + $0x1e4] sm:$0xf]  ;;  %v475_v28 = vmax.f32 %v347_v10, 0.0  ;;  %v469_v32 = vmax.f32 %v341_v17, 0.0  ;;  %v470_v34 = vmax.f32 %v342_v19, 0.0  ;;  %v5909_v37 = vpack.c.bf16 %v476_v31, %v468_v30 }
  0x66   : > { %7778 = vst [vmem:[#allocation5_spill] sm:$0xff] %v5867_v54  ;;  %2622 = vmatpush.bf16.msra.mxu3 %v4350_v9  ;;  %v4091_v22 = vld [vmem:[%s7700_s1 + $0x1f0] sm:$0xf0]  ;;  %v477_v33 = vmax.f32 %v349_v18, 0.0  ;;  %v478_v35 = vmax.f32 %v350_v20, 0.0  ;;  %v231_v60 = vld [vmem:[%s5547_s6 + $0x20] sm:$0xff] }
  0x67   : > { %2155 = vmatmul.bf16.gmra.mxu1 %v5733_v49  ;;  %v4094_v29 = vor.u32 %v4938_v21, %v4091_v22  ;;  %v5907_v36 = vpack.c.bf16 %v475_v28, %v467_v23  ;;  %7781 = vst [vmem:[#allocation8_spill] sm:$0xff] %v5909_v37  ;;  %v4966_v44 = vld [vmem:[%s7700_s1 + $0x2c4] sm:$0xf]  ;;  %v4203_v45 = vld [vmem:[%s7700_s1 + $0x2d0] sm:$0xf0]  ;;  %v232_v3 = vld [vmem:[%s5547_s6 + $0x28] sm:$0xff] }
  0x68   : > { %v5911_v38 = vpack.c.bf16 %v477_v33, %v469_v32  ;;  %v5913_v39 = vpack.c.bf16 %v478_v35, %v470_v34  ;;  %v4902_v46 = vld [vmem:[%s7700_s1 + $0xc4] sm:$0xf]  ;;  %v4206_v47 = vor.u32 %v4966_v44, %v4203_v45  ;;  %v3947_v56 = vld [vmem:[%s7700_s1 + $0xd0] sm:$0xf0]  ;;  %v240_v8 = vld [vmem:[%s5547_s6 + $0x68] sm:$0xff]  ;;  %v359_v19 = vmax.f32 %v231_v60, 0.0 }
  0x69   : > { %2253 = vmatmul.bf16.gmra.mxu3 %v5737_v51  ;;  %2524 = vmatpush.bf16.msra.mxu1 %v4094_v29  ;;  %7780 = vst [vmem:[#allocation7_spill] sm:$0xff] %v5907_v36  ;;  %v4998_v57 = vld [vmem:[%s7700_s1 + $0x3c4] sm:$0xf]  ;;  %v4331_v59 = vld [vmem:[%s7700_s1 + $0x3d0] sm:$0xf0]  ;;  %v3950_v61 = vor.u32 %v4902_v46, %v3947_v56  ;;  %v234_v11 = vld [vmem:[%s5547_s6 + $0x38] sm:$0xff] }
  0x6a   : > { %7782 = vst [vmem:[#allocation9_spill] sm:$0xff] %v5911_v38  ;;  %v4334_v62 = vor.u32 %v4998_v57, %v4331_v59  ;;  %v239_v1 = vld [vmem:[%s5547_s6 + $0x60] sm:$0xff]  ;;  %2574 = vmatpush.bf16.msra.mxu2 %v4206_v47  ;;  %v233_v9 = vld [vmem:[%s5547_s6 + $0x30] sm:$0xff]  ;;  %v242_v16 = vld [vmem:[%s5547_s6 + $0x78] sm:$0xff]  ;;  %v360_v22 = vmax.f32 %v232_v3, 0.0  ;;  %v368_v23 = vmax.f32 %v240_v8, 0.0 }
  0x6b   : > { %7783 = vst [vmem:[#allocation10_spill] sm:$0xff] %v5913_v39  ;;  %v241_v10 = vld [vmem:[%s5547_s6 + $0x70] sm:$0xff]  ;;  %2476 = vmatpush.bf16.msra.mxu0 %v3950_v61  ;;  %v4934_v17 = vld [vmem:[%s7700_s1 + $0x1c4] sm:$0xf]  ;;  %v367_v20 = vmax.f32 %v239_v1, 0.0  ;;  %v361_v28 = vmax.f32 %v233_v9, 0.0 }
  0x6c   : > { %2623 = vmatpush.bf16.msra.mxu3 %v4334_v62  ;;  %v4075_v18 = vld [vmem:[%s7700_s1 + $0x1d0] sm:$0xf0]  ;;  %v369_v29 = vmax.f32 %v241_v10, 0.0  ;;  %v362_v30 = vmax.f32 %v234_v11, 0.0  ;;  %v370_v31 = vmax.f32 %v242_v16, 0.0  ;;  %v5953_v34 = vpack.c.bf16 %v368_v23, %v360_v22  ;;  %v247_v3 = vld [vmem:[%s5547_s6 + $0xa0] sm:$0xff] }
  0x6d   : > { %2106 = vmatmul.bf16.gmra.mxu0 %v5731_v48  ;;  %v4078_v21 = vor.u32 %v4934_v17, %v4075_v18  ;;  %v5951_v32 = vpack.c.bf16 %v367_v20, %v359_v19  ;;  %v4962_v47 = vld [vmem:[%s7700_s1 + $0x2a4] sm:$0xf]  ;;  %v4187_v56 = vld [vmem:[%s7700_s1 + $0x2b0] sm:$0xf0]  ;;  %v248_v18 = vld [vmem:[%s5547_s6 + $0xa8] sm:$0xff] }
  0x6e   : > { %7785 = vst [vmem:[#allocation12_spill] sm:$0xff] %v5953_v34  ;;  %v5955_v35 = vpack.c.bf16 %v369_v29, %v361_v28  ;;  %v5957_v45 = vpack.c.bf16 %v370_v31, %v362_v30  ;;  %v4898_v57 = vld [vmem:[%s7700_s1 + $0xa4] sm:$0xf]  ;;  %v4190_v59 = vor.u32 %v4962_v47, %v4187_v56  ;;  %v3931_v60 = vld [vmem:[%s7700_s1 + $0xb0] sm:$0xf0]  ;;  %v256_v19 = vld [vmem:[%s5547_s6 + $0xe8] sm:$0xff] }
  0x6f   : > { %2204 = vmatmul.bf16.gmra.mxu2 %v5735_v50  ;;  %2525 = vmatpush.bf16.msra.mxu1 %v4078_v21  ;;  %7784 = vst [vmem:[#allocation11_spill] sm:$0xff] %v5951_v32  ;;  %v4994_v61 = vld [vmem:[%s7700_s1 + $0x3a4] sm:$0xf]  ;;  %v4315_v62 = vld [vmem:[%s7700_s1 + $0x3b0] sm:$0xf0]  ;;  %v3934_v8 = vor.u32 %v4898_v57, %v3931_v60  ;;  %v250_v23 = vld [vmem:[%s5547_s6 + $0xb8] sm:$0xff] }
  0x70   : > { %7786 = vst [vmem:[#allocation13_spill] sm:$0xff] %v5955_v35  ;;  %v4318_v9 = vor.u32 %v4994_v61, %v4315_v62  ;;  %v255_v17 = vld [vmem:[%s5547_s6 + $0xe0] sm:$0xff]  ;;  %2575 = vmatpush.bf16.msra.mxu2 %v4190_v59  ;;  %v249_v21 = vld [vmem:[%s5547_s6 + $0xb0] sm:$0xff]  ;;  %v258_v30 = vld [vmem:[%s5547_s6 + $0xf8] sm:$0xff]  ;;  %v376_v56 = vmax.f32 %v248_v18, 0.0  ;;  %v384_v57 = vmax.f32 %v256_v19, 0.0 }
  0x71   : > { %7787 = vst [vmem:[#allocation14_spill] sm:$0xff] %v5957_v45  ;;  %v257_v22 = vld [vmem:[%s5547_s6 + $0xf0] sm:$0xff]  ;;  %2477 = vmatpush.bf16.msra.mxu0 %v3934_v8  ;;  %v4930_v31 = vld [vmem:[%s7700_s1 + $0x1a4] sm:$0xf]  ;;  %v377_v59 = vmax.f32 %v249_v21, 0.0  ;;  %v378_v61 = vmax.f32 %v250_v23, 0.0 }
  0x72   : > { %2624 = vmatpush.bf16.msra.mxu3 %v4318_v9  ;;  %v385_v60 = vmax.f32 %v257_v22, 0.0  ;;  %v386_v62 = vmax.f32 %v258_v30, 0.0  ;;  %v4958_v21 = vld [vmem:[%s7700_s1 + $0x284] sm:$0xf]  ;;  %v4171_v22 = vld [vmem:[%s7700_s1 + $0x290] sm:$0xf0] }
  0x73   : > { %v4894_v23 = vld [vmem:[%s7700_s1 + $0x84] sm:$0xf]  ;;  %v3915_v30 = vld [vmem:[%s7700_s1 + $0x90] sm:$0xf0] }
  0x77   : > { %2160 = vmatmul.bf16.gmra.mxu1 %v5777_v25 }
  0x79   : > { %2258 = vmatmul.bf16.gmra.mxu3 %v5781_v27 }
  0x7d   : > { %2111 = vmatmul.bf16.gmra.mxu0 %v5775_v24 }
  0x7f   : > { %2209 = vmatmul.bf16.gmra.mxu2 %v5779_v26 }
  0x87   : > { %2165 = vmatmul.bf16.gmra.mxu1 %v5821_v5 }
  0x89   : > { %2263 = vmatmul.bf16.gmra.mxu3 %v5825_v7 }
  0x8d   : > { %2116 = vmatmul.bf16.gmra.mxu0 %v5819_v4 }
  0x8f   : > { %2214 = vmatmul.bf16.gmra.mxu2 %v5823_v6 }
  0x97   : > { %2170 = vmatmul.bf16.gmra.mxu1 %v5865_v53 }
  0x99   : > { %2268 = vmatmul.bf16.gmra.mxu3 %v5869_v55 }
  0x9d   : > { %2121 = vmatmul.bf16.gmra.mxu0 %v5863_v52 }
  0x9f   : > { %2219 = vmatmul.bf16.gmra.mxu2 %v5867_v54 }
  0xa7   : > { %2175 = vmatmul.bf16.gmra.mxu1 %v5909_v37 }
  0xa9   : > { %2273 = vmatmul.bf16.gmra.mxu3 %v5913_v39 }
  0xad   : > { %2126 = vmatmul.bf16.gmra.mxu0 %v5907_v36 }
  0xaf   : > { %2224 = vmatmul.bf16.gmra.mxu2 %v5911_v38 }
  0xb4   : > { %v2141_v44 = vpop.f32.mrf.mxu1 }
  0xb7   : > { %2336 = vmatmul.bf16.vlgmr.msrb.gmra.mxu1 %v5953_v34 }
  0xb9   : > { %2434 = vmatmul.bf16.vlgmr.msrb.gmra.mxu3 %v5957_v45 }
  0xba   : > { %v2092_v33 = vpop.f32.mrf.mxu0 }
  0xbb   : > { %v2142_v46 = vadd.f32 %v2141_v44, %v2092_v33  ;;  %v4059_v33 = vld [vmem:[%s7700_s1 + $0x1b0] sm:$0xf0]  ;;  %v375_v44 = vmax.f32 %v247_v3, 0.0 }
  0xbc   : > { %v2239_v11 = vpop.f32.mrf.mxu3  ;;  %v2143_v20 = vpop.f32.mrf.mxu1  ;;  %v4062_v47 = vor.u32 %v4930_v31, %v4059_v33  ;;  %v4990_v31 = vld [vmem:[%s7700_s1 + $0x384] sm:$0xf]  ;;  %v4299_v33 = vld [vmem:[%s7700_s1 + $0x390] sm:$0xf0] }
  0xbd   : > { %2287 = vmatmul.bf16.vlgmr.msrb.gmra.mxu0 %v5951_v32 }
  0xbe   : > { %2526 = vmatpush.bf16.msra.mxu1 %v4062_v47  ;;  %v3918_v47 = vor.u32 %v4894_v23, %v3915_v30  ;;  %v4043_v23 = vld [vmem:[%s7700_s1 + $0x190] sm:$0xf0] }
  0xbf   : > { %2385 = vmatmul.bf16.vlgmr.msrb.gmra.mxu2 %v5955_v35 }
  0xc0   : > { %2478 = vmatpush.bf16.msra.mxu0 %v3918_v47 }
  0xc2   : > { %v2190_v1 = vpop.f32.mrf.mxu2  ;;  %v2094_v16 = vpop.f32.mrf.mxu0 }
  0xc3   : > { %v2191_v10 = vadd.f32 %v2190_v1, %v2142_v46  ;;  %v2144_v29 = vadd.f32 %v2143_v20, %v2094_v16  ;;  %v383_v46 = vmax.f32 %v255_v17, 0.0  ;;  %v5999_v16 = vpack.c.bf16 %v384_v57, %v376_v56 }
  0xc4   : > { %v6001_v20 = vpack.c.bf16 %v385_v60, %v377_v59  ;;  %v2146_v3 = vpop.f32.mrf.mxu1  ;;  %v6003_v17 = vpack.c.bf16 %v386_v62, %v378_v61  ;;  %v4302_v56 = vor.u32 %v4990_v31, %v4299_v33  ;;  %v271_v61 = vld [vmem:[%s5547_s6 + $0x160] sm:$0xff]  ;;  %v264_v62 = vld [vmem:[%s5547_s6 + $0x128] sm:$0xff] }
  0xc5   : > { %v5988_v28 = vadd.f32 %v2239_v11, %v2191_v10  ;;  %v5997_v8 = vpack.c.bf16 %v383_v46, %v375_v44  ;;  %v2241_v10 = vpop.f32.mrf.mxu3  ;;  %7789 = vst [vmem:[#allocation16_spill] sm:$0xff] %v5999_v16  ;;  %v263_v46 = vld [vmem:[%s5547_s6 + $0x120] sm:$0xff]  ;;  %v392_v33 = vmax.f32 %v264_v62, 0.0 }
  0xc6   : > { %7790 = vst [vmem:[#allocation17_spill] sm:$0xff] %v6001_v20  ;;  %2625 = vmatpush.bf16.msra.mxu3 %v4302_v56  ;;  %v391_v30 = vmax.f32 %v263_v46, 0.0 }
  0xc7   : > { %7788 = vst [vmem:[#allocation15_spill] sm:$0xff] %v5997_v8  ;;  %2341 = vmatmul.bf16.gmra.mxu1 %v5999_v16 }
  0xc8   : > { %7791 = vst [vmem:[#allocation18_spill] sm:$0xff] %v6003_v17 }
  0xc9   : > { %2439 = vmatmul.bf16.gmra.mxu3 %v6003_v17  ;;  %v274_v17 = vld [vmem:[%s5547_s6 + $0x178] sm:$0xff] }
  0xca   : > { %v2192_v1 = vpop.f32.mrf.mxu2  ;;  %v2097_v11 = vpop.f32.mrf.mxu0 }
  0xcb   : > { %v2193_v9 = vadd.f32 %v2192_v1, %v2144_v29  ;;  %v2147_v19 = vadd.f32 %v2146_v3, %v2097_v11  ;;  %v4174_v29 = vor.u32 %v4958_v21, %v4171_v22  ;;  %v272_v1 = vld [vmem:[%s5547_s6 + $0x168] sm:$0xff]  ;;  %v273_v11 = vld [vmem:[%s5547_s6 + $0x170] sm:$0xff]  ;;  %v266_v3 = vld [vmem:[%s5547_s6 + $0x138] sm:$0xff] }
  0xcc   : > { %v401_v47 = vmax.f32 %v273_v11, 0.0  ;;  %v394_v56 = vmax.f32 %v266_v3, 0.0  ;;  %v4986_v11 = vld [vmem:[%s7700_s1 + $0x364] sm:$0xf]  ;;  %v4283_v3 = vld [vmem:[%s7700_s1 + $0x370] sm:$0xf0] }
  0xcd   : > { %v6005_v18 = vadd.f32 %v2241_v10, %v2193_v9  ;;  %2292 = vmatmul.bf16.gmra.mxu0 %v5997_v8  ;;  %v2244_v59 = vpop.f32.mrf.mxu3  ;;  %2576 = vmatpush.bf16.msra.mxu2 %v4174_v29  ;;  %v2148_v9 = vpop.f32.mrf.mxu1  ;;  %v265_v10 = vld [vmem:[%s5547_s6 + $0x130] sm:$0xff]  ;;  %v399_v29 = vmax.f32 %v271_v61, 0.0 }
  0xcf   : > { %2390 = vmatmul.bf16.gmra.mxu2 %v6001_v20  ;;  %v393_v20 = vmax.f32 %v265_v10, 0.0  ;;  %v3899_v10 = vld [vmem:[%s7700_s1 + $0x70] sm:$0xf0] }
  0xd1   : > { %v6049_v35 = vpack.c.bf16 %v401_v47, %v393_v20  ;;  %v4954_v20 = vld [vmem:[%s7700_s1 + $0x264] sm:$0xf]  ;;  %v280_v47 = vld [vmem:[%s5547_s6 + $0x1a8] sm:$0xff] }
  0xd2   : > { %v2195_v44 = vpop.f32.mrf.mxu2  ;;  %v2099_v60 = vpop.f32.mrf.mxu0 }
  0xd3   : > { %v2196_v57 = vadd.f32 %v2195_v44, %v2147_v19  ;;  %v2149_v22 = vadd.f32 %v2148_v9, %v2099_v60  ;;  %v4926_v19 = vld [vmem:[%s7700_s1 + $0x184] sm:$0xf]  ;;  %v400_v44 = vmax.f32 %v272_v1, 0.0  ;;  %v6045_v60 = vpack.c.bf16 %v399_v29, %v391_v30  ;;  %7794 = vst [vmem:[#allocation21_spill] sm:$0xff] %v6049_v35 }
  0xd4   : > { %v4046_v31 = vor.u32 %v4926_v19, %v4043_v23  ;;  %v279_v19 = vld [vmem:[%s5547_s6 + $0x1a0] sm:$0xff]  ;;  %v4286_v30 = vor.u32 %v4986_v11, %v4283_v3  ;;  %v408_v3 = vmax.f32 %v280_v47, 0.0 }
  0xd5   : > { %v6036_v21 = vadd.f32 %v2244_v59, %v2196_v57  ;;  %v402_v57 = vmax.f32 %v274_v17, 0.0  ;;  %7792 = vst [vmem:[#allocation19_spill] sm:$0xff] %v6045_v60  ;;  %v2246_v16 = vpop.f32.mrf.mxu3  ;;  %v6047_v45 = vpack.c.bf16 %v400_v44, %v392_v33  ;;  %v2151_v46 = vpop.f32.mrf.mxu1  ;;  %v287_v44 = vld [vmem:[%s5547_s6 + $0x1e0] sm:$0xff] }
  0xd6   : > { %2527 = vmatpush.bf16.msra.mxu1 %v4046_v31  ;;  %2626 = vmatpush.bf16.msra.mxu3 %v4286_v30 }
  0xd7   : > { %7793 = vst [vmem:[#allocation20_spill] sm:$0xff] %v6047_v45  ;;  %v6051_v61 = vpack.c.bf16 %v402_v57, %v394_v56  ;;  %2346 = vmatmul.bf16.gmra.mxu1 %v6047_v45  ;;  %v288_v56 = vld [vmem:[%s5547_s6 + $0x1e8] sm:$0xff] }
  0xd9   : > { %7795 = vst [vmem:[#allocation22_spill] sm:$0xff] %v6051_v61  ;;  %2444 = vmatmul.bf16.gmra.mxu3 %v6051_v61  ;;  %v290_v61 = vld [vmem:[%s5547_s6 + $0x1f8] sm:$0xff] }
  0xda   : > { %v2197_v59 = vpop.f32.mrf.mxu2  ;;  %v2102_v8 = vpop.f32.mrf.mxu0 }
  0xdb   : > { %v2198_v9 = vadd.f32 %v2197_v59, %v2149_v22  ;;  %v2152_v1 = vadd.f32 %v2151_v46, %v2102_v8  ;;  %v4890_v8 = vld [vmem:[%s7700_s1 + $0x64] sm:$0xf]  ;;  %v281_v59 = vld [vmem:[%s5547_s6 + $0x1b0] sm:$0xff]  ;;  %v282_v46 = vld [vmem:[%s5547_s6 + $0x1b8] sm:$0xff] }
  0xdc   : > { %v3902_v23 = vor.u32 %v4890_v8, %v3899_v10  ;;  %v4027_v8 = vld [vmem:[%s7700_s1 + $0x170] sm:$0xf0]  ;;  %v407_v10 = vmax.f32 %v279_v19, 0.0  ;;  %v410_v30 = vmax.f32 %v282_v46, 0.0 }
  0xdd   : > { %v6053_v62 = vadd.f32 %v2246_v16, %v2198_v9  ;;  %2297 = vmatmul.bf16.gmra.mxu0 %v6045_v60  ;;  %v4155_v16 = vld [vmem:[%s7700_s1 + $0x270] sm:$0xf0]  ;;  %v2249_v31 = vpop.f32.mrf.mxu3  ;;  %v2153_v57 = vpop.f32.mrf.mxu1 }
  0xde   : > { %v4158_v17 = vor.u32 %v4954_v20, %v4155_v16  ;;  %v289_v9 = vld [vmem:[%s5547_s6 + $0x1f0] sm:$0xff]  ;;  %2479 = vmatpush.bf16.msra.mxu0 %v3902_v23 }
  0xdf   : > { %2395 = vmatmul.bf16.gmra.mxu2 %v6049_v35  ;;  %v409_v35 = vmax.f32 %v281_v59, 0.0  ;;  %v417_v23 = vmax.f32 %v289_v9, 0.0  ;;  %v3883_v59 = vld [vmem:[%s7700_s1 + $0x50] sm:$0xf0]  ;;  %v4982_v9 = vld [vmem:[%s7700_s1 + $0x344] sm:$0xf] }
  0xe0   : > { %2577 = vmatpush.bf16.msra.mxu2 %v4158_v17  ;;  %v415_v17 = vmax.f32 %v287_v44, 0.0  ;;  %v4267_v46 = vld [vmem:[%s7700_s1 + $0x350] sm:$0xf0] }
  0xe1   : > { %v6097_v32 = vpack.c.bf16 %v417_v23, %v409_v35  ;;  %v4950_v35 = vld [vmem:[%s7700_s1 + $0x244] sm:$0xf]  ;;  %v296_v23 = vld [vmem:[%s5547_s6 + $0x228] sm:$0xff] }
  0xe2   : > { %v2200_v22 = vpop.f32.mrf.mxu2  ;;  %v2104_v33 = vpop.f32.mrf.mxu0 }
  0xe3   : > { %v2201_v29 = vadd.f32 %v2200_v22, %v2152_v1  ;;  %v2154_v16 = vadd.f32 %v2153_v57, %v2104_v33  ;;  %v4922_v1 = vld [vmem:[%s7700_s1 + $0x164] sm:$0xf]  ;;  %v416_v22 = vmax.f32 %v288_v56, 0.0  ;;  %v6093_v33 = vpack.c.bf16 %v415_v17, %v407_v10  ;;  %7798 = vst [vmem:[#allocation25_spill] sm:$0xff] %v6097_v32 }
  0xe4   : > { %v4030_v11 = vor.u32 %v4922_v1, %v4027_v8  ;;  %v295_v1 = vld [vmem:[%s5547_s6 + $0x220] sm:$0xff]  ;;  %v4270_v10 = vor.u32 %v4982_v9, %v4267_v46  ;;  %v424_v46 = vmax.f32 %v296_v23, 0.0 }
  0xe5   : > { %v6084_v20 = vadd.f32 %v2249_v31, %v2201_v29  ;;  %v418_v29 = vmax.f32 %v290_v61, 0.0  ;;  %7796 = vst [vmem:[#allocation23_spill] sm:$0xff] %v6093_v33  ;;  %v2251_v45 = vpop.f32.mrf.mxu3  ;;  %v6095_v34 = vpack.c.bf16 %v416_v22, %v408_v3  ;;  %v2156_v19 = vpop.f32.mrf.mxu1  ;;  %v303_v22 = vld [vmem:[%s5547_s6 + $0x260] sm:$0xff] }
  0xe6   : > { %2528 = vmatpush.bf16.msra.mxu1 %v4030_v11  ;;  %2627 = vmatpush.bf16.msra.mxu3 %v4270_v10 }
  0xe7   : > { %7797 = vst [vmem:[#allocation24_spill] sm:$0xff] %v6095_v34  ;;  %v6099_v44 = vpack.c.bf16 %v418_v29, %v410_v30  ;;  %2351 = vmatmul.bf16.gmra.mxu1 %v6095_v34  ;;  %v304_v30 = vld [vmem:[%s5547_s6 + $0x268] sm:$0xff] }
  0xe9   : > { %7799 = vst [vmem:[#allocation26_spill] sm:$0xff] %v6099_v44  ;;  %2449 = vmatmul.bf16.gmra.mxu3 %v6099_v44  ;;  %v306_v44 = vld [vmem:[%s5547_s6 + $0x278] sm:$0xff] }
  0xea   : > { %v2202_v31 = vpop.f32.mrf.mxu2  ;;  %v2107_v60 = vpop.f32.mrf.mxu0 }
  0xeb   : > { %v2203_v57 = vadd.f32 %v2202_v31, %v2154_v16  ;;  %v2157_v56 = vadd.f32 %v2156_v19, %v2107_v60  ;;  %v4886_v60 = vld [vmem:[%s7700_s1 + $0x44] sm:$0xf]  ;;  %v297_v31 = vld [vmem:[%s5547_s6 + $0x230] sm:$0xff]  ;;  %v298_v19 = vld [vmem:[%s5547_s6 + $0x238] sm:$0xff] }
  0xec   : > { %v3886_v8 = vor.u32 %v4886_v60, %v3883_v59  ;;  %v4011_v60 = vld [vmem:[%s7700_s1 + $0x150] sm:$0xf0]  ;;  %v423_v59 = vmax.f32 %v295_v1, 0.0  ;;  %v426_v10 = vmax.f32 %v298_v19, 0.0 }
  0xed   : > { %v6101_v47 = vadd.f32 %v2251_v45, %v2203_v57  ;;  %2302 = vmatmul.bf16.gmra.mxu0 %v6093_v33  ;;  %v4139_v45 = vld [vmem:[%s7700_s1 + $0x250] sm:$0xf0]  ;;  %v2254_v11 = vpop.f32.mrf.mxu3  ;;  %v2158_v29 = vpop.f32.mrf.mxu1 }
  0xee   : > { %v4142_v61 = vor.u32 %v4950_v35, %v4139_v45  ;;  %v305_v57 = vld [vmem:[%s5547_s6 + $0x270] sm:$0xff]  ;;  %2480 = vmatpush.bf16.msra.mxu0 %v3886_v8 }
  0xef   : > { %2400 = vmatmul.bf16.gmra.mxu2 %v6097_v32  ;;  %v425_v32 = vmax.f32 %v297_v31, 0.0  ;;  %v433_v8 = vmax.f32 %v305_v57, 0.0  ;;  %v3867_v31 = vld [vmem:[%s7700_s1 + $0x30] sm:$0xf0]  ;;  %v4978_v57 = vld [vmem:[%s7700_s1 + $0x324] sm:$0xf] }
  0xf0   : > { %2578 = vmatpush.bf16.msra.mxu2 %v4142_v61  ;;  %v431_v61 = vmax.f32 %v303_v22, 0.0  ;;  %v4251_v19 = vld [vmem:[%s7700_s1 + $0x330] sm:$0xf0] }
  0xf1   : > { %v6145_v38 = vpack.c.bf16 %v433_v8, %v425_v32  ;;  %v4946_v32 = vld [vmem:[%s7700_s1 + $0x224] sm:$0xf]  ;;  %v312_v8 = vld [vmem:[%s5547_s6 + $0x2a8] sm:$0xff] }
  0xf2   : > { %v2205_v16 = vpop.f32.mrf.mxu2  ;;  %v2109_v3 = vpop.f32.mrf.mxu0 }
  0xf3   : > { %v2206_v17 = vadd.f32 %v2205_v16, %v2157_v56  ;;  %v2159_v45 = vadd.f32 %v2158_v29, %v2109_v3  ;;  %v4918_v56 = vld [vmem:[%s7700_s1 + $0x144] sm:$0xf]  ;;  %v432_v16 = vmax.f32 %v304_v30, 0.0  ;;  %v6141_v3 = vpack.c.bf16 %v431_v61, %v423_v59  ;;  %7802 = vst [vmem:[#allocation29_spill] sm:$0xff] %v6145_v38 }
  0xf4   : > { %v4014_v9 = vor.u32 %v4918_v56, %v4011_v60  ;;  %v311_v56 = vld [vmem:[%s5547_s6 + $0x2a0] sm:$0xff]  ;;  %v4254_v59 = vor.u32 %v4978_v57, %v4251_v19  ;;  %v440_v19 = vmax.f32 %v312_v8, 0.0 }
  0xf5   : > { %v6132_v35 = vadd.f32 %v2254_v11, %v2206_v17  ;;  %v434_v17 = vmax.f32 %v306_v44, 0.0  ;;  %7800 = vst [vmem:[#allocation27_spill] sm:$0xff] %v6141_v3  ;;  %v2256_v34 = vpop.f32.mrf.mxu3  ;;  %v6143_v39 = vpack.c.bf16 %v432_v16, %v424_v46  ;;  %v2161_v1 = vpop.f32.mrf.mxu1  ;;  %v319_v16 = vld [vmem:[%s5547_s6 + $0x2e0] sm:$0xff] }
  0xf6   : > { %2529 = vmatpush.bf16.msra.mxu1 %v4014_v9  ;;  %2628 = vmatpush.bf16.msra.mxu3 %v4254_v59 }
  0xf7   : > { %7801 = vst [vmem:[#allocation28_spill] sm:$0xff] %v6143_v39  ;;  %v6147_v22 = vpack.c.bf16 %v434_v17, %v426_v10  ;;  %2356 = vmatmul.bf16.gmra.mxu1 %v6143_v39  ;;  %v320_v10 = vld [vmem:[%s5547_s6 + $0x2e8] sm:$0xff] }
  0xf9   : > { %7803 = vst [vmem:[#allocation30_spill] sm:$0xff] %v6147_v22  ;;  %2454 = vmatmul.bf16.gmra.mxu3 %v6147_v22  ;;  %v322_v22 = vld [vmem:[%s5547_s6 + $0x2f8] sm:$0xff] }
  0xfa   : > { %v2207_v11 = vpop.f32.mrf.mxu2  ;;  %v2112_v33 = vpop.f32.mrf.mxu0 }
  0xfb   : > { %v2208_v29 = vadd.f32 %v2207_v11, %v2159_v45  ;;  %v2162_v30 = vadd.f32 %v2161_v1, %v2112_v33  ;;  %v4882_v33 = vld [vmem:[%s7700_s1 + $0x24] sm:$0xf]  ;;  %v313_v11 = vld [vmem:[%s5547_s6 + $0x2b0] sm:$0xff]  ;;  %v314_v1 = vld [vmem:[%s5547_s6 + $0x2b8] sm:$0xff] }
  0xfc   : > { %v3870_v60 = vor.u32 %v4882_v33, %v3867_v31  ;;  %v3995_v33 = vld [vmem:[%s7700_s1 + $0x130] sm:$0xf0]  ;;  %v439_v31 = vmax.f32 %v311_v56, 0.0  ;;  %v442_v59 = vmax.f32 %v314_v1, 0.0 }
  0xfd   : > { %v6149_v23 = vadd.f32 %v2256_v34, %v2208_v29  ;;  %2307 = vmatmul.bf16.gmra.mxu0 %v6141_v3  ;;  %v4123_v34 = vld [vmem:[%s7700_s1 + $0x230] sm:$0xf0]  ;;  %v2259_v9 = vpop.f32.mrf.mxu3  ;;  %v2163_v17 = vpop.f32.mrf.mxu1 }
  0xfe   : > { %v4126_v44 = vor.u32 %v4946_v32, %v4123_v34  ;;  %v321_v29 = vld [vmem:[%s5547_s6 + $0x2f0] sm:$0xff]  ;;  %2481 = vmatpush.bf16.msra.mxu0 %v3870_v60 }
  0xff   : > { %2405 = vmatmul.bf16.gmra.mxu2 %v6145_v38  ;;  %v441_v38 = vmax.f32 %v313_v11, 0.0  ;;  %v449_v60 = vmax.f32 %v321_v29, 0.0  ;;  %v3851_v11 = vld [vmem:[%s7700_s1 + $0x10] sm:$0xf0]  ;;  %v4974_v29 = vld [vmem:[%s7700_s1 + $0x304] sm:$0xf] }
 0x100   : > { %2579 = vmatpush.bf16.msra.mxu2 %v4126_v44  ;;  %v447_v44 = vmax.f32 %v319_v16, 0.0  ;;  %v4235_v1 = vld [vmem:[%s7700_s1 + $0x310] sm:$0xf0] }
 0x101   : > { %v6193_v36 = vpack.c.bf16 %v449_v60, %v441_v38  ;;  %v4942_v38 = vld [vmem:[%s7700_s1 + $0x204] sm:$0xf]  ;;  %v328_v60 = vld [vmem:[%s5547_s6 + $0x328] sm:$0xff] }
 0x102   : > { %v2210_v45 = vpop.f32.mrf.mxu2  ;;  %v2114_v46 = vpop.f32.mrf.mxu0 }
 0x103   : > { %v2211_v61 = vadd.f32 %v2210_v45, %v2162_v30  ;;  %v2164_v34 = vadd.f32 %v2163_v17, %v2114_v46  ;;  %v4914_v30 = vld [vmem:[%s7700_s1 + $0x124] sm:$0xf]  ;;  %v448_v45 = vmax.f32 %v320_v10, 0.0  ;;  %v6189_v46 = vpack.c.bf16 %v447_v44, %v439_v31  ;;  %7806 = vst [vmem:[#allocation33_spill] sm:$0xff] %v6193_v36 }
 0x104   : > { %v3998_v57 = vor.u32 %v4914_v30, %v3995_v33  ;;  %v327_v30 = vld [vmem:[%s5547_s6 + $0x320] sm:$0xff]  ;;  %v4238_v31 = vor.u32 %v4974_v29, %v4235_v1  ;;  %v456_v1 = vmax.f32 %v328_v60, 0.0 }
 0x105   : > { %v6180_v32 = vadd.f32 %v2259_v9, %v2211_v61  ;;  %v450_v61 = vmax.f32 %v322_v22, 0.0  ;;  %7804 = vst [vmem:[#allocation31_spill] sm:$0xff] %v6189_v46  ;;  %v2261_v39 = vpop.f32.mrf.mxu3  ;;  %v6191_v37 = vpack.c.bf16 %v448_v45, %v440_v19  ;;  %v2166_v56 = vpop.f32.mrf.mxu1  ;;  %v335_v45 = vld [vmem:[%s5547_s6 + $0x360] sm:$0xff] }
 0x106   : > { %2530 = vmatpush.bf16.msra.mxu1 %v3998_v57  ;;  %2629 = vmatpush.bf16.msra.mxu3 %v4238_v31 }
 0x107   : > { %7805 = vst [vmem:[#allocation32_spill] sm:$0xff] %v6191_v37  ;;  %v6195_v16 = vpack.c.bf16 %v450_v61, %v442_v59  ;;  %2361 = vmatmul.bf16.gmra.mxu1 %v6191_v37  ;;  %v336_v59 = vld [vmem:[%s5547_s6 + $0x368] sm:$0xff] }
 0x109   : > { %7807 = vst [vmem:[#allocation34_spill] sm:$0xff] %v6195_v16  ;;  %2459 = vmatmul.bf16.gmra.mxu3 %v6195_v16  ;;  %v338_v16 = vld [vmem:[%s5547_s6 + $0x378] sm:$0xff] }
 0x10a   : > { %v2212_v9 = vpop.f32.mrf.mxu2  ;;  %v2117_v3 = vpop.f32.mrf.mxu0 }
 0x10b   : > { %v2213_v17 = vadd.f32 %v2212_v9, %v2164_v34  ;;  %v2167_v10 = vadd.f32 %v2166_v56, %v2117_v3  ;;  %v4878_v3 = vld [vmem:[%s7700_s1 + $0x4] sm:$0xf]  ;;  %v329_v9 = vld [vmem:[%s5547_s6 + $0x330] sm:$0xff]  ;;  %v330_v56 = vld [vmem:[%s5547_s6 + $0x338] sm:$0xff] }
 0x10c   : > { %v3854_v33 = vor.u32 %v4878_v3, %v3851_v11  ;;  %v3979_v3 = vld [vmem:[%s7700_s1 + $0x110] sm:$0xf0]  ;;  %v455_v11 = vmax.f32 %v327_v30, 0.0  ;;  %v458_v31 = vmax.f32 %v330_v56, 0.0 }
 0x10d   : > { %v6197_v8 = vadd.f32 %v2261_v39, %v2213_v17  ;;  %2312 = vmatmul.bf16.gmra.mxu0 %v6189_v46  ;;  %v4107_v39 = vld [vmem:[%s7700_s1 + $0x210] sm:$0xf0]  ;;  %v2264_v57 = vpop.f32.mrf.mxu3  ;;  %v2168_v61 = vpop.f32.mrf.mxu1 }
 0x10e   : > { %v4110_v22 = vor.u32 %v4942_v38, %v4107_v39  ;;  %v337_v17 = vld [vmem:[%s5547_s6 + $0x370] sm:$0xff]  ;;  %2482 = vmatpush.bf16.msra.mxu0 %v3854_v33 }
 0x10f   : > { %2410 = vmatmul.bf16.gmra.mxu2 %v6193_v36  ;;  %v457_v36 = vmax.f32 %v329_v9, 0.0  ;;  %v465_v33 = vmax.f32 %v337_v17, 0.0  ;;  %v4475_v9 = vld [vmem:[%s7700_s1 + $0x4f0] sm:$0xf0]  ;;  %v5130_v17 = vld [vmem:[%s7700_s1 + $0x7e4] sm:$0xf] }
 0x110   : > { %2580 = vmatpush.bf16.msra.mxu2 %v4110_v22  ;;  %v463_v22 = vmax.f32 %v335_v45, 0.0  ;;  %v4859_v56 = vld [vmem:[%s7700_s1 + $0x7f0] sm:$0xf0] }
 0x111   : > { %v6241_v54 = vpack.c.bf16 %v465_v33, %v457_v36  ;;  %v5098_v36 = vld [vmem:[%s7700_s1 + $0x6e4] sm:$0xf]  ;;  %v344_v33 = vld [vmem:[%s5547_s6 + $0x3a8] sm:$0xff] }
 0x112   : > { %v2215_v34 = vpop.f32.mrf.mxu2  ;;  %v2119_v19 = vpop.f32.mrf.mxu0 }
 0x113   : > { %v2216_v44 = vadd.f32 %v2215_v34, %v2167_v10  ;;  %v2169_v39 = vadd.f32 %v2168_v61, %v2119_v19  ;;  %v4910_v10 = vld [vmem:[%s7700_s1 + $0x104] sm:$0xf]  ;;  %v464_v34 = vmax.f32 %v336_v59, 0.0  ;;  %v6237_v19 = vpack.c.bf16 %v463_v22, %v455_v11  ;;  %7810 = vst [vmem:[#allocation37_spill] sm:$0xff] %v6241_v54 }
 0x114   : > { %v3982_v29 = vor.u32 %v4910_v10, %v3979_v3  ;;  %v343_v10 = vld [vmem:[%s5547_s6 + $0x3a0] sm:$0xff]  ;;  %v4862_v11 = vor.u32 %v5130_v17, %v4859_v56  ;;  %v472_v56 = vmax.f32 %v344_v33, 0.0 }
 0x115   : > { %v6228_v38 = vadd.f32 %v2264_v57, %v2216_v44  ;;  %v466_v44 = vmax.f32 %v338_v16, 0.0  ;;  %7808 = vst [vmem:[#allocation35_spill] sm:$0xff] %v6237_v19  ;;  %v2266_v37 = vpop.f32.mrf.mxu3  ;;  %v6239_v55 = vpack.c.bf16 %v464_v34, %v456_v1  ;;  %v2171_v30 = vpop.f32.mrf.mxu1  ;;  %v351_v34 = vld [vmem:[%s5547_s6 + $0x3e0] sm:$0xff] }
 0x116   : > { %2531 = vmatpush.bf16.msra.mxu1 %v3982_v29  ;;  %2818 = vmatpush.bf16.msrb.mxu3 %v4862_v11  ;;  %v479_v17 = vmax.f32 %v351_v34, 0.0 }
 0x117   : > { %7809 = vst [vmem:[#allocation36_spill] sm:$0xff] %v6239_v55  ;;  %v6243_v45 = vpack.c.bf16 %v466_v44, %v458_v31  ;;  %2366 = vmatmul.bf16.gmra.mxu1 %v6239_v55  ;;  %v352_v31 = vld [vmem:[%s5547_s6 + $0x3e8] sm:$0xff] }
 0x119   : > { %7811 = vst [vmem:[#allocation38_spill] sm:$0xff] %v6243_v45  ;;  %2464 = vmatmul.bf16.gmra.mxu3 %v6243_v45 }
 0x11a   : > { %v2217_v57 = vpop.f32.mrf.mxu2  ;;  %v2122_v46 = vpop.f32.mrf.mxu0 }
 0x11b   : > { %v2218_v61 = vadd.f32 %v2217_v57, %v2169_v39  ;;  %v2172_v59 = vadd.f32 %v2171_v30, %v2122_v46  ;;  %v5034_v46 = vld [vmem:[%s7700_s1 + $0x4e4] sm:$0xf]  ;;  %v345_v57 = vld [vmem:[%s5547_s6 + $0x3b0] sm:$0xff] }
 0x11c   : > { %v4478_v3 = vor.u32 %v5034_v46, %v4475_v9  ;;  %v354_v46 = vld [vmem:[%s5547_s6 + $0x3f8] sm:$0xff]  ;;  %v471_v9 = vmax.f32 %v343_v10, 0.0 }
 0x11d   : > { %v6245_v60 = vadd.f32 %v2266_v37, %v2218_v61  ;;  %2317 = vmatmul.bf16.gmra.mxu0 %v6237_v19  ;;  %v4731_v37 = vld [vmem:[%s7700_s1 + $0x6f0] sm:$0xf0]  ;;  %v2269_v29 = vpop.f32.mrf.mxu3  ;;  %v2173_v44 = vpop.f32.mrf.mxu1 }
 0x11e   : > { %v4734_v16 = vor.u32 %v5098_v36, %v4731_v37  ;;  %v353_v61 = vld [vmem:[%s5547_s6 + $0x3f0] sm:$0xff]  ;;  %2671 = vmatpush.bf16.msrb.mxu0 %v4478_v3  ;;  %v346_v37 = vld [vmem:[%s5547_s6 + $0x3b8] sm:$0xff] }
 0x11f   : > { %2415 = vmatmul.bf16.gmra.mxu2 %v6241_v54  ;;  %v481_v45 = vmax.f32 %v353_v61, 0.0  ;;  %v4603_v3 = vld [vmem:[%s7700_s1 + $0x5f0] sm:$0xf0]  ;;  %v474_v11 = vmax.f32 %v346_v37, 0.0  ;;  %v5030_v37 = vld [vmem:[%s7700_s1 + $0x4c4] sm:$0xf] }
 0x120   : > { %2769 = vmatpush.bf16.msrb.mxu2 %v4734_v16  ;;  %v5066_v16 = vld [vmem:[%s7700_s1 + $0x5e4] sm:$0xf] }
 0x122   : > { %v2220_v39 = vpop.f32.mrf.mxu2  ;;  %v2124_v1 = vpop.f32.mrf.mxu0 }
 0x123   : > { %v2221_v22 = vadd.f32 %v2220_v39, %v2172_v59  ;;  %v2174_v36 = vadd.f32 %v2173_v44, %v2124_v1  ;;  %v480_v59 = vmax.f32 %v352_v31, 0.0  ;;  %v473_v39 = vmax.f32 %v345_v57, 0.0 }
 0x124   : > { %v6285_v44 = vpack.c.bf16 %v479_v17, %v471_v9  ;;  %v4459_v9 = vld [vmem:[%s7700_s1 + $0x4d0] sm:$0xf0]  ;;  %v5126_v17 = vld [vmem:[%s7700_s1 + $0x7c4] sm:$0xf] }
 0x125   : > { %v6275_v30 = vadd.f32 %v2269_v29, %v2221_v22  ;;  %v482_v22 = vmax.f32 %v354_v46, 0.0  ;;  %v4606_v29 = vor.u32 %v5066_v16, %v4603_v3  ;;  %v2271_v34 = vpop.f32.mrf.mxu3  ;;  %v6287_v31 = vpack.c.bf16 %v480_v59, %v472_v56  ;;  %v2176_v61 = vpop.f32.mrf.mxu1  ;;  %v4843_v56 = vld [vmem:[%s7700_s1 + $0x7d0] sm:$0xf0] }
 0x126   : > { %7812 = vst [vmem:[#allocation39_spill] sm:$0xff] %v6285_v44  ;;  %v6289_v57 = vpack.c.bf16 %v481_v45, %v473_v39  ;;  %v4715_v45 = vld [vmem:[%s7700_s1 + $0x6d0] sm:$0xf0]  ;;  %v4462_v39 = vor.u32 %v5030_v37, %v4459_v9  ;;  %v4846_v16 = vor.u32 %v5126_v17, %v4843_v56  ;;  %v5090_v56 = vld [vmem:[%s7700_s1 + $0x6a4] sm:$0xf] }
 0x127   : > { %2720 = vmatpush.bf16.msrb.mxu1 %v4606_v29  ;;  %7813 = vst [vmem:[#allocation40_spill] sm:$0xff] %v6287_v31  ;;  %v6291_v54 = vpack.c.bf16 %v482_v22, %v474_v11 }
 0x128   : > { %7814 = vst [vmem:[#allocation41_spill] sm:$0xff] %v6289_v57  ;;  %2371 = vmatmul.bf16.gmra.mxu1 %v6287_v31  ;;  %2672 = vmatpush.bf16.msrb.mxu0 %v4462_v39 }
 0x129   : > { %7815 = vst [vmem:[#allocation42_spill] sm:$0xff] %v6291_v54  ;;  %2469 = vmatmul.bf16.gmra.mxu3 %v6291_v54 }
 0x12a   : > { %v2222_v1 = vpop.f32.mrf.mxu2  ;;  %v2127_v33 = vpop.f32.mrf.mxu0  ;;  %2819 = vmatpush.bf16.msrb.mxu3 %v4846_v16 }
 0x12b   : > { %v2223_v10 = vadd.f32 %v2222_v1, %v2174_v36  ;;  %v2177_v19 = vadd.f32 %v2176_v61, %v2127_v33  ;;  %v5094_v36 = vld [vmem:[%s7700_s1 + $0x6c4] sm:$0xf]  ;;  %v4587_v33 = vld [vmem:[%s7700_s1 + $0x5d0] sm:$0xf0] }
 0x12c   : > { %v4718_v46 = vor.u32 %v5094_v36, %v4715_v45 }
 0x12d   : > { %v6293_v55 = vadd.f32 %v2271_v34, %v2223_v10  ;;  %2322 = vmatmul.bf16.gmra.mxu0 %v6285_v44  ;;  %v2274_v11 = vpop.f32.mrf.mxu3  ;;  %v2178_v29 = vpop.f32.mrf.mxu1  ;;  %v5062_v34 = vld [vmem:[%s7700_s1 + $0x5c4] sm:$0xf] }
 0x12e   : > { %2770 = vmatpush.bf16.msrb.mxu2 %v4718_v46 }
 0x12f   : > { %2420 = vmatmul.bf16.gmra.mxu2 %v6289_v57 }
 0x132   : > { %v2225_v59 = vpop.f32.mrf.mxu2  ;;  %v2129_v22 = vpop.f32.mrf.mxu0 }
 0x133   : > { %v2226_v3 = vadd.f32 %v2225_v59, %v2177_v19  ;;  %v2179_v10 = vadd.f32 %v2178_v29, %v2129_v22  ;;  %v4590_v19 = vor.u32 %v5062_v34, %v4587_v33  ;;  %v4699_v59 = vld [vmem:[%s7700_s1 + $0x6b0] sm:$0xf0] }
 0x134   : > { %v4702_v16 = vor.u32 %v5090_v56, %v4699_v59  ;;  %v4827_v22 = vld [vmem:[%s7700_s1 + $0x7b0] sm:$0xf0] }
 0x135   : > { %v6317_v1 = vadd.f32 %v2274_v11, %v2226_v3  ;;  %2721 = vmatpush.bf16.msrb.mxu1 %v4590_v19  ;;  %v2276_v45 = vpop.f32.mrf.mxu3  ;;  %v2337_v46 = vpop.f32.mrf.mxu1  ;;  %v4443_v3 = vld [vmem:[%s7700_s1 + $0x4b0] sm:$0xf0]  ;;  %v5122_v11 = vld [vmem:[%s7700_s1 + $0x7a4] sm:$0xf] }
 0x136   : > { %v4830_v34 = vor.u32 %v5122_v11, %v4827_v22  ;;  %2771 = vmatpush.bf16.msrb.mxu2 %v4702_v16 }
 0x138   : > { %2532 = vmatmul.bf16.vlgmr.msra.gmra.mxu1 %v5589_v63  ;;  %2820 = vmatpush.bf16.msrb.mxu3 %v4830_v34 }
 0x139   : > { %2630 = vmatmul.bf16.vlgmr.msra.gmra.mxu3 %v5593_v2 }
 0x13a   : > { %v2227_v61 = vpop.f32.mrf.mxu2  ;;  %v2288_v37 = vpop.f32.mrf.mxu0 }
 0x13b   : > { %v2228_v36 = vadd.f32 %v2227_v61, %v2179_v10  ;;  %v2289_v17 = vadd.f32 %v2288_v37, %v5988_v28  ;;  %v5026_v28 = vld [vmem:[%s7700_s1 + $0x4a4] sm:$0xf] }
 0x13c   : > { %v4446_v10 = vor.u32 %v5026_v28, %v4443_v3 }
 0x13d   : > { %v6326_v9 = vadd.f32 %v2276_v45, %v2228_v36  ;;  %2483 = vmatmul.bf16.vlgmr.msra.gmra.mxu0 %v5581_v58  ;;  %v2338_v39 = vadd.f32 %v2337_v46, %v2289_v17  ;;  %v2435_v19 = vpop.f32.mrf.mxu3  ;;  %v2339_v36 = vpop.f32.mrf.mxu1  ;;  %v5058_v46 = vld [vmem:[%s7700_s1 + $0x5a4] sm:$0xf]  ;;  %v4571_v17 = vld [vmem:[%s7700_s1 + $0x5b0] sm:$0xf0] }
 0x13e   : > { %2673 = vmatpush.bf16.msrb.mxu0 %v4446_v10  ;;  %v4574_v56 = vor.u32 %v5058_v46, %v4571_v17  ;;  %v4683_v10 = vld [vmem:[%s7700_s1 + $0x690] sm:$0xf0] }
 0x13f   : > { %2581 = vmatmul.bf16.vlgmr.msra.gmra.mxu2 %v5591_v0 }
 0x140   : > { %2722 = vmatpush.bf16.msrb.mxu1 %v4574_v56 }
 0x142   : > { %v2386_v29 = vpop.f32.mrf.mxu2  ;;  %v2290_v61 = vpop.f32.mrf.mxu0 }
 0x143   : > { %v2387_v33 = vadd.f32 %v2386_v29, %v2338_v39  ;;  %v2291_v37 = vadd.f32 %v2290_v61, %v6005_v18  ;;  %v5086_v29 = vld [vmem:[%s7700_s1 + $0x684] sm:$0xf] }
 0x144   : > { %v5118_v61 = vld [vmem:[%s7700_s1 + $0x784] sm:$0xf] }
 0x145   : > { %v2436_v45 = vadd.f32 %v2435_v19, %v2387_v33  ;;  %v2340_v59 = vadd.f32 %v2339_v36, %v2291_v37  ;;  %v2437_v16 = vpop.f32.mrf.mxu3  ;;  %v2342_v3 = vpop.f32.mrf.mxu1  ;;  %v4686_v33 = vor.u32 %v5086_v29, %v4683_v10  ;;  %v4427_v19 = vld [vmem:[%s7700_s1 + $0x490] sm:$0xf0] }
 0x146   : > { %v4811_v36 = vld [vmem:[%s7700_s1 + $0x790] sm:$0xf0] }
 0x147   : > { %3651 = vst [vmem:[%s6354_s24] sm:$0xff] %v2436_v45  ;;  %v4814_v46 = vor.u32 %v5118_v61, %v4811_v36  ;;  %2772 = vmatpush.bf16.msrb.mxu2 %v4686_v33  ;;  %v5082_v61 = vld [vmem:[%s7700_s1 + $0x664] sm:$0xf]  ;;  %v4667_v36 = vld [vmem:[%s7700_s1 + $0x670] sm:$0xf0] }
 0x148   : > { %2537 = vmatmul.bf16.gmra.mxu1 %v5645_v41 }
 0x149   : > { %2635 = vmatmul.bf16.gmra.mxu3 %v5649_v43 }
 0x14a   : > { %v2388_v28 = vpop.f32.mrf.mxu2  ;;  %v2293_v18 = vpop.f32.mrf.mxu0  ;;  %2821 = vmatpush.bf16.msrb.mxu3 %v4814_v46  ;;  %v4411_v46 = vld [vmem:[%s7700_s1 + $0x470] sm:$0xf0] }
 0x14b   : > { %v2389_v39 = vadd.f32 %v2388_v28, %v2340_v59  ;;  %v2294_v22 = vadd.f32 %v2293_v18, %v6036_v21  ;;  %v5022_v21 = vld [vmem:[%s7700_s1 + $0x484] sm:$0xf] }
 0x14c   : > { %v4430_v37 = vor.u32 %v5022_v21, %v4427_v19  ;;  %v5054_v18 = vld [vmem:[%s7700_s1 + $0x584] sm:$0xf] }
 0x14d   : > { %v2438_v11 = vadd.f32 %v2437_v16, %v2389_v39  ;;  %2488 = vmatmul.bf16.gmra.mxu0 %v5643_v40  ;;  %v2343_v34 = vadd.f32 %v2342_v3, %v2294_v22  ;;  %v2440_v56 = vpop.f32.mrf.mxu3  ;;  %v2344_v28 = vpop.f32.mrf.mxu1  ;;  %v4555_v3 = vld [vmem:[%s7700_s1 + $0x590] sm:$0xf0] }
 0x14e   : > { %2674 = vmatpush.bf16.msrb.mxu0 %v4430_v37  ;;  %v4670_v37 = vor.u32 %v5082_v61, %v4667_v36 }
 0x14f   : > { %3655 = vst [vmem:[%s6354_s24 + $0x20] sm:$0xff] %v2438_v11  ;;  %2586 = vmatmul.bf16.gmra.mxu2 %v5647_v42  ;;  %v4558_v11 = vor.u32 %v5054_v18, %v4555_v3 }
 0x150   : > { %2773 = vmatpush.bf16.msrb.mxu2 %v4670_v37  ;;  %v5078_v37 = vld [vmem:[%s7700_s1 + $0x644] sm:$0xf] }
 0x151   : > { %2723 = vmatpush.bf16.msrb.mxu1 %v4558_v11 }
 0x152   : > { %v2391_v45 = vpop.f32.mrf.mxu2  ;;  %v2295_v59 = vpop.f32.mrf.mxu0 }
 0x153   : > { %v2392_v17 = vadd.f32 %v2391_v45, %v2343_v34  ;;  %v2296_v16 = vadd.f32 %v2295_v59, %v6053_v62 }
 0x155   : > { %v2441_v39 = vadd.f32 %v2440_v56, %v2392_v17  ;;  %v2345_v22 = vadd.f32 %v2344_v28, %v2296_v16  ;;  %v2442_v21 = vpop.f32.mrf.mxu3  ;;  %v2347_v33 = vpop.f32.mrf.mxu1  ;;  %v5114_v17 = vld [vmem:[%s7700_s1 + $0x764] sm:$0xf]  ;;  %v4795_v56 = vld [vmem:[%s7700_s1 + $0x770] sm:$0xf0] }
 0x157   : > { %3659 = vst [vmem:[%s6354_s24 + $0x40] sm:$0xff] %v2441_v39  ;;  %v4798_v39 = vor.u32 %v5114_v17, %v4795_v56 }
 0x158   : > { %2542 = vmatmul.bf16.gmra.mxu1 %v5689_v13 }
 0x159   : > { %2640 = vmatmul.bf16.gmra.mxu3 %v5693_v15 }
 0x15a   : > { %v2393_v29 = vpop.f32.mrf.mxu2  ;;  %v2298_v34 = vpop.f32.mrf.mxu0  ;;  %2822 = vmatpush.bf16.msrb.mxu3 %v4798_v39  ;;  %v4779_v39 = vld [vmem:[%s7700_s1 + $0x750] sm:$0xf0] }
 0x15b   : > { %v2394_v10 = vadd.f32 %v2393_v29, %v2345_v22  ;;  %v2299_v62 = vadd.f32 %v2298_v34, %v6084_v20  ;;  %v5018_v20 = vld [vmem:[%s7700_s1 + $0x464] sm:$0xf] }
 0x15c   : > { %v4414_v28 = vor.u32 %v5018_v20, %v4411_v46  ;;  %v4651_v46 = vld [vmem:[%s7700_s1 + $0x650] sm:$0xf0] }
 0x15d   : > { %v2443_v19 = vadd.f32 %v2442_v21, %v2394_v10  ;;  %2493 = vmatmul.bf16.gmra.mxu0 %v5687_v12  ;;  %v2348_v45 = vadd.f32 %v2347_v33, %v2299_v62  ;;  %v2445_v18 = vpop.f32.mrf.mxu3  ;;  %v2349_v11 = vpop.f32.mrf.mxu1  ;;  %v5050_v10 = vld [vmem:[%s7700_s1 + $0x564] sm:$0xf]  ;;  %v4539_v21 = vld [vmem:[%s7700_s1 + $0x570] sm:$0xf0]  ;;  %v4654_v56 = vor.u32 %v5078_v37, %v4651_v46 }
 0x15e   : > { %2675 = vmatpush.bf16.msrb.mxu0 %v4414_v28  ;;  %v4542_v34 = vor.u32 %v5050_v10, %v4539_v21  ;;  %v5110_v28 = vld [vmem:[%s7700_s1 + $0x744] sm:$0xf] }
 0x15f   : > { %3663 = vst [vmem:[%s6354_s24 + $0x60] sm:$0xff] %v2443_v19  ;;  %2591 = vmatmul.bf16.gmra.mxu2 %v5691_v14 }
 0x160   : > { %2724 = vmatpush.bf16.msrb.mxu1 %v4542_v34  ;;  %2774 = vmatpush.bf16.msrb.mxu2 %v4654_v56 }
 0x162   : > { %v2396_v59 = vpop.f32.mrf.mxu2  ;;  %v2300_v3 = vpop.f32.mrf.mxu0 }
 0x163   : > { %v2397_v16 = vadd.f32 %v2396_v59, %v2348_v45  ;;  %v2301_v29 = vadd.f32 %v2300_v3, %v6101_v47  ;;  %v4395_v59 = vld [vmem:[%s7700_s1 + $0x450] sm:$0xf0]  ;;  %v4782_v3 = vor.u32 %v5110_v28, %v4779_v39  ;;  %v5106_v39 = vld [vmem:[%s7700_s1 + $0x724] sm:$0xf] }
 0x164   : > { %v4379_v28 = vld [vmem:[%s7700_s1 + $0x430] sm:$0xf0] }
 0x165   : > { %v2446_v22 = vadd.f32 %v2445_v18, %v2397_v16  ;;  %v2350_v33 = vadd.f32 %v2349_v11, %v2301_v29  ;;  %v2447_v61 = vpop.f32.mrf.mxu3  ;;  %v2352_v20 = vpop.f32.mrf.mxu1  ;;  %2823 = vmatpush.bf16.msrb.mxu3 %v4782_v3 }
 0x167   : > { %3667 = vst [vmem:[%s6354_s24 + $0x80] sm:$0xff] %v2446_v22 }
 0x168   : > { %2547 = vmatmul.bf16.gmra.mxu1 %v5733_v49 }
 0x169   : > { %2645 = vmatmul.bf16.gmra.mxu3 %v5737_v51 }
 0x16a   : > { %v2398_v19 = vpop.f32.mrf.mxu2  ;;  %v2303_v36 = vpop.f32.mrf.mxu0 }
 0x16b   : > { %v2399_v62 = vadd.f32 %v2398_v19, %v2350_v33  ;;  %v2304_v47 = vadd.f32 %v2303_v36, %v6132_v35  ;;  %v5014_v35 = vld [vmem:[%s7700_s1 + $0x444] sm:$0xf]  ;;  %v4523_v19 = vld [vmem:[%s7700_s1 + $0x550] sm:$0xf0] }
 0x16c   : > { %v4398_v18 = vor.u32 %v5014_v35, %v4395_v59  ;;  %v5046_v33 = vld [vmem:[%s7700_s1 + $0x544] sm:$0xf] }
 0x16d   : > { %v2448_v45 = vadd.f32 %v2447_v61, %v2399_v62  ;;  %2498 = vmatmul.bf16.gmra.mxu0 %v5731_v48  ;;  %v2353_v17 = vadd.f32 %v2352_v20, %v2304_v47  ;;  %v2450_v22 = vpop.f32.mrf.mxu3  ;;  %v2354_v10 = vpop.f32.mrf.mxu1  ;;  %v4526_v62 = vor.u32 %v5046_v33, %v4523_v19  ;;  %v5074_v35 = vld [vmem:[%s7700_s1 + $0x624] sm:$0xf] }
 0x16e   : > { %2676 = vmatpush.bf16.msrb.mxu0 %v4398_v18  ;;  %v5042_v19 = vld [vmem:[%s7700_s1 + $0x524] sm:$0xf] }
 0x16f   : > { %3671 = vst [vmem:[%s6354_s24 + $0xa0] sm:$0xff] %v2448_v45  ;;  %2596 = vmatmul.bf16.gmra.mxu2 %v5735_v50  ;;  %2725 = vmatpush.bf16.msrb.mxu1 %v4526_v62  ;;  %v4507_v62 = vld [vmem:[%s7700_s1 + $0x530] sm:$0xf0] }
 0x172   : > { %v2401_v16 = vpop.f32.mrf.mxu2  ;;  %v2305_v29 = vpop.f32.mrf.mxu0 }
 0x173   : > { %v2402_v11 = vadd.f32 %v2401_v16, %v2353_v17  ;;  %v2306_v34 = vadd.f32 %v2305_v29, %v6149_v23  ;;  %v4635_v17 = vld [vmem:[%s7700_s1 + $0x630] sm:$0xf0] }
 0x174   : > { %v4638_v59 = vor.u32 %v5074_v35, %v4635_v17  ;;  %v4763_v16 = vld [vmem:[%s7700_s1 + $0x730] sm:$0xf0]  ;;  %v5070_v35 = vld [vmem:[%s7700_s1 + $0x604] sm:$0xf] }
 0x175   : > { %v2451_v21 = vadd.f32 %v2450_v22, %v2402_v11  ;;  %v2355_v61 = vadd.f32 %v2354_v10, %v2306_v34  ;;  %v2452_v45 = vpop.f32.mrf.mxu3  ;;  %v2357_v37 = vpop.f32.mrf.mxu1  ;;  %v4766_v11 = vor.u32 %v5106_v39, %v4763_v16  ;;  %v4619_v17 = vld [vmem:[%s7700_s1 + $0x610] sm:$0xf0] }
 0x176   : > { %2775 = vmatpush.bf16.msrb.mxu2 %v4638_v59  ;;  %v4363_v59 = vld [vmem:[%s7700_s1 + $0x410] sm:$0xf0] }
 0x177   : > { %3675 = vst [vmem:[%s6354_s24 + $0xc0] sm:$0xff] %v2451_v21  ;;  %2824 = vmatpush.bf16.msrb.mxu3 %v4766_v11  ;;  %v4747_v39 = vld [vmem:[%s7700_s1 + $0x710] sm:$0xf0] }
 0x178   : > { %2552 = vmatmul.bf16.gmra.mxu1 %v5777_v25 }
 0x179   : > { %2650 = vmatmul.bf16.gmra.mxu3 %v5781_v27 }
 0x17a   : > { %v2403_v36 = vpop.f32.mrf.mxu2  ;;  %v2308_v47 = vpop.f32.mrf.mxu0 }
 0x17b   : > { %v2404_v20 = vadd.f32 %v2403_v36, %v2355_v61  ;;  %v2309_v23 = vadd.f32 %v2308_v47, %v6180_v32  ;;  %v5010_v32 = vld [vmem:[%s7700_s1 + $0x424] sm:$0xf]  ;;  %v4510_v61 = vor.u32 %v5042_v19, %v4507_v62  ;;  %v4491_v19 = vld [vmem:[%s7700_s1 + $0x510] sm:$0xf0] }
 0x17c   : > { %v4382_v3 = vor.u32 %v5010_v32, %v4379_v28  ;;  %v5102_v28 = vld [vmem:[%s7700_s1 + $0x704] sm:$0xf] }
 0x17d   : > { %v2453_v46 = vadd.f32 %v2452_v45, %v2404_v20  ;;  %2503 = vmatmul.bf16.gmra.mxu0 %v5775_v24  ;;  %v2358_v56 = vadd.f32 %v2357_v37, %v2309_v23  ;;  %v2455_v29 = vpop.f32.mrf.mxu3  ;;  %v2359_v21 = vpop.f32.mrf.mxu1  ;;  %2726 = vmatpush.bf16.msrb.mxu1 %v4510_v61 }
 0x17e   : > { %2677 = vmatpush.bf16.msrb.mxu0 %v4382_v3  ;;  %v4750_v3 = vor.u32 %v5102_v28, %v4747_v39  ;;  %v5005_v28 = vld [vmem:[%s7700_s1 + $0x3f4] sm:$0xf0] }
 0x17f   : > { %3679 = vst [vmem:[%s6354_s24 + $0xe0] sm:$0xff] %v2453_v46  ;;  %2601 = vmatmul.bf16.gmra.mxu2 %v5779_v26 }
 0x180   : > { %2825 = vmatpush.bf16.msrb.mxu3 %v4750_v3 }
 0x182   : > { %v2406_v18 = vpop.f32.mrf.mxu2  ;;  %v2310_v10 = vpop.f32.mrf.mxu0 }
 0x183   : > { %v2407_v22 = vadd.f32 %v2406_v18, %v2358_v56  ;;  %v2311_v33 = vadd.f32 %v2310_v10, %v6197_v8  ;;  %v4622_v56 = vor.u32 %v5070_v35, %v4619_v17  ;;  %v4225_v35 = vld [vmem:[%s7700_s1 + $0x2e8] sm:$0xf]  ;;  %v4973_v17 = vld [vmem:[%s7700_s1 + $0x2f4] sm:$0xf0] }
 0x185   : > { %v2456_v34 = vadd.f32 %v2455_v29, %v2407_v22  ;;  %v2360_v36 = vadd.f32 %v2359_v21, %v2311_v33  ;;  %v2457_v47 = vpop.f32.mrf.mxu3  ;;  %v2362_v46 = vpop.f32.mrf.mxu1  ;;  %2776 = vmatpush.bf16.msrb.mxu2 %v4622_v56  ;;  %v5038_v33 = vld [vmem:[%s7700_s1 + $0x504] sm:$0xf]  ;;  %v4909_v56 = vld [vmem:[%s7700_s1 + $0xf4] sm:$0xf0] }
 0x186   : > { %v4494_v62 = vor.u32 %v5038_v33, %v4491_v19  ;;  %v4941_v33 = vld [vmem:[%s7700_s1 + $0x1f4] sm:$0xf0] }
 0x187   : > { %3683 = vst [vmem:[%s6354_s24 + $0x100] sm:$0xff] %v2456_v34 }
 0x188   : > { %2557 = vmatmul.bf16.gmra.mxu1 %v5821_v5 }
 0x189   : > { %2655 = vmatmul.bf16.gmra.mxu3 %v5825_v7  ;;  %2727 = vmatpush.bf16.msrb.mxu1 %v4494_v62 }
 0x18a   : > { %v2408_v20 = vpop.f32.mrf.mxu2  ;;  %v2313_v37 = vpop.f32.mrf.mxu0 }
 0x18b   : > { %v2409_v45 = vadd.f32 %v2408_v20, %v2360_v36  ;;  %v2314_v8 = vadd.f32 %v2313_v37, %v6228_v38  ;;  %v5006_v38 = vld [vmem:[%s7700_s1 + $0x404] sm:$0xf] }
 0x18c   : > { %v4366_v18 = vor.u32 %v5006_v38, %v4363_v59  ;;  %v4353_v59 = vld [vmem:[%s7700_s1 + $0x3e8] sm:$0xf] }
 0x18d   : > { %v2458_v23 = vadd.f32 %v2457_v47, %v2409_v45  ;;  %2508 = vmatmul.bf16.gmra.mxu0 %v5819_v4  ;;  %v2363_v32 = vadd.f32 %v2362_v46, %v2314_v8  ;;  %v2460_v22 = vpop.f32.mrf.mxu3  ;;  %v2364_v10 = vpop.f32.mrf.mxu1  ;;  %v7817_v8 = vld [vmem:[#allocation6_spill] sm:$0xff] }
 0x18e   : > { %2678 = vmatpush.bf16.msrb.mxu0 %v4366_v18  ;;  %v4354_v18 = vor.u32 %v5005_v28, %v4353_v59  ;;  %v4905_v59 = vld [vmem:[%s7700_s1 + $0xd4] sm:$0xf0]  ;;  %v4337_v28 = vld [vmem:[%s7700_s1 + $0x3c8] sm:$0xf] }
 0x18f   : > { %3687 = vst [vmem:[%s6354_s24 + $0x120] sm:$0xff] %v2458_v23  ;;  %2606 = vmatmul.bf16.gmra.mxu2 %v5823_v6  ;;  %v7816_v23 = vld [vmem:[#allocation5_spill] sm:$0xff] }
 0x190   : > { %3014 = vmatpush.bf16.msra.mxu3 %v4354_v18 }
 0x192   : > { %v2411_v16 = vpop.f32.mrf.mxu2  ;;  %v2315_v29 = vpop.f32.mrf.mxu0 }
 0x193   : > { %v2412_v11 = vadd.f32 %v2411_v16, %v2363_v32  ;;  %v2316_v34 = vadd.f32 %v2315_v29, %v6245_v60  ;;  %v4226_v32 = vor.u32 %v4973_v17, %v4225_v35  ;;  %v7820_v35 = vld [vmem:[#allocation9_spill] sm:$0xff]  ;;  %v7821_v17 = vld [vmem:[#allocation10_spill] sm:$0xff] }
 0x195   : > { %v2461_v21 = vadd.f32 %v2460_v22, %v2412_v11  ;;  %v2365_v61 = vadd.f32 %v2364_v10, %v2316_v34  ;;  %v2462_v45 = vpop.f32.mrf.mxu3  ;;  %v2367_v37 = vpop.f32.mrf.mxu1  ;;  %2965 = vmatpush.bf16.msra.mxu2 %v4226_v32  ;;  %v4097_v34 = vld [vmem:[%s7700_s1 + $0x1e8] sm:$0xf] }
 0x196   : > { %v4098_v19 = vor.u32 %v4941_v33, %v4097_v34  ;;  %v4081_v33 = vld [vmem:[%s7700_s1 + $0x1c8] sm:$0xf] }
 0x197   : > { %3691 = vst [vmem:[%s6354_s24 + $0x140] sm:$0xff] %v2461_v21 }
 0x198   : > { %2562 = vmatmul.bf16.gmra.mxu1 %v5865_v53 }
 0x199   : > { %2660 = vmatmul.bf16.gmra.mxu3 %v7817_v8  ;;  %2916 = vmatpush.bf16.msra.mxu1 %v4098_v19  ;;  %v4937_v19 = vld [vmem:[%s7700_s1 + $0x1d4] sm:$0xf0] }
 0x19a   : > { %v2413_v36 = vpop.f32.mrf.mxu2  ;;  %v2318_v47 = vpop.f32.mrf.mxu0 }
 0x19b   : > { %v2414_v20 = vadd.f32 %v2413_v36, %v2365_v61  ;;  %v2319_v60 = vadd.f32 %v2318_v47, %v6275_v30  ;;  %v3969_v30 = vld [vmem:[%s7700_s1 + $0xe8] sm:$0xf] }
 0x19c   : > { %v3970_v16 = vor.u32 %v4909_v56, %v3969_v30  ;;  %v4209_v30 = vld [vmem:[%s7700_s1 + $0x2c8] sm:$0xf] }
 0x19d   : > { %v2463_v46 = vadd.f32 %v2462_v45, %v2414_v20  ;;  %2513 = vmatmul.bf16.gmra.mxu0 %v5863_v52  ;;  %v2368_v38 = vadd.f32 %v2367_v37, %v2319_v60  ;;  %v2465_v11 = vpop.f32.mrf.mxu3  ;;  %v2369_v29 = vpop.f32.mrf.mxu1  ;;  %v7819_v60 = vld [vmem:[#allocation8_spill] sm:$0xff] }
 0x19e   : > { %2867 = vmatpush.bf16.msra.mxu0 %v3970_v16 }
 0x19f   : > { %3695 = vst [vmem:[%s6354_s24 + $0x160] sm:$0xff] %v2463_v46  ;;  %2611 = vmatmul.bf16.gmra.mxu2 %v7816_v23  ;;  %v7818_v46 = vld [vmem:[#allocation7_spill] sm:$0xff] }
 0x1a2   : > { %v2416_v39 = vpop.f32.mrf.mxu2  ;;  %v2320_v22 = vpop.f32.mrf.mxu0 }
 0x1a3   : > { %v2417_v3 = vadd.f32 %v2416_v39, %v2368_v38  ;;  %v2321_v21 = vadd.f32 %v2320_v22, %v6293_v55  ;;  %v4969_v38 = vld [vmem:[%s7700_s1 + $0x2d4] sm:$0xf0] }
 0x1a4   : > { %v4210_v56 = vor.u32 %v4969_v38, %v4209_v30  ;;  %v5001_v39 = vld [vmem:[%s7700_s1 + $0x3d4] sm:$0xf0] }
 0x1a5   : > { %v2466_v10 = vadd.f32 %v2465_v11, %v2417_v3  ;;  %v2370_v62 = vadd.f32 %v2369_v29, %v2321_v21  ;;  %v2467_v20 = vpop.f32.mrf.mxu3  ;;  %v2372_v47 = vpop.f32.mrf.mxu1  ;;  %v4338_v3 = vor.u32 %v5001_v39, %v4337_v28  ;;  %v7823_v38 = vld [vmem:[#allocation12_spill] sm:$0xff]  ;;  %v3937_v28 = vld [vmem:[%s7700_s1 + $0xa8] sm:$0xf] }
 0x1a6   : > { %2966 = vmatpush.bf16.msra.mxu2 %v4210_v56  ;;  %v4193_v56 = vld [vmem:[%s7700_s1 + $0x2a8] sm:$0xf] }
 0x1a7   : > { %3699 = vst [vmem:[%s6354_s24 + $0x180] sm:$0xff] %v2466_v10  ;;  %3015 = vmatpush.bf16.msra.mxu3 %v4338_v3  ;;  %v4997_v3 = vld [vmem:[%s7700_s1 + $0x3b4] sm:$0xf0] }
 0x1a8   : > { %2567 = vmatmul.bf16.gmra.mxu1 %v7819_v60 }
 0x1a9   : > { %2665 = vmatmul.bf16.gmra.mxu3 %v7821_v17  ;;  %v5069_v17 = vld [vmem:[%s7700_s1 + $0x5f4] sm:$0xf0] }
 0x1aa   : > { %v2418_v61 = vpop.f32.mrf.mxu2  ;;  %v2323_v45 = vpop.f32.mrf.mxu0 }
 0x1ab   : > { %v2419_v36 = vadd.f32 %v2418_v61, %v2370_v62  ;;  %v2324_v55 = vadd.f32 %v2323_v45, %v6317_v1  ;;  %v3953_v1 = vld [vmem:[%s7700_s1 + $0xc8] sm:$0xf]  ;;  %v4082_v62 = vor.u32 %v4937_v19, %v4081_v33 }
 0x1ac   : > { %v3954_v18 = vor.u32 %v4905_v59, %v3953_v1  ;;  %v7824_v1 = vld [vmem:[#allocation13_spill] sm:$0xff]  ;;  %v4965_v59 = vld [vmem:[%s7700_s1 + $0x2b4] sm:$0xf0] }
 0x1ad   : > { %v2468_v37 = vadd.f32 %v2467_v20, %v2419_v36  ;;  %2518 = vmatmul.bf16.gmra.mxu0 %v7818_v46  ;;  %v2373_v32 = vadd.f32 %v2372_v47, %v2324_v55  ;;  %v2470_v22 = vpop.f32.mrf.mxu3  ;;  %v2374_v10 = vpop.f32.mrf.mxu1  ;;  %2917 = vmatpush.bf16.msra.mxu1 %v4082_v62  ;;  %v4194_v39 = vor.u32 %v4965_v59, %v4193_v56 }
 0x1ae   : > { %2868 = vmatpush.bf16.msra.mxu0 %v3954_v18  ;;  %v4321_v18 = vld [vmem:[%s7700_s1 + $0x3a8] sm:$0xf] }
 0x1af   : > { %3703 = vst [vmem:[%s6354_s24 + $0x1a0] sm:$0xff] %v2468_v37  ;;  %2616 = vmatmul.bf16.gmra.mxu2 %v7820_v35 }
 0x1b0   : > { %2967 = vmatpush.bf16.msra.mxu2 %v4194_v39  ;;  %v7827_v39 = vld [vmem:[#allocation16_spill] sm:$0xff] }
 0x1b2   : > { %v2421_v16 = vpop.f32.mrf.mxu2  ;;  %v2325_v29 = vpop.f32.mrf.mxu0 }
 0x1b3   : > { %v2422_v11 = vadd.f32 %v2421_v16, %v2373_v32  ;;  %v2326_v34 = vadd.f32 %v2325_v29, %v6326_v9  ;;  %v7822_v9 = vld [vmem:[#allocation11_spill] sm:$0xff]  ;;  %v7825_v32 = vld [vmem:[#allocation14_spill] sm:$0xff]  ;;  %v4901_v16 = vld [vmem:[%s7700_s1 + $0xb4] sm:$0xf0]  ;;  %v4322_v29 = vor.u32 %v4997_v3, %v4321_v18 }
 0x1b4   : > { %v7829_v18 = vld [vmem:[#allocation18_spill] sm:$0xff] }
 0x1b5   : > { %v2471_v21 = vadd.f32 %v2470_v22, %v2422_v11  ;;  %v2375_v61 = vadd.f32 %v2374_v10, %v2326_v34  ;;  %v2472_v45 = vpop.f32.mrf.mxu3  ;;  %v2533_v37 = vpop.f32.mrf.mxu1  ;;  %v3938_v22 = vor.u32 %v4901_v16, %v3937_v28  ;;  %3016 = vmatpush.bf16.msra.mxu3 %v4322_v29  ;;  %v7826_v28 = vld [vmem:[#allocation15_spill] sm:$0xff]  ;;  %v7828_v16 = vld [vmem:[#allocation17_spill] sm:$0xff]  ;;  %v4177_v3 = vld [vmem:[%s7700_s1 + $0x288] sm:$0xf] }
 0x1b7   : > { %3707 = vst [vmem:[%s6354_s24 + $0x1c0] sm:$0xff] %v2471_v21  ;;  %2869 = vmatpush.bf16.msra.mxu0 %v3938_v22  ;;  %v3921_v22 = vld [vmem:[%s7700_s1 + $0x88] sm:$0xf] }
 0x1b8   : > { %2728 = vmatmul.bf16.vlgmr.msrb.gmra.mxu1 %v7823_v38  ;;  %v4913_v38 = vld [vmem:[%s7700_s1 + $0x114] sm:$0xf0] }
 0x1b9   : > { %2826 = vmatmul.bf16.vlgmr.msrb.gmra.mxu3 %v7825_v32  ;;  %v4917_v32 = vld [vmem:[%s7700_s1 + $0x134] sm:$0xf0] }
 0x1ba   : > { %v2423_v36 = vpop.f32.mrf.mxu2  ;;  %v2484_v47 = vpop.f32.mrf.mxu0 }
 0x1bb   : > { %v2424_v20 = vadd.f32 %v2423_v36, %v2375_v61  ;;  %v2534_v30 = vadd.f32 %v2533_v37, %v2484_v47  ;;  %v4065_v61 = vld [vmem:[%s7700_s1 + $0x1a8] sm:$0xf]  ;;  %v4933_v36 = vld [vmem:[%s7700_s1 + $0x1b4] sm:$0xf0] }
 0x1bd   : > { %v2473_v55 = vadd.f32 %v2472_v45, %v2424_v20  ;;  %2679 = vmatmul.bf16.vlgmr.msrb.gmra.mxu0 %v7822_v9  ;;  %v2631_v21 = vpop.f32.mrf.mxu3  ;;  %v2535_v33 = vpop.f32.mrf.mxu1  ;;  %v4066_v20 = vor.u32 %v4933_v36, %v4065_v61  ;;  %v4609_v9 = vld [vmem:[%s7700_s1 + $0x5e8] sm:$0xf] }
 0x1bf   : > { %3711 = vst [vmem:[%s6354_s24 + $0x1e0] sm:$0xff] %v2473_v55  ;;  %2777 = vmatmul.bf16.vlgmr.msrb.gmra.mxu2 %v7824_v1  ;;  %2918 = vmatpush.bf16.msra.mxu1 %v4066_v20  ;;  %v3985_v1 = vld [vmem:[%s7700_s1 + $0x108] sm:$0xf] }
 0x1c2   : > { %v2582_v11 = vpop.f32.mrf.mxu2  ;;  %v2486_v34 = vpop.f32.mrf.mxu0 }
 0x1c3   : > { %v2583_v10 = vadd.f32 %v2582_v11, %v2534_v30  ;;  %v2536_v62 = vadd.f32 %v2535_v33, %v2486_v34  ;;  %v4961_v11 = vld [vmem:[%s7700_s1 + $0x294] sm:$0xf0] }
 0x1c4   : > { %v4178_v29 = vor.u32 %v4961_v11, %v4177_v3  ;;  %v4993_v34 = vld [vmem:[%s7700_s1 + $0x394] sm:$0xf0] }
 0x1c5   : > { %v6610_v19 = vadd.f32 %v2631_v21, %v2583_v10  ;;  %v2633_v37 = vpop.f32.mrf.mxu3  ;;  %v2538_v30 = vpop.f32.mrf.mxu1  ;;  %v4897_v10 = vld [vmem:[%s7700_s1 + $0x94] sm:$0xf0]  ;;  %v4305_v21 = vld [vmem:[%s7700_s1 + $0x388] sm:$0xf] }
 0x1c6   : > { %v4306_v61 = vor.u32 %v4993_v34, %v4305_v21  ;;  %2968 = vmatpush.bf16.msra.mxu2 %v4178_v29  ;;  %v4929_v3 = vld [vmem:[%s7700_s1 + $0x194] sm:$0xf0] }
 0x1c8   : > { %2733 = vmatmul.bf16.gmra.mxu1 %v7827_v39  ;;  %3017 = vmatpush.bf16.msra.mxu3 %v4306_v61  ;;  %v7831_v61 = vld [vmem:[#allocation20_spill] sm:$0xff] }
 0x1c9   : > { %2831 = vmatmul.bf16.gmra.mxu3 %v7829_v18  ;;  %v4925_v18 = vld [vmem:[%s7700_s1 + $0x174] sm:$0xf0] }
 0x1ca   : > { %v2584_v45 = vpop.f32.mrf.mxu2  ;;  %v2489_v55 = vpop.f32.mrf.mxu0  ;;  %v4921_v39 = vld [vmem:[%s7700_s1 + $0x154] sm:$0xf0] }
 0x1cb   : > { %v2585_v47 = vadd.f32 %v2584_v45, %v2536_v62  ;;  %v2539_v59 = vadd.f32 %v2538_v30, %v2489_v55  ;;  %v3922_v62 = vor.u32 %v4897_v10, %v3921_v22  ;;  %v4049_v30 = vld [vmem:[%s7700_s1 + $0x188] sm:$0xf] }
 0x1cc   : > { %v4050_v11 = vor.u32 %v4929_v3, %v4049_v30  ;;  %v4893_v3 = vld [vmem:[%s7700_s1 + $0x74] sm:$0xf0] }
 0x1cd   : > { %v6618_v56 = vadd.f32 %v2633_v37, %v2585_v47  ;;  %2684 = vmatmul.bf16.gmra.mxu0 %v7826_v28  ;;  %v2636_v20 = vpop.f32.mrf.mxu3  ;;  %v2540_v47 = vpop.f32.mrf.mxu1  ;;  %v4001_v28 = vld [vmem:[%s7700_s1 + $0x128] sm:$0xf] }
 0x1ce   : > { %2870 = vmatpush.bf16.msra.mxu0 %v3922_v62  ;;  %2919 = vmatpush.bf16.msra.mxu1 %v4050_v11  ;;  %v7830_v62 = vld [vmem:[#allocation19_spill] sm:$0xff]  ;;  %v4289_v11 = vld [vmem:[%s7700_s1 + $0x368] sm:$0xf] }
 0x1cf   : > { %2782 = vmatmul.bf16.gmra.mxu2 %v7828_v16  ;;  %v4017_v16 = vld [vmem:[%s7700_s1 + $0x148] sm:$0xf] }
 0x1d2   : > { %v2587_v33 = vpop.f32.mrf.mxu2  ;;  %v2491_v45 = vpop.f32.mrf.mxu0 }
 0x1d3   : > { %v2588_v36 = vadd.f32 %v2587_v33, %v2539_v59  ;;  %v2541_v55 = vadd.f32 %v2540_v47, %v2491_v45  ;;  %v4161_v45 = vld [vmem:[%s7700_s1 + $0x268] sm:$0xf]  ;;  %v4957_v47 = vld [vmem:[%s7700_s1 + $0x274] sm:$0xf0] }
 0x1d4   : > { %v4162_v30 = vor.u32 %v4957_v47, %v4161_v45 }
 0x1d5   : > { %v6642_v37 = vadd.f32 %v2636_v20, %v2588_v36  ;;  %v2638_v10 = vpop.f32.mrf.mxu3  ;;  %v2543_v21 = vpop.f32.mrf.mxu1  ;;  %v7832_v36 = vld [vmem:[#allocation21_spill] sm:$0xff]  ;;  %v7833_v20 = vld [vmem:[#allocation22_spill] sm:$0xff] }
 0x1d6   : > { %2969 = vmatpush.bf16.msra.mxu2 %v4162_v30 }
 0x1d8   : > { %2738 = vmatmul.bf16.gmra.mxu1 %v7831_v61 }
 0x1d9   : > { %2836 = vmatmul.bf16.gmra.mxu3 %v7833_v20 }
 0x1da   : > { %v2589_v59 = vpop.f32.mrf.mxu2  ;;  %v2494_v29 = vpop.f32.mrf.mxu0 }
 0x1db   : > { %v2590_v22 = vadd.f32 %v2589_v59, %v2541_v55  ;;  %v2544_v33 = vadd.f32 %v2543_v21, %v2494_v29  ;;  %v3905_v55 = vld [vmem:[%s7700_s1 + $0x68] sm:$0xf]  ;;  %v4989_v59 = vld [vmem:[%s7700_s1 + $0x374] sm:$0xf0] }
 0x1dc   : > { %v4290_v29 = vor.u32 %v4989_v59, %v4289_v11 }
 0x1dd   : > { %v6650_v34 = vadd.f32 %v2638_v10, %v2590_v22  ;;  %2689 = vmatmul.bf16.gmra.mxu0 %v7830_v62  ;;  %v3906_v10 = vor.u32 %v4893_v3, %v3905_v55  ;;  %v2641_v20 = vpop.f32.mrf.mxu3  ;;  %v2545_v45 = vpop.f32.mrf.mxu1  ;;  %v4033_v62 = vld [vmem:[%s7700_s1 + $0x168] sm:$0xf] }
 0x1de   : > { %3018 = vmatpush.bf16.msra.mxu3 %v4290_v29  ;;  %v4034_v55 = vor.u32 %v4925_v18, %v4033_v62  ;;  %v7836_v29 = vld [vmem:[#allocation25_spill] sm:$0xff]  ;;  %v4145_v18 = vld [vmem:[%s7700_s1 + $0x248] sm:$0xf]  ;;  %v4953_v62 = vld [vmem:[%s7700_s1 + $0x254] sm:$0xf0] }
 0x1df   : > { %2787 = vmatmul.bf16.gmra.mxu2 %v7832_v36  ;;  %2871 = vmatpush.bf16.msra.mxu0 %v3906_v10  ;;  %v7834_v10 = vld [vmem:[#allocation23_spill] sm:$0xff] }
 0x1e0   : > { %2920 = vmatpush.bf16.msra.mxu1 %v4034_v55  ;;  %v4889_v55 = vld [vmem:[%s7700_s1 + $0x54] sm:$0xf0] }
 0x1e2   : > { %v2592_v22 = vpop.f32.mrf.mxu2  ;;  %v2496_v36 = vpop.f32.mrf.mxu0 }
 0x1e3   : > { %v2593_v21 = vadd.f32 %v2592_v22, %v2544_v33  ;;  %v2546_v61 = vadd.f32 %v2545_v45, %v2496_v36  ;;  %v7835_v36 = vld [vmem:[#allocation24_spill] sm:$0xff]  ;;  %v4146_v45 = vor.u32 %v4953_v62, %v4145_v18 }
 0x1e5   : > { %v6674_v47 = vadd.f32 %v2641_v20, %v2593_v21  ;;  %v2643_v11 = vpop.f32.mrf.mxu3  ;;  %v2548_v59 = vpop.f32.mrf.mxu1  ;;  %v7837_v21 = vld [vmem:[#allocation26_spill] sm:$0xff]  ;;  %2970 = vmatpush.bf16.msra.mxu2 %v4146_v45 }
 0x1e8   : > { %2743 = vmatmul.bf16.gmra.mxu1 %v7835_v36 }
 0x1e9   : > { %2841 = vmatmul.bf16.gmra.mxu3 %v7837_v21 }
 0x1ea   : > { %v2594_v33 = vpop.f32.mrf.mxu2  ;;  %v2499_v30 = vpop.f32.mrf.mxu0 }
 0x1eb   : > { %v2595_v3 = vadd.f32 %v2594_v33, %v2546_v61  ;;  %v2549_v20 = vadd.f32 %v2548_v59, %v2499_v30  ;;  %v3889_v61 = vld [vmem:[%s7700_s1 + $0x48] sm:$0xf] }
 0x1ec   : > { %v4273_v33 = vld [vmem:[%s7700_s1 + $0x348] sm:$0xf]  ;;  %v3890_v30 = vor.u32 %v4889_v55, %v3889_v61  ;;  %v4018_v61 = vor.u32 %v4921_v39, %v4017_v16  ;;  %v4949_v16 = vld [vmem:[%s7700_s1 + $0x234] sm:$0xf0] }
 0x1ed   : > { %v6682_v22 = vadd.f32 %v2643_v11, %v2595_v3  ;;  %2694 = vmatmul.bf16.gmra.mxu0 %v7834_v10  ;;  %v4985_v3 = vld [vmem:[%s7700_s1 + $0x354] sm:$0xf0]  ;;  %v2550_v18 = vpop.f32.mrf.mxu1  ;;  %v4129_v39 = vld [vmem:[%s7700_s1 + $0x228] sm:$0xf] }
 0x1ee   : > { %v4274_v59 = vor.u32 %v4985_v3, %v4273_v33  ;;  %2872 = vmatpush.bf16.msra.mxu0 %v3890_v30  ;;  %2921 = vmatpush.bf16.msra.mxu1 %v4018_v61  ;;  %v7840_v30 = vld [vmem:[#allocation29_spill] sm:$0xff]  ;;  %v4885_v61 = vld [vmem:[%s7700_s1 + $0x34] sm:$0xf0] }
 0x1ef   : > { %2792 = vmatmul.bf16.gmra.mxu2 %v7836_v29  ;;  %v2646_v29 = vpop.f32.mrf.mxu3 }
 0x1f0   : > { %3019 = vmatpush.bf16.msra.mxu3 %v4274_v59  ;;  %v7841_v59 = vld [vmem:[#allocation30_spill] sm:$0xff] }
 0x1f2   : > { %v2597_v11 = vpop.f32.mrf.mxu2  ;;  %v2501_v36 = vpop.f32.mrf.mxu0 }
 0x1f3   : > { %v2598_v21 = vadd.f32 %v2597_v11, %v2549_v20  ;;  %v2551_v10 = vadd.f32 %v2550_v18, %v2501_v36  ;;  %v7839_v36 = vld [vmem:[#allocation28_spill] sm:$0xff]  ;;  %v4130_v18 = vor.u32 %v4949_v16, %v4129_v39 }
 0x1f5   : > { %v6706_v62 = vadd.f32 %v2646_v29, %v2598_v21  ;;  %v2553_v3 = vpop.f32.mrf.mxu1  ;;  %v7838_v21 = vld [vmem:[#allocation27_spill] sm:$0xff]  ;;  %2971 = vmatpush.bf16.msra.mxu2 %v4130_v18 }
 0x1f7   : > { %v2648_v33 = vpop.f32.mrf.mxu3 }
 0x1f8   : > { %2748 = vmatmul.bf16.gmra.mxu1 %v7839_v36 }
 0x1f9   : > { %2846 = vmatmul.bf16.gmra.mxu3 %v7841_v59 }
 0x1fa   : > { %v2599_v20 = vpop.f32.mrf.mxu2  ;;  %v2504_v45 = vpop.f32.mrf.mxu0 }
 0x1fb   : > { %v2600_v55 = vadd.f32 %v2599_v20, %v2551_v10  ;;  %v2554_v29 = vadd.f32 %v2553_v3, %v2504_v45  ;;  %v3873_v10 = vld [vmem:[%s7700_s1 + $0x28] sm:$0xf] }
 0x1fc   : > { %v4257_v20 = vld [vmem:[%s7700_s1 + $0x328] sm:$0xf]  ;;  %v3874_v45 = vor.u32 %v4885_v61, %v3873_v10  ;;  %v4002_v10 = vor.u32 %v4917_v32, %v4001_v28  ;;  %v4945_v28 = vld [vmem:[%s7700_s1 + $0x214] sm:$0xf0] }
 0x1fd   : > { %v6714_v11 = vadd.f32 %v2648_v33, %v2600_v55  ;;  %2699 = vmatmul.bf16.gmra.mxu0 %v7838_v21  ;;  %v4981_v55 = vld [vmem:[%s7700_s1 + $0x334] sm:$0xf0]  ;;  %v2555_v39 = vpop.f32.mrf.mxu1  ;;  %v4113_v32 = vld [vmem:[%s7700_s1 + $0x208] sm:$0xf] }
 0x1fe   : > { %v4258_v3 = vor.u32 %v4981_v55, %v4257_v20  ;;  %2873 = vmatpush.bf16.msra.mxu0 %v3874_v45  ;;  %2922 = vmatpush.bf16.msra.mxu1 %v4002_v10  ;;  %v7844_v45 = vld [vmem:[#allocation33_spill] sm:$0xff]  ;;  %v4881_v10 = vld [vmem:[%s7700_s1 + $0x14] sm:$0xf0] }
 0x1ff   : > { %2797 = vmatmul.bf16.gmra.mxu2 %v7840_v30  ;;  %v2651_v30 = vpop.f32.mrf.mxu3 }
 0x200   : > { %3020 = vmatpush.bf16.msra.mxu3 %v4258_v3  ;;  %v7845_v3 = vld [vmem:[#allocation34_spill] sm:$0xff] }
 0x202   : > { %v2602_v33 = vpop.f32.mrf.mxu2  ;;  %v2506_v36 = vpop.f32.mrf.mxu0 }
 0x203   : > { %v2603_v59 = vadd.f32 %v2602_v33, %v2554_v29  ;;  %v2556_v21 = vadd.f32 %v2555_v39, %v2506_v36  ;;  %v7843_v36 = vld [vmem:[#allocation32_spill] sm:$0xff]  ;;  %v4114_v39 = vor.u32 %v4945_v28, %v4113_v32 }
 0x205   : > { %v6738_v16 = vadd.f32 %v2651_v30, %v2603_v59  ;;  %v2558_v55 = vpop.f32.mrf.mxu1  ;;  %v7842_v59 = vld [vmem:[#allocation31_spill] sm:$0xff]  ;;  %2972 = vmatpush.bf16.msra.mxu2 %v4114_v39 }
 0x207   : > { %v2653_v20 = vpop.f32.mrf.mxu3 }
 0x208   : > { %2753 = vmatmul.bf16.gmra.mxu1 %v7843_v36 }
 0x209   : > { %2851 = vmatmul.bf16.gmra.mxu3 %v7845_v3 }
 0x20a   : > { %v2604_v29 = vpop.f32.mrf.mxu2  ;;  %v2509_v18 = vpop.f32.mrf.mxu0 }
 0x20b   : > { %v2605_v61 = vadd.f32 %v2604_v29, %v2556_v21  ;;  %v2559_v30 = vadd.f32 %v2558_v55, %v2509_v18  ;;  %v3857_v21 = vld [vmem:[%s7700_s1 + $0x8] sm:$0xf] }
 0x20c   : > { %v4241_v29 = vld [vmem:[%s7700_s1 + $0x308] sm:$0xf]  ;;  %v3858_v18 = vor.u32 %v4881_v10, %v3857_v21  ;;  %v3986_v21 = vor.u32 %v4913_v38, %v3985_v1  ;;  %v5101_v1 = vld [vmem:[%s7700_s1 + $0x6f4] sm:$0xf0] }
 0x20d   : > { %v6746_v33 = vadd.f32 %v2653_v20, %v2605_v61  ;;  %2704 = vmatmul.bf16.gmra.mxu0 %v7842_v59  ;;  %v4977_v61 = vld [vmem:[%s7700_s1 + $0x314] sm:$0xf0]  ;;  %v2560_v32 = vpop.f32.mrf.mxu1  ;;  %v4737_v38 = vld [vmem:[%s7700_s1 + $0x6e8] sm:$0xf] }
 0x20e   : > { %v4242_v55 = vor.u32 %v4977_v61, %v4241_v29  ;;  %2874 = vmatpush.bf16.msra.mxu0 %v3858_v18  ;;  %2923 = vmatpush.bf16.msra.mxu1 %v3986_v21  ;;  %v7848_v18 = vld [vmem:[#allocation37_spill] sm:$0xff]  ;;  %v5037_v21 = vld [vmem:[%s7700_s1 + $0x4f4] sm:$0xf0] }
 0x20f   : > { %2802 = vmatmul.bf16.gmra.mxu2 %v7844_v45  ;;  %v2656_v45 = vpop.f32.mrf.mxu3 }
 0x210   : > { %3021 = vmatpush.bf16.msra.mxu3 %v4242_v55  ;;  %v7849_v55 = vld [vmem:[#allocation38_spill] sm:$0xff] }
 0x212   : > { %v2607_v20 = vpop.f32.mrf.mxu2  ;;  %v2511_v36 = vpop.f32.mrf.mxu0 }
 0x213   : > { %v2608_v3 = vadd.f32 %v2607_v20, %v2559_v30  ;;  %v2561_v59 = vadd.f32 %v2560_v32, %v2511_v36  ;;  %v7847_v36 = vld [vmem:[#allocation36_spill] sm:$0xff]  ;;  %v4738_v32 = vor.u32 %v5101_v1, %v4737_v38 }
 0x215   : > { %v6770_v28 = vadd.f32 %v2656_v45, %v2608_v3  ;;  %v2563_v61 = vpop.f32.mrf.mxu1  ;;  %v7846_v3 = vld [vmem:[#allocation35_spill] sm:$0xff]  ;;  %3161 = vmatpush.bf16.msrb.mxu2 %v4738_v32 }
 0x217   : > { %v2658_v29 = vpop.f32.mrf.mxu3 }
 0x218   : > { %2758 = vmatmul.bf16.gmra.mxu1 %v7847_v36 }
 0x219   : > { %2856 = vmatmul.bf16.gmra.mxu3 %v7849_v55 }
 0x21a   : > { %v2609_v30 = vpop.f32.mrf.mxu2  ;;  %v2514_v39 = vpop.f32.mrf.mxu0 }
 0x21b   : > { %v2610_v10 = vadd.f32 %v2609_v30, %v2561_v59  ;;  %v2564_v45 = vadd.f32 %v2563_v61, %v2514_v39  ;;  %v4481_v59 = vld [vmem:[%s7700_s1 + $0x4e8] sm:$0xf] }
 0x21c   : > { %v4865_v30 = vld [vmem:[%s7700_s1 + $0x7e8] sm:$0xf]  ;;  %v4482_v39 = vor.u32 %v5037_v21, %v4481_v59  ;;  %v4610_v59 = vor.u32 %v5069_v17, %v4609_v9  ;;  %v5097_v9 = vld [vmem:[%s7700_s1 + $0x6d4] sm:$0xf0] }
 0x21d   : > { %v6778_v20 = vadd.f32 %v2658_v29, %v2610_v10  ;;  %2709 = vmatmul.bf16.gmra.mxu0 %v7846_v3  ;;  %v5133_v10 = vld [vmem:[%s7700_s1 + $0x7f4] sm:$0xf0]  ;;  %v2565_v38 = vpop.f32.mrf.mxu1  ;;  %v4721_v17 = vld [vmem:[%s7700_s1 + $0x6c8] sm:$0xf] }
 0x21e   : > { %v4866_v61 = vor.u32 %v5133_v10, %v4865_v30  ;;  %3063 = vmatpush.bf16.msrb.mxu0 %v4482_v39  ;;  %3112 = vmatpush.bf16.msrb.mxu1 %v4610_v59  ;;  %v4849_v39 = vld [vmem:[%s7700_s1 + $0x7c8] sm:$0xf] }
 0x21f   : > { %2807 = vmatmul.bf16.gmra.mxu2 %v7848_v18  ;;  %v2661_v18 = vpop.f32.mrf.mxu3 }
 0x220   : > { %3210 = vmatpush.bf16.msrb.mxu3 %v4866_v61  ;;  %v5129_v61 = vld [vmem:[%s7700_s1 + $0x7d4] sm:$0xf0] }
 0x222   : > { %v2612_v29 = vpop.f32.mrf.mxu2  ;;  %v2516_v36 = vpop.f32.mrf.mxu0 }
 0x223   : > { %v2613_v55 = vadd.f32 %v2612_v29, %v2564_v45  ;;  %v2566_v3 = vadd.f32 %v2565_v38, %v2516_v36  ;;  %v4722_v36 = vor.u32 %v5097_v9, %v4721_v17 }
 0x225   : > { %v6802_v1 = vadd.f32 %v2661_v18, %v2613_v55  ;;  %v2568_v10 = vpop.f32.mrf.mxu1  ;;  %v5033_v55 = vld [vmem:[%s7700_s1 + $0x4d4] sm:$0xf0]  ;;  %3162 = vmatpush.bf16.msrb.mxu2 %v4722_v36 }
 0x227   : > { %v2663_v30 = vpop.f32.mrf.mxu3 }
 0x228   : > { %2763 = vmatmul.bf16.gmra.mxu1 %v6287_v31 }
 0x229   : > { %2861 = vmatmul.bf16.gmra.mxu3 %v6291_v54  ;;  %v4593_v54 = vld [vmem:[%s7700_s1 + $0x5c8] sm:$0xf] }
 0x22a   : > { %v2614_v21 = vpop.f32.mrf.mxu2  ;;  %v2519_v32 = vpop.f32.mrf.mxu0 }
 0x22b   : > { %v2615_v45 = vadd.f32 %v2614_v21, %v2566_v3  ;;  %v2569_v18 = vadd.f32 %v2568_v10, %v2519_v32  ;;  %v4465_v3 = vld [vmem:[%s7700_s1 + $0x4c8] sm:$0xf]  ;;  %v4850_v21 = vor.u32 %v5129_v61, %v4849_v39 }
 0x22c   : > { %v4466_v59 = vor.u32 %v5033_v55, %v4465_v3 }
 0x22d   : > { %v6810_v29 = vadd.f32 %v2663_v30, %v2615_v45  ;;  %2714 = vmatmul.bf16.gmra.mxu0 %v6285_v44  ;;  %v2570_v10 = vpop.f32.mrf.mxu1  ;;  %3211 = vmatpush.bf16.msrb.mxu3 %v4850_v21 }
 0x22e   : > { %3064 = vmatpush.bf16.msrb.mxu0 %v4466_v59 }
 0x22f   : > { %2812 = vmatmul.bf16.gmra.mxu2 %v6289_v57  ;;  %v2666_v30 = vpop.f32.mrf.mxu3  ;;  %v5065_v57 = vld [vmem:[%s7700_s1 + $0x5d4] sm:$0xf0] }
 0x230   : > { %v4594_v3 = vor.u32 %v5065_v57, %v4593_v54  ;;  %v4705_v54 = vld [vmem:[%s7700_s1 + $0x6a8] sm:$0xf]  ;;  %v5093_v57 = vld [vmem:[%s7700_s1 + $0x6b4] sm:$0xf0] }
 0x232   : > { %v2617_v38 = vpop.f32.mrf.mxu2  ;;  %v2521_v32 = vpop.f32.mrf.mxu0  ;;  %3113 = vmatpush.bf16.msrb.mxu1 %v4594_v3 }
 0x233   : > { %v2618_v45 = vadd.f32 %v2617_v38, %v2569_v18  ;;  %v2571_v9 = vadd.f32 %v2570_v10, %v2521_v32  ;;  %v4833_v32 = vld [vmem:[%s7700_s1 + $0x7a8] sm:$0xf]  ;;  %v5125_v10 = vld [vmem:[%s7700_s1 + $0x7b4] sm:$0xf0] }
 0x235   : > { %v6834_v17 = vadd.f32 %v2666_v30, %v2618_v45  ;;  %v2729_v61 = vpop.f32.mrf.mxu1  ;;  %v4706_v45 = vor.u32 %v5093_v57, %v4705_v54  ;;  %v5029_v30 = vld [vmem:[%s7700_s1 + $0x4b4] sm:$0xf0]  ;;  %v4577_v57 = vld [vmem:[%s7700_s1 + $0x5a8] sm:$0xf] }
 0x237   : > { %v2668_v39 = vpop.f32.mrf.mxu3  ;;  %3163 = vmatpush.bf16.msrb.mxu2 %v4706_v45 }
 0x238   : > { %2924 = vmatmul.bf16.vlgmr.msra.gmra.mxu1 %v5589_v63 }
 0x239   : > { %3022 = vmatmul.bf16.vlgmr.msra.gmra.mxu3 %v5593_v2 }
 0x23a   : > { %v2619_v55 = vpop.f32.mrf.mxu2  ;;  %v2680_v36 = vpop.f32.mrf.mxu0 }
 0x23b   : > { %v2620_v18 = vadd.f32 %v2619_v55, %v2571_v9  ;;  %v2681_v59 = vadd.f32 %v2680_v36, %v6610_v19  ;;  %v4449_v19 = vld [vmem:[%s7700_s1 + $0x4a8] sm:$0xf]  ;;  %v4834_v55 = vor.u32 %v5125_v10, %v4833_v32 }
 0x23c   : > { %v4450_v3 = vor.u32 %v5029_v30, %v4449_v19  ;;  %v5061_v19 = vld [vmem:[%s7700_s1 + $0x5b4] sm:$0xf0] }
 0x23d   : > { %v6842_v38 = vadd.f32 %v2668_v39, %v2620_v18  ;;  %2875 = vmatmul.bf16.vlgmr.msra.gmra.mxu0 %v5581_v58  ;;  %v2730_v21 = vadd.f32 %v2729_v61, %v2681_v59  ;;  %v2731_v61 = vpop.f32.mrf.mxu1  ;;  %3212 = vmatpush.bf16.msrb.mxu3 %v4834_v55 }
 0x23e   : > { %3065 = vmatpush.bf16.msrb.mxu0 %v4450_v3 }
 0x23f   : > { %2973 = vmatmul.bf16.vlgmr.msra.gmra.mxu2 %v5591_v0  ;;  %v2827_v39 = vpop.f32.mrf.mxu3 }
 0x242   : > { %v2778_v9 = vpop.f32.mrf.mxu2  ;;  %v2682_v36 = vpop.f32.mrf.mxu0 }
 0x243   : > { %v2779_v18 = vadd.f32 %v2778_v9, %v2730_v21  ;;  %v2683_v54 = vadd.f32 %v2682_v36, %v6618_v56  ;;  %v4578_v21 = vor.u32 %v5061_v19, %v4577_v57  ;;  %v5121_v57 = vld [vmem:[%s7700_s1 + $0x794] sm:$0xf0] }
 0x245   : > { %v2828_v59 = vadd.f32 %v2827_v39, %v2779_v18  ;;  %v2732_v30 = vadd.f32 %v2731_v61, %v2683_v54  ;;  %3114 = vmatpush.bf16.msrb.mxu1 %v4578_v21  ;;  %v2734_v3 = vpop.f32.mrf.mxu1  ;;  %v4689_v18 = vld [vmem:[%s7700_s1 + $0x688] sm:$0xf]  ;;  %v5089_v39 = vld [vmem:[%s7700_s1 + $0x694] sm:$0xf0] }
 0x246   : > { %v4690_v61 = vor.u32 %v5089_v39, %v4689_v18  ;;  %v4817_v54 = vld [vmem:[%s7700_s1 + $0x788] sm:$0xf]  ;;  %v5057_v18 = vld [vmem:[%s7700_s1 + $0x594] sm:$0xf0] }
 0x247   : > { %3652 = vst [vmem:[%s6354_s24 + $0x8] sm:$0xff] %v2828_v59  ;;  %v2829_v10 = vpop.f32.mrf.mxu3  ;;  %v5025_v59 = vld [vmem:[%s7700_s1 + $0x494] sm:$0xf0] }
 0x248   : > { %2929 = vmatmul.bf16.gmra.mxu1 %v5645_v41  ;;  %3164 = vmatpush.bf16.msrb.mxu2 %v4690_v61 }
 0x249   : > { %3027 = vmatmul.bf16.gmra.mxu3 %v5649_v43 }
 0x24a   : > { %v2780_v32 = vpop.f32.mrf.mxu2  ;;  %v2685_v9 = vpop.f32.mrf.mxu0 }
 0x24b   : > { %v2781_v45 = vadd.f32 %v2780_v32, %v2732_v30  ;;  %v2686_v56 = vadd.f32 %v2685_v9, %v6642_v37  ;;  %v4433_v37 = vld [vmem:[%s7700_s1 + $0x488] sm:$0xf]  ;;  %v4818_v30 = vor.u32 %v5121_v57, %v4817_v54 }
 0x24c   : > { %v4434_v21 = vor.u32 %v5025_v59, %v4433_v37 }
 0x24d   : > { %v2830_v55 = vadd.f32 %v2829_v10, %v2781_v45  ;;  %2880 = vmatmul.bf16.gmra.mxu0 %v5643_v40  ;;  %v2735_v36 = vadd.f32 %v2734_v3, %v2686_v56  ;;  %v2736_v9 = vpop.f32.mrf.mxu1  ;;  %3213 = vmatpush.bf16.msrb.mxu3 %v4818_v30  ;;  %v4561_v56 = vld [vmem:[%s7700_s1 + $0x588] sm:$0xf]  ;;  %v5085_v30 = vld [vmem:[%s7700_s1 + $0x674] sm:$0xf0] }
 0x24e   : > { %3066 = vmatpush.bf16.msrb.mxu0 %v4434_v21  ;;  %v4562_v39 = vor.u32 %v5057_v18, %v4561_v56  ;;  %v4673_v21 = vld [vmem:[%s7700_s1 + $0x668] sm:$0xf] }
 0x24f   : > { %3656 = vst [vmem:[%s6354_s24 + $0x28] sm:$0xff] %v2830_v55  ;;  %2978 = vmatmul.bf16.gmra.mxu2 %v5647_v42  ;;  %v2832_v45 = vpop.f32.mrf.mxu3 }
 0x250   : > { %3115 = vmatpush.bf16.msrb.mxu1 %v4562_v39 }
 0x252   : > { %v2783_v19 = vpop.f32.mrf.mxu2  ;;  %v2687_v10 = vpop.f32.mrf.mxu0 }
 0x253   : > { %v2784_v32 = vadd.f32 %v2783_v19, %v2735_v36  ;;  %v2688_v55 = vadd.f32 %v2687_v10, %v6650_v34  ;;  %v5021_v10 = vld [vmem:[%s7700_s1 + $0x474] sm:$0xf0] }
 0x255   : > { %v2833_v3 = vadd.f32 %v2832_v45, %v2784_v32  ;;  %v2737_v37 = vadd.f32 %v2736_v9, %v2688_v55  ;;  %v2739_v57 = vpop.f32.mrf.mxu1  ;;  %v4674_v45 = vor.u32 %v5085_v30, %v4673_v21  ;;  %v4801_v9 = vld [vmem:[%s7700_s1 + $0x768] sm:$0xf] }
 0x257   : > { %3660 = vst [vmem:[%s6354_s24 + $0x48] sm:$0xff] %v2833_v3  ;;  %v2834_v59 = vpop.f32.mrf.mxu3  ;;  %v5117_v3 = vld [vmem:[%s7700_s1 + $0x774] sm:$0xf0]  ;;  %3165 = vmatpush.bf16.msrb.mxu2 %v4674_v45 }
 0x258   : > { %2934 = vmatmul.bf16.gmra.mxu1 %v5689_v13  ;;  %v4802_v18 = vor.u32 %v5117_v3, %v4801_v9  ;;  %v4657_v3 = vld [vmem:[%s7700_s1 + $0x648] sm:$0xf] }
 0x259   : > { %3032 = vmatmul.bf16.gmra.mxu3 %v5693_v15 }
 0x25a   : > { %v2785_v36 = vpop.f32.mrf.mxu2  ;;  %v2690_v54 = vpop.f32.mrf.mxu0  ;;  %3214 = vmatpush.bf16.msrb.mxu3 %v4802_v18 }
 0x25b   : > { %v2786_v61 = vadd.f32 %v2785_v36, %v2737_v37  ;;  %v2691_v34 = vadd.f32 %v2690_v54, %v6674_v47  ;;  %v4417_v47 = vld [vmem:[%s7700_s1 + $0x468] sm:$0xf] }
 0x25c   : > { %v4418_v56 = vor.u32 %v5021_v10, %v4417_v47 }
 0x25d   : > { %v2835_v19 = vadd.f32 %v2834_v59, %v2786_v61  ;;  %2885 = vmatmul.bf16.gmra.mxu0 %v5687_v12  ;;  %v2740_v32 = vadd.f32 %v2739_v57, %v2691_v34  ;;  %v2741_v61 = vpop.f32.mrf.mxu1  ;;  %v4545_v57 = vld [vmem:[%s7700_s1 + $0x568] sm:$0xf] }
 0x25e   : > { %3067 = vmatpush.bf16.msrb.mxu0 %v4418_v56 }
 0x25f   : > { %3664 = vst [vmem:[%s6354_s24 + $0x68] sm:$0xff] %v2835_v19  ;;  %2983 = vmatmul.bf16.gmra.mxu2 %v5691_v14  ;;  %v2837_v37 = vpop.f32.mrf.mxu3  ;;  %v5053_v19 = vld [vmem:[%s7700_s1 + $0x574] sm:$0xf0] }
 0x260   : > { %v4546_v34 = vor.u32 %v5053_v19, %v4545_v57 }
 0x262   : > { %v2788_v55 = vpop.f32.mrf.mxu2  ;;  %v2692_v36 = vpop.f32.mrf.mxu0  ;;  %3116 = vmatpush.bf16.msrb.mxu1 %v4546_v34 }
 0x263   : > { %v2789_v39 = vadd.f32 %v2788_v55, %v2740_v32  ;;  %v2693_v54 = vadd.f32 %v2692_v36, %v6682_v22  ;;  %v5081_v55 = vld [vmem:[%s7700_s1 + $0x654] sm:$0xf0] }
 0x264   : > { %v4658_v18 = vor.u32 %v5081_v55, %v4657_v3  ;;  %v5113_v36 = vld [vmem:[%s7700_s1 + $0x754] sm:$0xf0] }
 0x265   : > { %v2838_v59 = vadd.f32 %v2837_v37, %v2789_v39  ;;  %v2742_v21 = vadd.f32 %v2741_v61, %v2693_v54  ;;  %v2744_v10 = vpop.f32.mrf.mxu1  ;;  %v5017_v39 = vld [vmem:[%s7700_s1 + $0x454] sm:$0xf0]  ;;  %v4785_v37 = vld [vmem:[%s7700_s1 + $0x748] sm:$0xf] }
 0x266   : > { %v4786_v54 = vor.u32 %v5113_v36, %v4785_v37  ;;  %3166 = vmatpush.bf16.msrb.mxu2 %v4658_v18  ;;  %v5077_v37 = vld [vmem:[%s7700_s1 + $0x634] sm:$0xf0] }
 0x267   : > { %3668 = vst [vmem:[%s6354_s24 + $0x88] sm:$0xff] %v2838_v59  ;;  %v2839_v32 = vpop.f32.mrf.mxu3 }
 0x268   : > { %2939 = vmatmul.bf16.gmra.mxu1 %v5733_v49  ;;  %3215 = vmatpush.bf16.msrb.mxu3 %v4786_v54  ;;  %v4769_v54 = vld [vmem:[%s7700_s1 + $0x728] sm:$0xf] }
 0x269   : > { %3037 = vmatmul.bf16.gmra.mxu3 %v5737_v51 }
 0x26a   : > { %v2790_v30 = vpop.f32.mrf.mxu2  ;;  %v2695_v45 = vpop.f32.mrf.mxu0 }
 0x26b   : > { %v2791_v47 = vadd.f32 %v2790_v30, %v2742_v21  ;;  %v2696_v22 = vadd.f32 %v2695_v45, %v6706_v62  ;;  %v4401_v62 = vld [vmem:[%s7700_s1 + $0x448] sm:$0xf]  ;;  %v5049_v45 = vld [vmem:[%s7700_s1 + $0x554] sm:$0xf0] }
 0x26c   : > { %v4402_v59 = vor.u32 %v5017_v39, %v4401_v62  ;;  %v4641_v39 = vld [vmem:[%s7700_s1 + $0x628] sm:$0xf] }
 0x26d   : > { %v2840_v9 = vadd.f32 %v2839_v32, %v2791_v47  ;;  %2890 = vmatmul.bf16.gmra.mxu0 %v5731_v48  ;;  %v2745_v56 = vadd.f32 %v2744_v10, %v2696_v22  ;;  %v2746_v21 = vpop.f32.mrf.mxu1  ;;  %v4529_v32 = vld [vmem:[%s7700_s1 + $0x548] sm:$0xf] }
 0x26e   : > { %3068 = vmatpush.bf16.msrb.mxu0 %v4402_v59  ;;  %v4530_v10 = vor.u32 %v5049_v45, %v4529_v32  ;;  %v5013_v59 = vld [vmem:[%s7700_s1 + $0x434] sm:$0xf0] }
 0x26f   : > { %3672 = vst [vmem:[%s6354_s24 + $0xa8] sm:$0xff] %v2840_v9  ;;  %2988 = vmatmul.bf16.gmra.mxu2 %v5735_v50  ;;  %v2842_v19 = vpop.f32.mrf.mxu3 }
 0x270   : > { %3117 = vmatpush.bf16.msrb.mxu1 %v4530_v10 }
 0x272   : > { %v2793_v61 = vpop.f32.mrf.mxu2  ;;  %v2697_v34 = vpop.f32.mrf.mxu0 }
 0x273   : > { %v2794_v57 = vadd.f32 %v2793_v61, %v2745_v56  ;;  %v2698_v47 = vadd.f32 %v2697_v34, %v6714_v11  ;;  %v4642_v61 = vor.u32 %v5077_v37, %v4641_v39 }
 0x275   : > { %v2843_v30 = vadd.f32 %v2842_v19, %v2794_v57  ;;  %v2747_v9 = vadd.f32 %v2746_v21, %v2698_v47  ;;  %v2749_v56 = vpop.f32.mrf.mxu1  ;;  %v5109_v57 = vld [vmem:[%s7700_s1 + $0x734] sm:$0xf0]  ;;  %3167 = vmatpush.bf16.msrb.mxu2 %v4642_v61 }
 0x276   : > { %v4770_v21 = vor.u32 %v5109_v57, %v4769_v54  ;;  %v5073_v61 = vld [vmem:[%s7700_s1 + $0x614] sm:$0xf0] }
 0x277   : > { %3676 = vst [vmem:[%s6354_s24 + $0xc8] sm:$0xff] %v2843_v30  ;;  %v2844_v55 = vpop.f32.mrf.mxu3  ;;  %v5009_v57 = vld [vmem:[%s7700_s1 + $0x414] sm:$0xf0] }
 0x278   : > { %2944 = vmatmul.bf16.gmra.mxu1 %v5777_v25  ;;  %3216 = vmatpush.bf16.msrb.mxu3 %v4770_v21 }
 0x279   : > { %3042 = vmatmul.bf16.gmra.mxu3 %v5781_v27 }
 0x27a   : > { %v2795_v22 = vpop.f32.mrf.mxu2  ;;  %v2700_v62 = vpop.f32.mrf.mxu0 }
 0x27b   : > { %v2796_v3 = vadd.f32 %v2795_v22, %v2747_v9  ;;  %v2701_v11 = vadd.f32 %v2700_v62, %v6738_v16  ;;  %v4385_v16 = vld [vmem:[%s7700_s1 + $0x428] sm:$0xf] }
 0x27c   : > { %v4386_v34 = vor.u32 %v5013_v59, %v4385_v16  ;;  %v4513_v22 = vld [vmem:[%s7700_s1 + $0x528] sm:$0xf] }
 0x27d   : > { %v2845_v18 = vadd.f32 %v2844_v55, %v2796_v3  ;;  %2895 = vmatmul.bf16.gmra.mxu0 %v5775_v24  ;;  %v2750_v36 = vadd.f32 %v2749_v56, %v2701_v11  ;;  %v2751_v45 = vpop.f32.mrf.mxu1  ;;  %v5045_v3 = vld [vmem:[%s7700_s1 + $0x534] sm:$0xf0] }
 0x27e   : > { %3069 = vmatpush.bf16.msrb.mxu0 %v4386_v34  ;;  %v4514_v55 = vor.u32 %v5045_v3, %v4513_v22  ;;  %v5105_v34 = vld [vmem:[%s7700_s1 + $0x714] sm:$0xf0] }
 0x27f   : > { %3680 = vst [vmem:[%s6354_s24 + $0xe8] sm:$0xff] %v2845_v18  ;;  %2993 = vmatmul.bf16.gmra.mxu2 %v5779_v26  ;;  %v2847_v47 = vpop.f32.mrf.mxu3 }
 0x280   : > { %3118 = vmatpush.bf16.msrb.mxu1 %v4514_v55  ;;  %v4497_v55 = vld [vmem:[%s7700_s1 + $0x508] sm:$0xf] }
 0x282   : > { %v2798_v19 = vpop.f32.mrf.mxu2  ;;  %v2702_v32 = vpop.f32.mrf.mxu0 }
 0x283   : > { %v2799_v30 = vadd.f32 %v2798_v19, %v2750_v36  ;;  %v2703_v9 = vadd.f32 %v2702_v32, %v6746_v33  ;;  %v4625_v36 = vld [vmem:[%s7700_s1 + $0x608] sm:$0xf] }
 0x284   : > { %v4626_v54 = vor.u32 %v5073_v61, %v4625_v36  ;;  %v4753_v19 = vld [vmem:[%s7700_s1 + $0x708] sm:$0xf]  ;;  %v4971_v61 = vld [vmem:[%s7700_s1 + $0x2ec] sm:$0xf] }
 0x285   : > { %v2848_v10 = vadd.f32 %v2847_v47, %v2799_v30  ;;  %v2752_v62 = vadd.f32 %v2751_v45, %v2703_v9  ;;  %v2754_v37 = vpop.f32.mrf.mxu1  ;;  %v4754_v47 = vor.u32 %v5105_v34, %v4753_v19  ;;  %v5003_v19 = vld [vmem:[%s7700_s1 + $0x3ec] sm:$0xf]  ;;  %v4355_v34 = vld [vmem:[%s7700_s1 + $0x3f8] sm:$0xf0] }
 0x286   : > { %3168 = vmatpush.bf16.msrb.mxu2 %v4626_v54 }
 0x287   : > { %3684 = vst [vmem:[%s6354_s24 + $0x108] sm:$0xff] %v2848_v10  ;;  %v2849_v11 = vpop.f32.mrf.mxu3  ;;  %3217 = vmatpush.bf16.msrb.mxu3 %v4754_v47  ;;  %v4358_v47 = vor.u32 %v5003_v19, %v4355_v34  ;;  %v4339_v19 = vld [vmem:[%s7700_s1 + $0x3d8] sm:$0xf0] }
 0x288   : > { %2949 = vmatmul.bf16.gmra.mxu1 %v5821_v5 }
 0x289   : > { %3047 = vmatmul.bf16.gmra.mxu3 %v5825_v7 }
 0x28a   : > { %v2800_v56 = vpop.f32.mrf.mxu2  ;;  %v2705_v39 = vpop.f32.mrf.mxu0 }
 0x28b   : > { %v2801_v18 = vadd.f32 %v2800_v56, %v2752_v62  ;;  %v2706_v33 = vadd.f32 %v2705_v39, %v6770_v28  ;;  %v4369_v28 = vld [vmem:[%s7700_s1 + $0x408] sm:$0xf]  ;;  %v5041_v62 = vld [vmem:[%s7700_s1 + $0x514] sm:$0xf0]  ;;  %3406 = vmatpush.bf16.msra.mxu3 %v4358_v47 }
 0x28c   : > { %v4370_v30 = vor.u32 %v5009_v57, %v4369_v28  ;;  %v4498_v56 = vor.u32 %v5041_v62, %v4497_v55  ;;  %v4227_v28 = vld [vmem:[%s7700_s1 + $0x2f8] sm:$0xf0]  ;;  %v4939_v55 = vld [vmem:[%s7700_s1 + $0x1ec] sm:$0xf] }
 0x28d   : > { %v2850_v16 = vadd.f32 %v2849_v11, %v2801_v18  ;;  %2900 = vmatmul.bf16.gmra.mxu0 %v5819_v4  ;;  %v2755_v59 = vadd.f32 %v2754_v37, %v2706_v33  ;;  %v2756_v9 = vpop.f32.mrf.mxu1  ;;  %v4230_v54 = vor.u32 %v4971_v61, %v4227_v28  ;;  %v3971_v57 = vld [vmem:[%s7700_s1 + $0xf8] sm:$0xf0]  ;;  %v4967_v61 = vld [vmem:[%s7700_s1 + $0x2cc] sm:$0xf] }
 0x28e   : > { %3070 = vmatpush.bf16.msrb.mxu0 %v4370_v30  ;;  %3119 = vmatpush.bf16.msrb.mxu1 %v4498_v56  ;;  %v4099_v62 = vld [vmem:[%s7700_s1 + $0x1f8] sm:$0xf0] }
 0x28f   : > { %3688 = vst [vmem:[%s6354_s24 + $0x128] sm:$0xff] %v2850_v16  ;;  %2998 = vmatmul.bf16.gmra.mxu2 %v5823_v6  ;;  %v2852_v45 = vpop.f32.mrf.mxu3  ;;  %v4102_v56 = vor.u32 %v4939_v55, %v4099_v62  ;;  %v4211_v28 = vld [vmem:[%s7700_s1 + $0x2d8] sm:$0xf0] }
 0x290   : > { %3357 = vmatpush.bf16.msra.mxu2 %v4230_v54  ;;  %v3955_v54 = vld [vmem:[%s7700_s1 + $0xd8] sm:$0xf0] }
 0x291   : > { %v4083_v55 = vld [vmem:[%s7700_s1 + $0x1d8] sm:$0xf0] }
 0x292   : > { %v2803_v21 = vpop.f32.mrf.mxu2  ;;  %v2707_v10 = vpop.f32.mrf.mxu0  ;;  %3308 = vmatpush.bf16.msra.mxu1 %v4102_v56 }
 0x293   : > { %v2804_v32 = vadd.f32 %v2803_v21, %v2755_v59  ;;  %v2708_v3 = vadd.f32 %v2707_v10, %v6778_v20 }
 0x295   : > { %v2853_v22 = vadd.f32 %v2852_v45, %v2804_v32  ;;  %v2757_v18 = vadd.f32 %v2756_v9, %v2708_v3  ;;  %v2759_v33 = vpop.f32.mrf.mxu1 }
 0x297   : > { %3692 = vst [vmem:[%s6354_s24 + $0x148] sm:$0xff] %v2853_v22  ;;  %v2854_v37 = vpop.f32.mrf.mxu3 }
 0x298   : > { %2954 = vmatmul.bf16.gmra.mxu1 %v5865_v53 }
 0x299   : > { %3052 = vmatmul.bf16.gmra.mxu3 %v7817_v8 }
 0x29a   : > { %v2805_v11 = vpop.f32.mrf.mxu2  ;;  %v2710_v16 = vpop.f32.mrf.mxu0 }
 0x29b   : > { %v2806_v39 = vadd.f32 %v2805_v11, %v2757_v18  ;;  %v2711_v20 = vadd.f32 %v2710_v16, %v6802_v1  ;;  %v4907_v1 = vld [vmem:[%s7700_s1 + $0xec] sm:$0xf] }
 0x29c   : > { %v3974_v30 = vor.u32 %v4907_v1, %v3971_v57  ;;  %v4999_v57 = vld [vmem:[%s7700_s1 + $0x3cc] sm:$0xf] }
 0x29d   : > { %v2855_v36 = vadd.f32 %v2854_v37, %v2806_v39  ;;  %2905 = vmatmul.bf16.gmra.mxu0 %v5863_v52  ;;  %v2760_v59 = vadd.f32 %v2759_v33, %v2711_v20  ;;  %v2761_v9 = vpop.f32.mrf.mxu1  ;;  %v7850_v20 = vld [vmem:[#allocation10_spill] sm:$0xff] }
 0x29e   : > { %3259 = vmatpush.bf16.msra.mxu0 %v3974_v30  ;;  %v4342_v30 = vor.u32 %v4999_v57, %v4339_v19  ;;  %v3939_v57 = vld [vmem:[%s7700_s1 + $0xb8] sm:$0xf0]  ;;  %v4995_v19 = vld [vmem:[%s7700_s1 + $0x3ac] sm:$0xf] }
 0x29f   : > { %3696 = vst [vmem:[%s6354_s24 + $0x168] sm:$0xff] %v2855_v36  ;;  %3003 = vmatmul.bf16.gmra.mxu2 %v7816_v23  ;;  %v2857_v45 = vpop.f32.mrf.mxu3 }
 0x2a0   : > { %3407 = vmatpush.bf16.msra.mxu3 %v4342_v30 }
 0x2a2   : > { %v2808_v21 = vpop.f32.mrf.mxu2  ;;  %v2712_v10 = vpop.f32.mrf.mxu0 }
 0x2a3   : > { %v2809_v32 = vadd.f32 %v2808_v21, %v2760_v59  ;;  %v2713_v3 = vadd.f32 %v2712_v10, %v6810_v29  ;;  %v4214_v59 = vor.u32 %v4967_v61, %v4211_v28  ;;  %v7853_v61 = vld [vmem:[#allocation13_spill] sm:$0xff]  ;;  %v7854_v28 = vld [vmem:[#allocation14_spill] sm:$0xff] }
 0x2a5   : > { %v2858_v22 = vadd.f32 %v2857_v45, %v2809_v32  ;;  %v2762_v18 = vadd.f32 %v2761_v9, %v2713_v3  ;;  %v2764_v33 = vpop.f32.mrf.mxu1  ;;  %3358 = vmatpush.bf16.msra.mxu2 %v4214_v59  ;;  %v4935_v3 = vld [vmem:[%s7700_s1 + $0x1cc] sm:$0xf] }
 0x2a6   : > { %v4086_v62 = vor.u32 %v4935_v3, %v4083_v55  ;;  %v4899_v59 = vld [vmem:[%s7700_s1 + $0xac] sm:$0xf] }
 0x2a7   : > { %3700 = vst [vmem:[%s6354_s24 + $0x188] sm:$0xff] %v2858_v22  ;;  %v2859_v37 = vpop.f32.mrf.mxu3  ;;  %v3942_v30 = vor.u32 %v4899_v59, %v3939_v57  ;;  %v4931_v55 = vld [vmem:[%s7700_s1 + $0x1ac] sm:$0xf]  ;;  %v7857_v59 = vld [vmem:[#allocation17_spill] sm:$0xff] }
 0x2a8   : > { %2959 = vmatmul.bf16.gmra.mxu1 %v7819_v60  ;;  %v4959_v57 = vld [vmem:[%s7700_s1 + $0x28c] sm:$0xf] }
 0x2a9   : > { %3057 = vmatmul.bf16.gmra.mxu3 %v7850_v20  ;;  %3309 = vmatpush.bf16.msra.mxu1 %v4086_v62  ;;  %v4067_v62 = vld [vmem:[%s7700_s1 + $0x1b8] sm:$0xf0] }
 0x2aa   : > { %v2810_v11 = vpop.f32.mrf.mxu2  ;;  %v2715_v16 = vpop.f32.mrf.mxu0 }
 0x2ab   : > { %v2811_v39 = vadd.f32 %v2810_v11, %v2762_v18  ;;  %v2716_v29 = vadd.f32 %v2715_v16, %v6834_v17  ;;  %v4903_v17 = vld [vmem:[%s7700_s1 + $0xcc] sm:$0xf] }
 0x2ac   : > { %v3958_v21 = vor.u32 %v4903_v17, %v3955_v54  ;;  %v4963_v17 = vld [vmem:[%s7700_s1 + $0x2ac] sm:$0xf] }
 0x2ad   : > { %v2860_v36 = vadd.f32 %v2859_v37, %v2811_v39  ;;  %2910 = vmatmul.bf16.gmra.mxu0 %v7818_v46  ;;  %v2765_v1 = vadd.f32 %v2764_v33, %v2716_v29  ;;  %v2766_v10 = vpop.f32.mrf.mxu1  ;;  %v7852_v29 = vld [vmem:[#allocation12_spill] sm:$0xff] }
 0x2ae   : > { %3260 = vmatpush.bf16.msra.mxu0 %v3958_v21 }
 0x2af   : > { %3704 = vst [vmem:[%s6354_s24 + $0x1a8] sm:$0xff] %v2860_v36  ;;  %3008 = vmatmul.bf16.gmra.mxu2 %v7820_v35  ;;  %v2862_v32 = vpop.f32.mrf.mxu3 }
 0x2b2   : > { %v2813_v34 = vpop.f32.mrf.mxu2  ;;  %v2717_v45 = vpop.f32.mrf.mxu0  ;;  %3261 = vmatpush.bf16.msra.mxu0 %v3942_v30  ;;  %v3923_v30 = vld [vmem:[%s7700_s1 + $0x98] sm:$0xf0] }
 0x2b3   : > { %v2814_v47 = vadd.f32 %v2813_v34, %v2765_v1  ;;  %v2718_v22 = vadd.f32 %v2717_v45, %v6842_v38  ;;  %v7851_v38 = vld [vmem:[#allocation11_spill] sm:$0xff]  ;;  %v4195_v1 = vld [vmem:[%s7700_s1 + $0x2b8] sm:$0xf0] }
 0x2b4   : > { %v4198_v54 = vor.u32 %v4963_v17, %v4195_v1  ;;  %v4323_v34 = vld [vmem:[%s7700_s1 + $0x3b8] sm:$0xf0]  ;;  %v7855_v17 = vld [vmem:[#allocation15_spill] sm:$0xff] }
 0x2b5   : > { %v2863_v9 = vadd.f32 %v2862_v32, %v2814_v47  ;;  %v2767_v56 = vadd.f32 %v2766_v10, %v2718_v22  ;;  %v2925_v16 = vpop.f32.mrf.mxu1  ;;  %v4326_v47 = vor.u32 %v4995_v19, %v4323_v34  ;;  %v7856_v1 = vld [vmem:[#allocation16_spill] sm:$0xff]  ;;  %v4895_v34 = vld [vmem:[%s7700_s1 + $0x8c] sm:$0xf] }
 0x2b6   : > { %3359 = vmatpush.bf16.msra.mxu2 %v4198_v54  ;;  %v7858_v54 = vld [vmem:[#allocation18_spill] sm:$0xff]  ;;  %v4179_v19 = vld [vmem:[%s7700_s1 + $0x298] sm:$0xf0] }
 0x2b7   : > { %3708 = vst [vmem:[%s6354_s24 + $0x1c8] sm:$0xff] %v2863_v9  ;;  %v2864_v39 = vpop.f32.mrf.mxu3  ;;  %3408 = vmatpush.bf16.msra.mxu3 %v4326_v47  ;;  %v4991_v47 = vld [vmem:[%s7700_s1 + $0x38c] sm:$0xf] }
 0x2b8   : > { %3120 = vmatmul.bf16.vlgmr.msrb.gmra.mxu1 %v7852_v29  ;;  %v4611_v29 = vld [vmem:[%s7700_s1 + $0x5f8] sm:$0xf0] }
 0x2b9   : > { %3218 = vmatmul.bf16.vlgmr.msrb.gmra.mxu3 %v7854_v28  ;;  %v3987_v28 = vld [vmem:[%s7700_s1 + $0x118] sm:$0xf0] }
 0x2ba   : > { %v2815_v18 = vpop.f32.mrf.mxu2  ;;  %v2876_v37 = vpop.f32.mrf.mxu0 }
 0x2bb   : > { %v2816_v11 = vadd.f32 %v2815_v18, %v2767_v56  ;;  %v2926_v36 = vadd.f32 %v2925_v16, %v2876_v37  ;;  %v4070_v56 = vor.u32 %v4931_v55, %v4067_v62 }
 0x2bd   : > { %v2865_v33 = vadd.f32 %v2864_v39, %v2816_v11  ;;  %3071 = vmatmul.bf16.vlgmr.msrb.gmra.mxu0 %v7851_v38  ;;  %v2927_v9 = vpop.f32.mrf.mxu1  ;;  %3310 = vmatpush.bf16.msra.mxu1 %v4070_v56 }
 0x2bf   : > { %3712 = vst [vmem:[%s6354_s24 + $0x1e8] sm:$0xff] %v2865_v33  ;;  %3169 = vmatmul.bf16.vlgmr.msrb.gmra.mxu2 %v7853_v61  ;;  %v3023_v45 = vpop.f32.mrf.mxu3  ;;  %v5067_v61 = vld [vmem:[%s7700_s1 + $0x5ec] sm:$0xf] }
 0x2c2   : > { %v2974_v21 = vpop.f32.mrf.mxu2  ;;  %v2878_v10 = vpop.f32.mrf.mxu0 }
 0x2c3   : > { %v2975_v32 = vadd.f32 %v2974_v21, %v2926_v36  ;;  %v2928_v3 = vadd.f32 %v2927_v9, %v2878_v10  ;;  %v4182_v21 = vor.u32 %v4959_v57, %v4179_v19  ;;  %v3926_v10 = vor.u32 %v4895_v34, %v3923_v30 }
 0x2c5   : > { %v7122_v22 = vadd.f32 %v3023_v45, %v2975_v32  ;;  %v2930_v16 = vpop.f32.mrf.mxu1  ;;  %v4307_v32 = vld [vmem:[%s7700_s1 + $0x398] sm:$0xf0]  ;;  %3360 = vmatpush.bf16.msra.mxu2 %v4182_v21  ;;  %3262 = vmatpush.bf16.msra.mxu0 %v3926_v10  ;;  %v7861_v10 = vld [vmem:[#allocation21_spill] sm:$0xff] }
 0x2c6   : > { %v4310_v9 = vor.u32 %v4991_v47, %v4307_v32  ;;  %v7859_v32 = vld [vmem:[#allocation19_spill] sm:$0xff] }
 0x2c7   : > { %v3025_v39 = vpop.f32.mrf.mxu3 }
 0x2c8   : > { %3125 = vmatmul.bf16.gmra.mxu1 %v7856_v1  ;;  %3409 = vmatpush.bf16.msra.mxu3 %v4310_v9  ;;  %v7862_v9 = vld [vmem:[#allocation22_spill] sm:$0xff]  ;;  %v4003_v1 = vld [vmem:[%s7700_s1 + $0x138] sm:$0xf0] }
 0x2c9   : > { %3223 = vmatmul.bf16.gmra.mxu3 %v7858_v54  ;;  %v4019_v54 = vld [vmem:[%s7700_s1 + $0x158] sm:$0xf0] }
 0x2ca   : > { %v2976_v18 = vpop.f32.mrf.mxu2  ;;  %v2881_v37 = vpop.f32.mrf.mxu0 }
 0x2cb   : > { %v2977_v11 = vadd.f32 %v2976_v18, %v2928_v3  ;;  %v2931_v36 = vadd.f32 %v2930_v16, %v2881_v37  ;;  %v4051_v37 = vld [vmem:[%s7700_s1 + $0x198] sm:$0xf0] }
 0x2cd   : > { %v7130_v33 = vadd.f32 %v3025_v39, %v2977_v11  ;;  %3076 = vmatmul.bf16.gmra.mxu0 %v7855_v17  ;;  %v2932_v56 = vpop.f32.mrf.mxu1  ;;  %v4927_v39 = vld [vmem:[%s7700_s1 + $0x18c] sm:$0xf] }
 0x2ce   : > { %v4054_v16 = vor.u32 %v4927_v39, %v4051_v37  ;;  %v4987_v39 = vld [vmem:[%s7700_s1 + $0x36c] sm:$0xf]  ;;  %v4291_v37 = vld [vmem:[%s7700_s1 + $0x378] sm:$0xf0] }
 0x2cf   : > { %3174 = vmatmul.bf16.gmra.mxu2 %v7857_v59  ;;  %v3028_v55 = vpop.f32.mrf.mxu3  ;;  %v4915_v59 = vld [vmem:[%s7700_s1 + $0x12c] sm:$0xf] }
 0x2d0   : > { %3311 = vmatpush.bf16.msra.mxu1 %v4054_v16  ;;  %v4911_v17 = vld [vmem:[%s7700_s1 + $0x10c] sm:$0xf] }
 0x2d2   : > { %v2979_v45 = vpop.f32.mrf.mxu2  ;;  %v2883_v62 = vpop.f32.mrf.mxu0 }
 0x2d3   : > { %v2980_v3 = vadd.f32 %v2979_v45, %v2931_v36  ;;  %v2933_v11 = vadd.f32 %v2932_v56, %v2883_v62  ;;  %v7860_v45 = vld [vmem:[#allocation20_spill] sm:$0xff]  ;;  %v4891_v62 = vld [vmem:[%s7700_s1 + $0x6c] sm:$0xf] }
 0x2d5   : > { %v7154_v18 = vadd.f32 %v3028_v55, %v2980_v3  ;;  %v2935_v21 = vpop.f32.mrf.mxu1  ;;  %v4955_v3 = vld [vmem:[%s7700_s1 + $0x26c] sm:$0xf]  ;;  %v4163_v55 = vld [vmem:[%s7700_s1 + $0x278] sm:$0xf0] }
 0x2d6   : > { %v4166_v56 = vor.u32 %v4955_v3, %v4163_v55 }
 0x2d7   : > { %v3030_v19 = vpop.f32.mrf.mxu3 }
 0x2d8   : > { %3130 = vmatmul.bf16.gmra.mxu1 %v7860_v45  ;;  %3361 = vmatpush.bf16.msra.mxu2 %v4166_v56  ;;  %v4035_v45 = vld [vmem:[%s7700_s1 + $0x178] sm:$0xf0] }
 0x2d9   : > { %3228 = vmatmul.bf16.gmra.mxu3 %v7862_v9 }
 0x2da   : > { %v2981_v36 = vpop.f32.mrf.mxu2  ;;  %v2886_v34 = vpop.f32.mrf.mxu0 }
 0x2db   : > { %v2982_v57 = vadd.f32 %v2981_v36, %v2933_v11  ;;  %v2936_v47 = vadd.f32 %v2935_v21, %v2886_v34  ;;  %v3907_v11 = vld [vmem:[%s7700_s1 + $0x78] sm:$0xf0] }
 0x2dc   : > { %v3910_v36 = vor.u32 %v4891_v62, %v3907_v11 }
 0x2dd   : > { %v7162_v30 = vadd.f32 %v3030_v19, %v2982_v57  ;;  %3081 = vmatmul.bf16.gmra.mxu0 %v7859_v32  ;;  %v4294_v57 = vor.u32 %v4987_v39, %v4291_v37  ;;  %v2937_v3 = vpop.f32.mrf.mxu1  ;;  %v4919_v32 = vld [vmem:[%s7700_s1 + $0x14c] sm:$0xf] }
 0x2de   : > { %3263 = vmatpush.bf16.msra.mxu0 %v3910_v36 }
 0x2df   : > { %3179 = vmatmul.bf16.gmra.mxu2 %v7861_v10  ;;  %v3033_v34 = vpop.f32.mrf.mxu3  ;;  %3410 = vmatpush.bf16.msra.mxu3 %v4294_v57  ;;  %v4923_v10 = vld [vmem:[%s7700_s1 + $0x16c] sm:$0xf]  ;;  %v7863_v57 = vld [vmem:[#allocation23_spill] sm:$0xff] }
 0x2e0   : > { %v4038_v62 = vor.u32 %v4923_v10, %v4035_v45  ;;  %v4951_v45 = vld [vmem:[%s7700_s1 + $0x24c] sm:$0xf]  ;;  %v4147_v10 = vld [vmem:[%s7700_s1 + $0x258] sm:$0xf0] }
 0x2e2   : > { %v2984_v16 = vpop.f32.mrf.mxu2  ;;  %v2888_v21 = vpop.f32.mrf.mxu0  ;;  %3312 = vmatpush.bf16.msra.mxu1 %v4038_v62  ;;  %v3891_v62 = vld [vmem:[%s7700_s1 + $0x58] sm:$0xf0] }
 0x2e3   : > { %v2985_v19 = vadd.f32 %v2984_v16, %v2936_v47  ;;  %v2938_v9 = vadd.f32 %v2937_v3, %v2888_v21  ;;  %v7866_v21 = vld [vmem:[#allocation26_spill] sm:$0xff]  ;;  %v4150_v3 = vor.u32 %v4951_v45, %v4147_v10 }
 0x2e5   : > { %v7186_v55 = vadd.f32 %v3033_v34, %v2985_v19  ;;  %v2940_v37 = vpop.f32.mrf.mxu1  ;;  %v7864_v19 = vld [vmem:[#allocation24_spill] sm:$0xff]  ;;  %v7865_v34 = vld [vmem:[#allocation25_spill] sm:$0xff]  ;;  %3362 = vmatpush.bf16.msra.mxu2 %v4150_v3 }
 0x2e7   : > { %v3035_v39 = vpop.f32.mrf.mxu3 }
 0x2e8   : > { %3135 = vmatmul.bf16.gmra.mxu1 %v7864_v19 }
 0x2e9   : > { %3233 = vmatmul.bf16.gmra.mxu3 %v7866_v21 }
 0x2ea   : > { %v2986_v47 = vpop.f32.mrf.mxu2  ;;  %v2891_v56 = vpop.f32.mrf.mxu0 }
 0x2eb   : > { %v2987_v11 = vadd.f32 %v2986_v47, %v2938_v9  ;;  %v2941_v36 = vadd.f32 %v2940_v37, %v2891_v56  ;;  %v4887_v9 = vld [vmem:[%s7700_s1 + $0x4c] sm:$0xf] }
 0x2ec   : > { %v4983_v47 = vld [vmem:[%s7700_s1 + $0x34c] sm:$0xf]  ;;  %v3894_v56 = vor.u32 %v4887_v9, %v3891_v62  ;;  %v4022_v9 = vor.u32 %v4919_v32, %v4019_v54  ;;  %v4131_v32 = vld [vmem:[%s7700_s1 + $0x238] sm:$0xf0] }
 0x2ed   : > { %v7194_v16 = vadd.f32 %v3035_v39, %v2987_v11  ;;  %3086 = vmatmul.bf16.gmra.mxu0 %v7863_v57  ;;  %v4275_v11 = vld [vmem:[%s7700_s1 + $0x358] sm:$0xf0]  ;;  %v2942_v45 = vpop.f32.mrf.mxu1  ;;  %v4947_v54 = vld [vmem:[%s7700_s1 + $0x22c] sm:$0xf] }
 0x2ee   : > { %v4278_v37 = vor.u32 %v4983_v47, %v4275_v11  ;;  %3264 = vmatpush.bf16.msra.mxu0 %v3894_v56  ;;  %3313 = vmatpush.bf16.msra.mxu1 %v4022_v9  ;;  %v7869_v56 = vld [vmem:[#allocation29_spill] sm:$0xff]  ;;  %v3875_v9 = vld [vmem:[%s7700_s1 + $0x38] sm:$0xf0] }
 0x2ef   : > { %3184 = vmatmul.bf16.gmra.mxu2 %v7865_v34  ;;  %v3038_v34 = vpop.f32.mrf.mxu3 }
 0x2f0   : > { %3411 = vmatpush.bf16.msra.mxu3 %v4278_v37  ;;  %v7870_v37 = vld [vmem:[#allocation30_spill] sm:$0xff] }
 0x2f2   : > { %v2989_v39 = vpop.f32.mrf.mxu2  ;;  %v2893_v19 = vpop.f32.mrf.mxu0 }
 0x2f3   : > { %v2990_v21 = vadd.f32 %v2989_v39, %v2941_v36  ;;  %v2943_v57 = vadd.f32 %v2942_v45, %v2893_v19  ;;  %v7868_v19 = vld [vmem:[#allocation28_spill] sm:$0xff]  ;;  %v4134_v45 = vor.u32 %v4947_v54, %v4131_v32 }
 0x2f5   : > { %v7218_v10 = vadd.f32 %v3038_v34, %v2990_v21  ;;  %v2945_v11 = vpop.f32.mrf.mxu1  ;;  %v7867_v21 = vld [vmem:[#allocation27_spill] sm:$0xff]  ;;  %3363 = vmatpush.bf16.msra.mxu2 %v4134_v45 }
 0x2f7   : > { %v3040_v47 = vpop.f32.mrf.mxu3 }
 0x2f8   : > { %3140 = vmatmul.bf16.gmra.mxu1 %v7868_v19 }
 0x2f9   : > { %3238 = vmatmul.bf16.gmra.mxu3 %v7870_v37 }
 0x2fa   : > { %v2991_v36 = vpop.f32.mrf.mxu2  ;;  %v2896_v3 = vpop.f32.mrf.mxu0 }
 0x2fb   : > { %v2992_v62 = vadd.f32 %v2991_v36, %v2943_v57  ;;  %v2946_v34 = vadd.f32 %v2945_v11, %v2896_v3  ;;  %v4883_v57 = vld [vmem:[%s7700_s1 + $0x2c] sm:$0xf] }
 0x2fc   : > { %v4979_v36 = vld [vmem:[%s7700_s1 + $0x32c] sm:$0xf]  ;;  %v3878_v3 = vor.u32 %v4883_v57, %v3875_v9  ;;  %v4006_v57 = vor.u32 %v4915_v59, %v4003_v1  ;;  %v4115_v59 = vld [vmem:[%s7700_s1 + $0x218] sm:$0xf0] }
 0x2fd   : > { %v7226_v39 = vadd.f32 %v3040_v47, %v2992_v62  ;;  %3091 = vmatmul.bf16.gmra.mxu0 %v7867_v21  ;;  %v4259_v62 = vld [vmem:[%s7700_s1 + $0x338] sm:$0xf0]  ;;  %v2947_v54 = vpop.f32.mrf.mxu1  ;;  %v4943_v1 = vld [vmem:[%s7700_s1 + $0x20c] sm:$0xf] }
 0x2fe   : > { %v4262_v11 = vor.u32 %v4979_v36, %v4259_v62  ;;  %3265 = vmatpush.bf16.msra.mxu0 %v3878_v3  ;;  %3314 = vmatpush.bf16.msra.mxu1 %v4006_v57  ;;  %v7873_v3 = vld [vmem:[#allocation33_spill] sm:$0xff]  ;;  %v3859_v57 = vld [vmem:[%s7700_s1 + $0x18] sm:$0xf0] }
 0x2ff   : > { %3189 = vmatmul.bf16.gmra.mxu2 %v7869_v56  ;;  %v3043_v56 = vpop.f32.mrf.mxu3 }
 0x300   : > { %3412 = vmatpush.bf16.msra.mxu3 %v4262_v11  ;;  %v7874_v11 = vld [vmem:[#allocation34_spill] sm:$0xff] }
 0x302   : > { %v2994_v47 = vpop.f32.mrf.mxu2  ;;  %v2898_v19 = vpop.f32.mrf.mxu0 }
 0x303   : > { %v2995_v37 = vadd.f32 %v2994_v47, %v2946_v34  ;;  %v2948_v21 = vadd.f32 %v2947_v54, %v2898_v19  ;;  %v7872_v19 = vld [vmem:[#allocation32_spill] sm:$0xff]  ;;  %v4118_v54 = vor.u32 %v4943_v1, %v4115_v59 }
 0x305   : > { %v7250_v32 = vadd.f32 %v3043_v56, %v2995_v37  ;;  %v2950_v62 = vpop.f32.mrf.mxu1  ;;  %v7871_v37 = vld [vmem:[#allocation31_spill] sm:$0xff]  ;;  %3364 = vmatpush.bf16.msra.mxu2 %v4118_v54 }
 0x307   : > { %v3045_v36 = vpop.f32.mrf.mxu3 }
 0x308   : > { %3145 = vmatmul.bf16.gmra.mxu1 %v7872_v19 }
 0x309   : > { %3243 = vmatmul.bf16.gmra.mxu3 %v7874_v11 }
 0x30a   : > { %v2996_v34 = vpop.f32.mrf.mxu2  ;;  %v2901_v45 = vpop.f32.mrf.mxu0 }
 0x30b   : > { %v2997_v9 = vadd.f32 %v2996_v34, %v2948_v21  ;;  %v2951_v56 = vadd.f32 %v2950_v62, %v2901_v45  ;;  %v4879_v21 = vld [vmem:[%s7700_s1 + $0xc] sm:$0xf] }
 0x30c   : > { %v4975_v34 = vld [vmem:[%s7700_s1 + $0x30c] sm:$0xf]  ;;  %v3862_v45 = vor.u32 %v4879_v21, %v3859_v57  ;;  %v3990_v21 = vor.u32 %v4911_v17, %v3987_v28  ;;  %v4739_v17 = vld [vmem:[%s7700_s1 + $0x6f8] sm:$0xf0] }
 0x30d   : > { %v7258_v47 = vadd.f32 %v3045_v36, %v2997_v9  ;;  %3096 = vmatmul.bf16.gmra.mxu0 %v7871_v37  ;;  %v4243_v9 = vld [vmem:[%s7700_s1 + $0x318] sm:$0xf0]  ;;  %v2952_v1 = vpop.f32.mrf.mxu1  ;;  %v5099_v28 = vld [vmem:[%s7700_s1 + $0x6ec] sm:$0xf] }
 0x30e   : > { %v4246_v62 = vor.u32 %v4975_v34, %v4243_v9  ;;  %3266 = vmatpush.bf16.msra.mxu0 %v3862_v45  ;;  %3315 = vmatpush.bf16.msra.mxu1 %v3990_v21  ;;  %v7877_v45 = vld [vmem:[#allocation37_spill] sm:$0xff]  ;;  %v4483_v21 = vld [vmem:[%s7700_s1 + $0x4f8] sm:$0xf0] }
 0x30f   : > { %3194 = vmatmul.bf16.gmra.mxu2 %v7873_v3  ;;  %v3048_v3 = vpop.f32.mrf.mxu3 }
 0x310   : > { %3413 = vmatpush.bf16.msra.mxu3 %v4246_v62  ;;  %v7878_v62 = vld [vmem:[#allocation38_spill] sm:$0xff] }
 0x312   : > { %v2999_v36 = vpop.f32.mrf.mxu2  ;;  %v2903_v19 = vpop.f32.mrf.mxu0 }
 0x313   : > { %v3000_v11 = vadd.f32 %v2999_v36, %v2951_v56  ;;  %v2953_v37 = vadd.f32 %v2952_v1, %v2903_v19  ;;  %v7876_v19 = vld [vmem:[#allocation36_spill] sm:$0xff]  ;;  %v4742_v1 = vor.u32 %v5099_v28, %v4739_v17 }
 0x315   : > { %v7282_v59 = vadd.f32 %v3048_v3, %v3000_v11  ;;  %v2955_v9 = vpop.f32.mrf.mxu1  ;;  %v7875_v11 = vld [vmem:[#allocation35_spill] sm:$0xff]  ;;  %3553 = vmatpush.bf16.msrb.mxu2 %v4742_v1 }
 0x317   : > { %v3050_v34 = vpop.f32.mrf.mxu3 }
 0x318   : > { %3150 = vmatmul.bf16.gmra.mxu1 %v7876_v19 }
 0x319   : > { %3248 = vmatmul.bf16.gmra.mxu3 %v7878_v62 }
 0x31a   : > { %v3001_v56 = vpop.f32.mrf.mxu2  ;;  %v2906_v54 = vpop.f32.mrf.mxu0 }
 0x31b   : > { %v3002_v57 = vadd.f32 %v3001_v56, %v2953_v37  ;;  %v2956_v3 = vadd.f32 %v2955_v9, %v2906_v54  ;;  %v5035_v37 = vld [vmem:[%s7700_s1 + $0x4ec] sm:$0xf] }
 0x31c   : > { %v5131_v56 = vld [vmem:[%s7700_s1 + $0x7ec] sm:$0xf]  ;;  %v4486_v54 = vor.u32 %v5035_v37, %v4483_v21  ;;  %v4614_v37 = vor.u32 %v5067_v61, %v4611_v29  ;;  %v4723_v61 = vld [vmem:[%s7700_s1 + $0x6d8] sm:$0xf0] }
 0x31d   : > { %v7290_v36 = vadd.f32 %v3050_v34, %v3002_v57  ;;  %3101 = vmatmul.bf16.gmra.mxu0 %v7875_v11  ;;  %v4867_v57 = vld [vmem:[%s7700_s1 + $0x7f8] sm:$0xf0]  ;;  %v2957_v28 = vpop.f32.mrf.mxu1  ;;  %v5095_v29 = vld [vmem:[%s7700_s1 + $0x6cc] sm:$0xf] }
 0x31e   : > { %v4870_v9 = vor.u32 %v5131_v56, %v4867_v57  ;;  %3455 = vmatpush.bf16.msrb.mxu0 %v4486_v54  ;;  %3504 = vmatpush.bf16.msrb.mxu1 %v4614_v37  ;;  %v4726_v54 = vor.u32 %v5095_v29, %v4723_v61  ;;  %v4851_v37 = vld [vmem:[%s7700_s1 + $0x7d8] sm:$0xf0] }
 0x31f   : > { %3199 = vmatmul.bf16.gmra.mxu2 %v7877_v45  ;;  %v3053_v45 = vpop.f32.mrf.mxu3 }
 0x320   : > { %3602 = vmatpush.bf16.msrb.mxu3 %v4870_v9  ;;  %v4467_v9 = vld [vmem:[%s7700_s1 + $0x4d8] sm:$0xf0]  ;;  %3554 = vmatpush.bf16.msrb.mxu2 %v4726_v54 }
 0x322   : > { %v3004_v34 = vpop.f32.mrf.mxu2  ;;  %v2908_v19 = vpop.f32.mrf.mxu0 }
 0x323   : > { %v3005_v62 = vadd.f32 %v3004_v34, %v2956_v3  ;;  %v2958_v11 = vadd.f32 %v2957_v28, %v2908_v19  ;;  %v7879_v19 = vld [vmem:[#allocation41_spill] sm:$0xff]  ;;  %v5127_v28 = vld [vmem:[%s7700_s1 + $0x7cc] sm:$0xf] }
 0x325   : > { %v7314_v17 = vadd.f32 %v3053_v45, %v3005_v62  ;;  %v2960_v57 = vpop.f32.mrf.mxu1  ;;  %v7880_v62 = vld [vmem:[#allocation42_spill] sm:$0xff] }
 0x327   : > { %v3055_v56 = vpop.f32.mrf.mxu3 }
 0x328   : > { %3155 = vmatmul.bf16.gmra.mxu1 %v6287_v31  ;;  %v5063_v31 = vld [vmem:[%s7700_s1 + $0x5cc] sm:$0xf] }
 0x329   : > { %3253 = vmatmul.bf16.gmra.mxu3 %v7880_v62 }
 0x32a   : > { %v3006_v21 = vpop.f32.mrf.mxu2  ;;  %v2911_v1 = vpop.f32.mrf.mxu0 }
 0x32b   : > { %v3007_v3 = vadd.f32 %v3006_v21, %v2958_v11  ;;  %v2961_v45 = vadd.f32 %v2960_v57, %v2911_v1  ;;  %v5031_v11 = vld [vmem:[%s7700_s1 + $0x4cc] sm:$0xf] }
 0x32d   : > { %v7322_v34 = vadd.f32 %v3055_v56, %v3007_v3  ;;  %3106 = vmatmul.bf16.gmra.mxu0 %v6285_v44  ;;  %v4470_v3 = vor.u32 %v5031_v11, %v4467_v9  ;;  %v4854_v56 = vor.u32 %v5127_v28, %v4851_v37  ;;  %v2962_v29 = vpop.f32.mrf.mxu1  ;;  %v4595_v44 = vld [vmem:[%s7700_s1 + $0x5d8] sm:$0xf0] }
 0x32e   : > { %v4598_v11 = vor.u32 %v5063_v31, %v4595_v44  ;;  %v5091_v44 = vld [vmem:[%s7700_s1 + $0x6ac] sm:$0xf]  ;;  %v4707_v31 = vld [vmem:[%s7700_s1 + $0x6b8] sm:$0xf0] }
 0x32f   : > { %3204 = vmatmul.bf16.gmra.mxu2 %v7879_v19  ;;  %v3058_v57 = vpop.f32.mrf.mxu3  ;;  %3456 = vmatpush.bf16.msrb.mxu0 %v4470_v3 }
 0x330   : > { %3603 = vmatpush.bf16.msrb.mxu3 %v4854_v56  ;;  %3505 = vmatpush.bf16.msrb.mxu1 %v4598_v11 }
 0x332   : > { %v3009_v21 = vpop.f32.mrf.mxu2  ;;  %v2913_v62 = vpop.f32.mrf.mxu0 }
 0x333   : > { %v3010_v1 = vadd.f32 %v3009_v21, %v2961_v45  ;;  %v2963_v19 = vadd.f32 %v2962_v29, %v2913_v62 }
 0x335   : > { %v7346_v61 = vadd.f32 %v3058_v57, %v3010_v1  ;;  %v3121_v37 = vpop.f32.mrf.mxu1 }
 0x337   : > { %v3060_v28 = vpop.f32.mrf.mxu3 }
 0x338   : > { %3316 = vmatmul.bf16.vlgmr.msra.gmra.mxu1 %v5589_v63  ;;  %v4451_v63 = vld [vmem:[%s7700_s1 + $0x4b8] sm:$0xf0] }
 0x339   : > { %3414 = vmatmul.bf16.vlgmr.msra.gmra.mxu3 %v5593_v2  ;;  %v4835_v2 = vld [vmem:[%s7700_s1 + $0x7b8] sm:$0xf0] }
 0x33a   : > { %v3011_v9 = vpop.f32.mrf.mxu2  ;;  %v3072_v54 = vpop.f32.mrf.mxu0 }
 0x33b   : > { %v3012_v45 = vadd.f32 %v3011_v9, %v2963_v19  ;;  %v3073_v3 = vadd.f32 %v3072_v54, %v7122_v22  ;;  %v5027_v22 = vld [vmem:[%s7700_s1 + $0x4ac] sm:$0xf] }
 0x33c   : > { %v4454_v56 = vor.u32 %v5027_v22, %v4451_v63  ;;  %v5059_v54 = vld [vmem:[%s7700_s1 + $0x5ac] sm:$0xf] }
 0x33d   : > { %v7354_v21 = vadd.f32 %v3060_v28, %v3012_v45  ;;  %3267 = vmatmul.bf16.vlgmr.msra.gmra.mxu0 %v5581_v58  ;;  %v3122_v19 = vadd.f32 %v3121_v37, %v3073_v3  ;;  %v4710_v58 = vor.u32 %v5091_v44, %v4707_v31  ;;  %v3123_v9 = vpop.f32.mrf.mxu1  ;;  %v4579_v37 = vld [vmem:[%s7700_s1 + $0x5b8] sm:$0xf0] }
 0x33e   : > { %3457 = vmatpush.bf16.msrb.mxu0 %v4454_v56  ;;  %v4582_v3 = vor.u32 %v5059_v54, %v4579_v37 }
 0x33f   : > { %3365 = vmatmul.bf16.vlgmr.msra.gmra.mxu2 %v5591_v0  ;;  %v5123_v0 = vld [vmem:[%s7700_s1 + $0x7ac] sm:$0xf]  ;;  %v3219_v29 = vpop.f32.mrf.mxu3 }
 0x340   : > { %v4838_v1 = vor.u32 %v5123_v0, %v4835_v2  ;;  %3555 = vmatpush.bf16.msrb.mxu2 %v4710_v58  ;;  %3506 = vmatpush.bf16.msrb.mxu1 %v4582_v3  ;;  %v5087_v2 = vld [vmem:[%s7700_s1 + $0x68c] sm:$0xf] }
 0x341   : > { %v5055_v3 = vld [vmem:[%s7700_s1 + $0x58c] sm:$0xf] }
 0x342   : > { %v3170_v62 = vpop.f32.mrf.mxu2  ;;  %v3074_v11 = vpop.f32.mrf.mxu0  ;;  %3604 = vmatpush.bf16.msrb.mxu3 %v4838_v1 }
 0x343   : > { %v3171_v57 = vadd.f32 %v3170_v62, %v3122_v19  ;;  %v3075_v28 = vadd.f32 %v3074_v11, %v7130_v33  ;;  %v4691_v62 = vld [vmem:[%s7700_s1 + $0x698] sm:$0xf0] }
 0x344   : > { %v4694_v56 = vor.u32 %v5087_v2, %v4691_v62  ;;  %v5083_v62 = vld [vmem:[%s7700_s1 + $0x66c] sm:$0xf] }
 0x345   : > { %v3220_v45 = vadd.f32 %v3219_v29, %v3171_v57  ;;  %v3124_v44 = vadd.f32 %v3123_v9, %v3075_v28  ;;  %v3126_v63 = vpop.f32.mrf.mxu1 }
 0x346   : > { %3556 = vmatpush.bf16.msrb.mxu2 %v4694_v56 }
 0x347   : > { %3653 = vst [vmem:[%s6354_s24 + $0x10] sm:$0xff] %v3220_v45  ;;  %v3221_v19 = vpop.f32.mrf.mxu3 }
 0x348   : > { %3321 = vmatmul.bf16.gmra.mxu1 %v5645_v41  ;;  %v4435_v41 = vld [vmem:[%s7700_s1 + $0x498] sm:$0xf0] }
 0x349   : > { %3419 = vmatmul.bf16.gmra.mxu3 %v5649_v43  ;;  %v4819_v43 = vld [vmem:[%s7700_s1 + $0x798] sm:$0xf0] }
 0x34a   : > { %v3172_v31 = vpop.f32.mrf.mxu2  ;;  %v3077_v58 = vpop.f32.mrf.mxu0 }
 0x34b   : > { %v3173_v22 = vadd.f32 %v3172_v31, %v3124_v44  ;;  %v3078_v33 = vadd.f32 %v3077_v58, %v7154_v18  ;;  %v5023_v18 = vld [vmem:[%s7700_s1 + $0x48c] sm:$0xf]  ;;  %v4563_v44 = vld [vmem:[%s7700_s1 + $0x598] sm:$0xf0] }
 0x34c   : > { %v4438_v57 = vor.u32 %v5023_v18, %v4435_v41  ;;  %v4566_v31 = vor.u32 %v5055_v3, %v4563_v44  ;;  %v4675_v18 = vld [vmem:[%s7700_s1 + $0x678] sm:$0xf0] }
 0x34d   : > { %v3222_v0 = vadd.f32 %v3221_v19, %v3173_v22  ;;  %3272 = vmatmul.bf16.gmra.mxu0 %v5643_v40  ;;  %v3127_v40 = vadd.f32 %v3126_v63, %v3078_v33  ;;  %v3128_v28 = vpop.f32.mrf.mxu1 }
 0x34e   : > { %3458 = vmatpush.bf16.msrb.mxu0 %v4438_v57  ;;  %3507 = vmatpush.bf16.msrb.mxu1 %v4566_v31 }
 0x34f   : > { %3657 = vst [vmem:[%s6354_s24 + $0x30] sm:$0xff] %v3222_v0  ;;  %3370 = vmatmul.bf16.gmra.mxu2 %v5647_v42  ;;  %v5119_v42 = vld [vmem:[%s7700_s1 + $0x78c] sm:$0xf]  ;;  %v3224_v9 = vpop.f32.mrf.mxu3 }
 0x350   : > { %v4822_v29 = vor.u32 %v5119_v42, %v4819_v43 }
 0x352   : > { %v3175_v1 = vpop.f32.mrf.mxu2  ;;  %v3079_v45 = vpop.f32.mrf.mxu0  ;;  %3605 = vmatpush.bf16.msrb.mxu3 %v4822_v29 }
 0x353   : > { %v3176_v11 = vadd.f32 %v3175_v1, %v3127_v40  ;;  %v3080_v37 = vadd.f32 %v3079_v45, %v7162_v30  ;;  %v4678_v40 = vor.u32 %v5083_v62, %v4675_v18  ;;  %v5051_v45 = vld [vmem:[%s7700_s1 + $0x56c] sm:$0xf] }
 0x355   : > { %v3225_v54 = vadd.f32 %v3224_v9, %v3176_v11  ;;  %v3129_v22 = vadd.f32 %v3128_v28, %v3080_v37  ;;  %v3131_v33 = vpop.f32.mrf.mxu1  ;;  %3557 = vmatpush.bf16.msrb.mxu2 %v4678_v40  ;;  %v4547_v28 = vld [vmem:[%s7700_s1 + $0x578] sm:$0xf0] }
 0x357   : > { %3661 = vst [vmem:[%s6354_s24 + $0x50] sm:$0xff] %v3225_v54  ;;  %v3226_v63 = vpop.f32.mrf.mxu3  ;;  %v4550_v54 = vor.u32 %v5051_v45, %v4547_v28  ;;  %v5075_v45 = vld [vmem:[%s7700_s1 + $0x62c] sm:$0xf]  ;;  %v4643_v28 = vld [vmem:[%s7700_s1 + $0x638] sm:$0xf0] }
 0x358   : > { %3326 = vmatmul.bf16.gmra.mxu1 %v5689_v13  ;;  %v4419_v13 = vld [vmem:[%s7700_s1 + $0x478] sm:$0xf0] }
 0x359   : > { %3424 = vmatmul.bf16.gmra.mxu3 %v5693_v15  ;;  %v4803_v15 = vld [vmem:[%s7700_s1 + $0x778] sm:$0xf0]  ;;  %3508 = vmatpush.bf16.msrb.mxu1 %v4550_v54  ;;  %v4646_v54 = vor.u32 %v5075_v45, %v4643_v28 }
 0x35a   : > { %v3177_v19 = vpop.f32.mrf.mxu2  ;;  %v3082_v0 = vpop.f32.mrf.mxu0 }
 0x35b   : > { %v3178_v58 = vadd.f32 %v3177_v19, %v3129_v22  ;;  %v3083_v30 = vadd.f32 %v3082_v0, %v7186_v55  ;;  %v5019_v55 = vld [vmem:[%s7700_s1 + $0x46c] sm:$0xf]  ;;  %v4659_v0 = vld [vmem:[%s7700_s1 + $0x658] sm:$0xf0] }
 0x35c   : > { %v4422_v41 = vor.u32 %v5019_v55, %v4419_v13 }
 0x35d   : > { %v3227_v2 = vadd.f32 %v3226_v63, %v3178_v58  ;;  %3277 = vmatmul.bf16.gmra.mxu0 %v5687_v12  ;;  %v3132_v12 = vadd.f32 %v3131_v33, %v3083_v30  ;;  %v3133_v29 = vpop.f32.mrf.mxu1  ;;  %v5079_v63 = vld [vmem:[%s7700_s1 + $0x64c] sm:$0xf] }
 0x35e   : > { %3459 = vmatpush.bf16.msrb.mxu0 %v4422_v41  ;;  %v4662_v33 = vor.u32 %v5079_v63, %v4659_v0  ;;  %v5043_v0 = vld [vmem:[%s7700_s1 + $0x52c] sm:$0xf] }
 0x35f   : > { %3665 = vst [vmem:[%s6354_s24 + $0x70] sm:$0xff] %v3227_v2  ;;  %3375 = vmatmul.bf16.gmra.mxu2 %v5691_v14  ;;  %v5115_v14 = vld [vmem:[%s7700_s1 + $0x76c] sm:$0xf]  ;;  %v3229_v1 = vpop.f32.mrf.mxu3 }
 0x360   : > { %v4806_v42 = vor.u32 %v5115_v14, %v4803_v15  ;;  %3558 = vmatpush.bf16.msrb.mxu2 %v4662_v33  ;;  %v5047_v15 = vld [vmem:[%s7700_s1 + $0x54c] sm:$0xf] }
 0x362   : > { %v3180_v56 = vpop.f32.mrf.mxu2  ;;  %v3084_v57 = vpop.f32.mrf.mxu0  ;;  %3606 = vmatpush.bf16.msrb.mxu3 %v4806_v42 }
 0x363   : > { %v3181_v43 = vadd.f32 %v3180_v56, %v3132_v12  ;;  %v3085_v9 = vadd.f32 %v3084_v57, %v7194_v16  ;;  %v4531_v56 = vld [vmem:[%s7700_s1 + $0x558] sm:$0xf0] }
 0x364   : > { %v4534_v41 = vor.u32 %v5047_v15, %v4531_v56  ;;  %3559 = vmatpush.bf16.msrb.mxu2 %v4646_v54 }
 0x365   : > { %v3230_v11 = vadd.f32 %v3229_v1, %v3181_v43  ;;  %v3134_v37 = vadd.f32 %v3133_v29, %v3085_v9  ;;  %v3136_v19 = vpop.f32.mrf.mxu1 }
 0x366   : > { %3509 = vmatpush.bf16.msrb.mxu1 %v4534_v41 }
 0x367   : > { %3669 = vst [vmem:[%s6354_s24 + $0x90] sm:$0xff] %v3230_v11  ;;  %v3231_v31 = vpop.f32.mrf.mxu3 }
 0x368   : > { %3331 = vmatmul.bf16.gmra.mxu1 %v5733_v49  ;;  %v4403_v49 = vld [vmem:[%s7700_s1 + $0x458] sm:$0xf0] }
 0x369   : > { %3429 = vmatmul.bf16.gmra.mxu3 %v5737_v51  ;;  %v4787_v51 = vld [vmem:[%s7700_s1 + $0x758] sm:$0xf0] }
 0x36a   : > { %v3182_v3 = vpop.f32.mrf.mxu2  ;;  %v3087_v22 = vpop.f32.mrf.mxu0 }
 0x36b   : > { %v3183_v44 = vadd.f32 %v3182_v3, %v3134_v37  ;;  %v3088_v16 = vadd.f32 %v3087_v22, %v7218_v10  ;;  %v5015_v10 = vld [vmem:[%s7700_s1 + $0x44c] sm:$0xf] }
 0x36c   : > { %v4406_v30 = vor.u32 %v5015_v10, %v4403_v49  ;;  %v4515_v10 = vld [vmem:[%s7700_s1 + $0x538] sm:$0xf0] }
 0x36d   : > { %v3232_v58 = vadd.f32 %v3231_v31, %v3183_v44  ;;  %3282 = vmatmul.bf16.gmra.mxu0 %v5731_v48  ;;  %v3137_v48 = vadd.f32 %v3136_v19, %v3088_v16  ;;  %v3138_v40 = vpop.f32.mrf.mxu1 }
 0x36e   : > { %3460 = vmatpush.bf16.msrb.mxu0 %v4406_v30 }
 0x36f   : > { %3673 = vst [vmem:[%s6354_s24 + $0xb0] sm:$0xff] %v3232_v58  ;;  %3380 = vmatmul.bf16.gmra.mxu2 %v5735_v50  ;;  %v5111_v50 = vld [vmem:[%s7700_s1 + $0x74c] sm:$0xf]  ;;  %v3234_v55 = vpop.f32.mrf.mxu3 }
 0x370   : > { %v4790_v62 = vor.u32 %v5111_v50, %v4787_v51 }
 0x372   : > { %v3185_v2 = vpop.f32.mrf.mxu2  ;;  %v3089_v12 = vpop.f32.mrf.mxu0  ;;  %3607 = vmatpush.bf16.msrb.mxu3 %v4790_v62 }
 0x373   : > { %v3186_v18 = vadd.f32 %v3185_v2, %v3137_v48  ;;  %v3090_v14 = vadd.f32 %v3089_v12, %v7226_v39  ;;  %v4518_v48 = vor.u32 %v5043_v0, %v4515_v10 }
 0x375   : > { %v3235_v13 = vadd.f32 %v3234_v55, %v3186_v18  ;;  %v3139_v42 = vadd.f32 %v3138_v40, %v3090_v14  ;;  %v3141_v11 = vpop.f32.mrf.mxu1  ;;  %3510 = vmatpush.bf16.msrb.mxu1 %v4518_v48  ;;  %v5071_v18 = vld [vmem:[%s7700_s1 + $0x60c] sm:$0xf]  ;;  %v4627_v55 = vld [vmem:[%s7700_s1 + $0x618] sm:$0xf0] }
 0x376   : > { %v4630_v12 = vor.u32 %v5071_v18, %v4627_v55  ;;  %v7883_v18 = vld [vmem:[#allocation14_spill] sm:$0xff] }
 0x377   : > { %3677 = vst [vmem:[%s6354_s24 + $0xd0] sm:$0xff] %v3235_v13  ;;  %v3236_v57 = vpop.f32.mrf.mxu3 }
 0x378   : > { %3336 = vmatmul.bf16.gmra.mxu1 %v5777_v25  ;;  %v4387_v25 = vld [vmem:[%s7700_s1 + $0x438] sm:$0xf0]  ;;  %3560 = vmatpush.bf16.msrb.mxu2 %v4630_v12 }
 0x379   : > { %3434 = vmatmul.bf16.gmra.mxu3 %v5781_v27  ;;  %v4771_v27 = vld [vmem:[%s7700_s1 + $0x738] sm:$0xf0] }
 0x37a   : > { %v3187_v43 = vpop.f32.mrf.mxu2  ;;  %v3092_v29 = vpop.f32.mrf.mxu0 }
 0x37b   : > { %v3188_v1 = vadd.f32 %v3187_v43, %v3139_v42  ;;  %v3093_v39 = vadd.f32 %v3092_v29, %v7250_v32  ;;  %v5011_v32 = vld [vmem:[%s7700_s1 + $0x42c] sm:$0xf]  ;;  %v4499_v29 = vld [vmem:[%s7700_s1 + $0x518] sm:$0xf0] }
 0x37c   : > { %v4390_v3 = vor.u32 %v5011_v32, %v4387_v25 }
 0x37d   : > { %v3237_v9 = vadd.f32 %v3236_v57, %v3188_v1  ;;  %3287 = vmatmul.bf16.gmra.mxu0 %v5775_v24  ;;  %v3142_v24 = vadd.f32 %v3141_v11, %v3093_v39  ;;  %v3143_v58 = vpop.f32.mrf.mxu1  ;;  %v5039_v57 = vld [vmem:[%s7700_s1 + $0x50c] sm:$0xf] }
 0x37e   : > { %3461 = vmatpush.bf16.msrb.mxu0 %v4390_v3  ;;  %v4502_v11 = vor.u32 %v5039_v57, %v4499_v29 }
 0x37f   : > { %3681 = vst [vmem:[%s6354_s24 + $0xf0] sm:$0xff] %v3237_v9  ;;  %3385 = vmatmul.bf16.gmra.mxu2 %v5779_v26  ;;  %v5107_v26 = vld [vmem:[%s7700_s1 + $0x72c] sm:$0xf]  ;;  %v3239_v22 = vpop.f32.mrf.mxu3 }
 0x380   : > { %v4774_v44 = vor.u32 %v5107_v26, %v4771_v27  ;;  %3511 = vmatpush.bf16.msrb.mxu1 %v4502_v11 }
 0x382   : > { %v3190_v37 = vpop.f32.mrf.mxu2  ;;  %v3094_v19 = vpop.f32.mrf.mxu0  ;;  %3608 = vmatpush.bf16.msrb.mxu3 %v4774_v44 }
 0x383   : > { %v3191_v31 = vadd.f32 %v3190_v37, %v3142_v24  ;;  %v3095_v63 = vadd.f32 %v3094_v19, %v7258_v47 }
 0x385   : > { %v3240_v16 = vadd.f32 %v3239_v22, %v3191_v31  ;;  %v3144_v33 = vadd.f32 %v3143_v58, %v3095_v63  ;;  %v3146_v30 = vpop.f32.mrf.mxu1 }
 0x387   : > { %3685 = vst [vmem:[%s6354_s24 + $0x110] sm:$0xff] %v3240_v16  ;;  %v3241_v51 = vpop.f32.mrf.mxu3 }
 0x388   : > { %3341 = vmatmul.bf16.gmra.mxu1 %v5821_v5  ;;  %v4371_v5 = vld [vmem:[%s7700_s1 + $0x418] sm:$0xf0] }
 0x389   : > { %3439 = vmatmul.bf16.gmra.mxu3 %v5825_v7  ;;  %v4755_v7 = vld [vmem:[%s7700_s1 + $0x718] sm:$0xf0] }
 0x38a   : > { %v3192_v49 = vpop.f32.mrf.mxu2  ;;  %v3097_v2 = vpop.f32.mrf.mxu0 }
 0x38b   : > { %v3193_v50 = vadd.f32 %v3192_v49, %v3144_v33  ;;  %v3098_v47 = vadd.f32 %v3097_v2, %v7282_v59  ;;  %v5007_v59 = vld [vmem:[%s7700_s1 + $0x40c] sm:$0xf] }
 0x38c   : > { %v4374_v13 = vor.u32 %v5007_v59, %v4371_v5 }
 0x38d   : > { %v3242_v62 = vadd.f32 %v3241_v51, %v3193_v50  ;;  %3292 = vmatmul.bf16.gmra.mxu0 %v5819_v4  ;;  %v3147_v4 = vadd.f32 %v3146_v30, %v3098_v47  ;;  %v3148_v42 = vpop.f32.mrf.mxu1  ;;  %v7882_v47 = vld [vmem:[#allocation13_spill] sm:$0xff] }
 0x38e   : > { %3462 = vmatpush.bf16.msrb.mxu0 %v4374_v13 }
 0x38f   : > { %3689 = vst [vmem:[%s6354_s24 + $0x130] sm:$0xff] %v3242_v62  ;;  %3390 = vmatmul.bf16.gmra.mxu2 %v5823_v6  ;;  %v5103_v6 = vld [vmem:[%s7700_s1 + $0x70c] sm:$0xf]  ;;  %v3244_v56 = vpop.f32.mrf.mxu3 }
 0x390   : > { %v4758_v14 = vor.u32 %v5103_v6, %v4755_v7 }
 0x392   : > { %v3195_v40 = vpop.f32.mrf.mxu2  ;;  %v3099_v41 = vpop.f32.mrf.mxu0  ;;  %3609 = vmatpush.bf16.msrb.mxu3 %v4758_v14 }
 0x393   : > { %v3196_v15 = vadd.f32 %v3195_v40, %v3147_v4  ;;  %v3100_v1 = vadd.f32 %v3099_v41, %v7290_v36  ;;  %v7884_v41 = vld [vmem:[#allocation15_spill] sm:$0xff] }
 0x395   : > { %v3245_v43 = vadd.f32 %v3244_v56, %v3196_v15  ;;  %v3149_v9 = vadd.f32 %v3148_v42, %v3100_v1  ;;  %v3151_v24 = vpop.f32.mrf.mxu1  ;;  %v7885_v42 = vld [vmem:[#allocation16_spill] sm:$0xff]  ;;  %v7887_v1 = vld [vmem:[#allocation18_spill] sm:$0xff] }
 0x397   : > { %3693 = vst [vmem:[%s6354_s24 + $0x150] sm:$0xff] %v3245_v43  ;;  %v3246_v28 = vpop.f32.mrf.mxu3  ;;  %v7886_v43 = vld [vmem:[#allocation17_spill] sm:$0xff] }
 0x398   : > { %3346 = vmatmul.bf16.gmra.mxu1 %v5865_v53 }
 0x399   : > { %3444 = vmatmul.bf16.gmra.mxu3 %v7817_v8 }
 0x39a   : > { %v3197_v39 = vpop.f32.mrf.mxu2  ;;  %v3102_v32 = vpop.f32.mrf.mxu0 }
 0x39b   : > { %v3198_v45 = vadd.f32 %v3197_v39, %v3149_v9  ;;  %v3103_v36 = vadd.f32 %v3102_v32, %v7314_v17 }
 0x39d   : > { %v3247_v54 = vadd.f32 %v3246_v28, %v3198_v45  ;;  %3297 = vmatmul.bf16.gmra.mxu0 %v5863_v52  ;;  %v3152_v25 = vadd.f32 %v3151_v24, %v3103_v36  ;;  %v3153_v44 = vpop.f32.mrf.mxu1 }
 0x39f   : > { %3697 = vst [vmem:[%s6354_s24 + $0x170] sm:$0xff] %v3247_v54  ;;  %3395 = vmatmul.bf16.gmra.mxu2 %v7816_v23  ;;  %v3249_v37 = vpop.f32.mrf.mxu3 }
 0x3a2   : > { %v3200_v26 = vpop.f32.mrf.mxu2  ;;  %v3104_v3 = vpop.f32.mrf.mxu0 }
 0x3a3   : > { %v3201_v27 = vadd.f32 %v3200_v26, %v3152_v25  ;;  %v3105_v22 = vadd.f32 %v3104_v3, %v7322_v34  ;;  %v7889_v3 = vld [vmem:[#allocation20_spill] sm:$0xff] }
 0x3a5   : > { %v3250_v31 = vadd.f32 %v3249_v37, %v3201_v27  ;;  %v3154_v17 = vadd.f32 %v3153_v44, %v3105_v22  ;;  %v3156_v16 = vpop.f32.mrf.mxu1  ;;  %v7888_v37 = vld [vmem:[#allocation19_spill] sm:$0xff]  ;;  %v7890_v44 = vld [vmem:[#allocation21_spill] sm:$0xff] }
 0x3a7   : > { %3701 = vst [vmem:[%s6354_s24 + $0x190] sm:$0xff] %v3250_v31  ;;  %v3251_v58 = vpop.f32.mrf.mxu3  ;;  %v7891_v31 = vld [vmem:[#allocation22_spill] sm:$0xff] }
 0x3a8   : > { %3351 = vmatmul.bf16.gmra.mxu1 %v7819_v60 }
 0x3a9   : > { %3449 = vmatmul.bf16.gmra.mxu3 %v7850_v20  ;;  %v7881_v20 = vld [vmem:[#allocation12_spill] sm:$0xff] }
 0x3aa   : > { %v3202_v52 = vpop.f32.mrf.mxu2  ;;  %v3107_v53 = vpop.f32.mrf.mxu0 }
 0x3ab   : > { %v3203_v19 = vadd.f32 %v3202_v52, %v3154_v17  ;;  %v3108_v8 = vadd.f32 %v3107_v53, %v7346_v61 }
 0x3ad   : > { %v3252_v23 = vadd.f32 %v3251_v58, %v3203_v19  ;;  %3302 = vmatmul.bf16.gmra.mxu0 %v7818_v46  ;;  %v3157_v34 = vadd.f32 %v3156_v16, %v3108_v8  ;;  %v3158_v33 = vpop.f32.mrf.mxu1 }
 0x3af   : > { %3705 = vst [vmem:[%s6354_s24 + $0x1b0] sm:$0xff] %v3252_v23  ;;  %3400 = vmatmul.bf16.gmra.mxu2 %v7820_v35  ;;  %v3254_v10 = vpop.f32.mrf.mxu3 }
 0x3b2   : > { %v3205_v63 = vpop.f32.mrf.mxu2  ;;  %v3109_v48 = vpop.f32.mrf.mxu0 }
 0x3b3   : > { %v3206_v0 = vadd.f32 %v3205_v63, %v3157_v34  ;;  %v3110_v50 = vadd.f32 %v3109_v48, %v7354_v21 }
 0x3b5   : > { %v3255_v49 = vadd.f32 %v3254_v10, %v3206_v0  ;;  %v3159_v61 = vadd.f32 %v3158_v33, %v3110_v50  ;;  %v3317_v30 = vpop.f32.mrf.mxu1  ;;  %v7892_v33 = vld [vmem:[#allocation23_spill] sm:$0xff]  ;;  %v7894_v50 = vld [vmem:[#allocation25_spill] sm:$0xff] }
 0x3b7   : > { %3709 = vst [vmem:[%s6354_s24 + $0x1d0] sm:$0xff] %v3255_v49  ;;  %v3256_v2 = vpop.f32.mrf.mxu3  ;;  %v7893_v49 = vld [vmem:[#allocation24_spill] sm:$0xff] }
 0x3b8   : > { %3512 = vmatmul.bf16.vlgmr.msrb.gmra.mxu1 %v7881_v20 }
 0x3b9   : > { %3610 = vmatmul.bf16.vlgmr.msrb.gmra.mxu3 %v7883_v18 }
 0x3ba   : > { %v3207_v46 = vpop.f32.mrf.mxu2  ;;  %v3268_v60 = vpop.f32.mrf.mxu0 }
 0x3bb   : > { %v3208_v51 = vadd.f32 %v3207_v46, %v3159_v61  ;;  %v3318_v62 = vadd.f32 %v3317_v30, %v3268_v60  ;;  %v7895_v61 = vld [vmem:[#allocation26_spill] sm:$0xff] }
 0x3bd   : > { %v3257_v35 = vadd.f32 %v3256_v2, %v3208_v51  ;;  %3463 = vmatmul.bf16.vlgmr.msrb.gmra.mxu0 %v7851_v38  ;;  %v3319_v12 = vpop.f32.mrf.mxu1 }
 0x3bf   : > { %3713 = vst [vmem:[%s6354_s24 + $0x1f0] sm:$0xff] %v3257_v35  ;;  %3561 = vmatmul.bf16.vlgmr.msrb.gmra.mxu2 %v7882_v47  ;;  %v3415_v59 = vpop.f32.mrf.mxu3 }
 0x3c2   : > { %v3366_v55 = vpop.f32.mrf.mxu2  ;;  %v3270_v4 = vpop.f32.mrf.mxu0 }
 0x3c3   : > { %v3367_v21 = vadd.f32 %v3366_v55, %v3318_v62  ;;  %v3320_v6 = vadd.f32 %v3319_v12, %v3270_v4  ;;  %v7896_v12 = vld [vmem:[#allocation27_spill] sm:$0xff] }
 0x3c5   : > { %v7568_v5 = vadd.f32 %v3415_v59, %v3367_v21  ;;  %v3322_v38 = vpop.f32.mrf.mxu1 }
 0x3c7   : > { %v3417_v13 = vpop.f32.mrf.mxu3 }
 0x3c8   : > { %3517 = vmatmul.bf16.gmra.mxu1 %v7885_v42 }
 0x3c9   : > { %3615 = vmatmul.bf16.gmra.mxu3 %v7887_v1 }
 0x3ca   : > { %v3368_v7 = vpop.f32.mrf.mxu2  ;;  %v3273_v14 = vpop.f32.mrf.mxu0 }
 0x3cb   : > { %v3369_v40 = vadd.f32 %v3368_v7, %v3320_v6  ;;  %v3323_v56 = vadd.f32 %v3322_v38, %v3273_v14  ;;  %v7897_v6 = vld [vmem:[#allocation28_spill] sm:$0xff]  ;;  %v7898_v7 = vld [vmem:[#allocation29_spill] sm:$0xff] }
 0x3cd   : > { %v7570_v15 = vadd.f32 %v3417_v13, %v3369_v40  ;;  %3468 = vmatmul.bf16.gmra.mxu0 %v7884_v41  ;;  %v3324_v39 = vpop.f32.mrf.mxu1  ;;  %v7899_v40 = vld [vmem:[#allocation30_spill] sm:$0xff] }
 0x3cf   : > { %3566 = vmatmul.bf16.gmra.mxu2 %v7886_v43  ;;  %v3420_v11 = vpop.f32.mrf.mxu3 }
 0x3d2   : > { %v3371_v57 = vpop.f32.mrf.mxu2  ;;  %v3275_v9 = vpop.f32.mrf.mxu0 }
 0x3d3   : > { %v3372_v29 = vadd.f32 %v3371_v57, %v3323_v56  ;;  %v3325_v28 = vadd.f32 %v3324_v39, %v3275_v9 }
 0x3d5   : > { %v7576_v45 = vadd.f32 %v3420_v11, %v3372_v29  ;;  %v3327_v25 = vpop.f32.mrf.mxu1 }
 0x3d7   : > { %v3422_v54 = vpop.f32.mrf.mxu3 }
 0x3d8   : > { %3522 = vmatmul.bf16.gmra.mxu1 %v7889_v3 }
 0x3d9   : > { %3620 = vmatmul.bf16.gmra.mxu3 %v7891_v31 }
 0x3da   : > { %v3373_v32 = vpop.f32.mrf.mxu2  ;;  %v3278_v36 = vpop.f32.mrf.mxu0 }
 0x3db   : > { %v3374_v24 = vadd.f32 %v3373_v32, %v3325_v28  ;;  %v3328_v27 = vadd.f32 %v3327_v25, %v3278_v36  ;;  %v7900_v32 = vld [vmem:[#allocation31_spill] sm:$0xff]  ;;  %v7903_v36 = vld [vmem:[#allocation34_spill] sm:$0xff] }
 0x3dd   : > { %v7578_v26 = vadd.f32 %v3422_v54, %v3374_v24  ;;  %3473 = vmatmul.bf16.gmra.mxu0 %v7888_v37  ;;  %v3329_v58 = vpop.f32.mrf.mxu1  ;;  %v7901_v24 = vld [vmem:[#allocation32_spill] sm:$0xff]  ;;  %v7902_v54 = vld [vmem:[#allocation33_spill] sm:$0xff] }
 0x3df   : > { %3571 = vmatmul.bf16.gmra.mxu2 %v7890_v44  ;;  %v3425_v52 = vpop.f32.mrf.mxu3 }
 0x3e2   : > { %v3376_v22 = vpop.f32.mrf.mxu2  ;;  %v3280_v19 = vpop.f32.mrf.mxu0 }
 0x3e3   : > { %v3377_v17 = vadd.f32 %v3376_v22, %v3328_v27  ;;  %v3330_v16 = vadd.f32 %v3329_v58, %v3280_v19 }
 0x3e5   : > { %v7584_v53 = vadd.f32 %v3425_v52, %v3377_v17  ;;  %v3332_v0 = vpop.f32.mrf.mxu1 }
 0x3e7   : > { %v3427_v34 = vpop.f32.mrf.mxu3 }
 0x3e8   : > { %3527 = vmatmul.bf16.gmra.mxu1 %v7893_v49 }
 0x3e9   : > { %3625 = vmatmul.bf16.gmra.mxu3 %v7895_v61 }
 0x3ea   : > { %v3378_v23 = vpop.f32.mrf.mxu2  ;;  %v3283_v63 = vpop.f32.mrf.mxu0 }
 0x3eb   : > { %v3379_v8 = vadd.f32 %v3378_v23, %v3330_v16  ;;  %v3333_v48 = vadd.f32 %v3332_v0, %v3283_v63  ;;  %v7905_v63 = vld [vmem:[#allocation36_spill] sm:$0xff]  ;;  %v7906_v0 = vld [vmem:[#allocation37_spill] sm:$0xff] }
 0x3ed   : > { %v7586_v10 = vadd.f32 %v3427_v34, %v3379_v8  ;;  %3478 = vmatmul.bf16.gmra.mxu0 %v7892_v33  ;;  %v3334_v30 = vpop.f32.mrf.mxu1  ;;  %v7904_v34 = vld [vmem:[#allocation35_spill] sm:$0xff] }
 0x3ef   : > { %3576 = vmatmul.bf16.gmra.mxu2 %v7894_v50  ;;  %v3430_v2 = vpop.f32.mrf.mxu3 }
 0x3f2   : > { %v3381_v46 = vpop.f32.mrf.mxu2  ;;  %v3285_v60 = vpop.f32.mrf.mxu0 }
 0x3f3   : > { %v3382_v51 = vadd.f32 %v3381_v46, %v3333_v48  ;;  %v3335_v62 = vadd.f32 %v3334_v30, %v3285_v60  ;;  %v7907_v48 = vld [vmem:[#allocation38_spill] sm:$0xff] }
 0x3f5   : > { %v7592_v35 = vadd.f32 %v3430_v2, %v3382_v51  ;;  %v3337_v21 = vpop.f32.mrf.mxu1 }
 0x3f7   : > { %v3432_v18 = vpop.f32.mrf.mxu3 }
 0x3f8   : > { %3532 = vmatmul.bf16.gmra.mxu1 %v7897_v6  ;;  %v7911_v6 = vld [vmem:[#allocation42_spill] sm:$0xff] }
 0x3f9   : > { %3630 = vmatmul.bf16.gmra.mxu3 %v7899_v40 }
 0x3fa   : > { %v3383_v20 = vpop.f32.mrf.mxu2  ;;  %v3288_v55 = vpop.f32.mrf.mxu0 }
 0x3fb   : > { %v3384_v47 = vadd.f32 %v3383_v20, %v3335_v62  ;;  %v3338_v4 = vadd.f32 %v3337_v21, %v3288_v55  ;;  %v7908_v21 = vld [vmem:[#allocation39_spill] sm:$0xff] }
 0x3fd   : > { %v7594_v59 = vadd.f32 %v3432_v18, %v3384_v47  ;;  %3483 = vmatmul.bf16.gmra.mxu0 %v7896_v12  ;;  %v3339_v41 = vpop.f32.mrf.mxu1  ;;  %v7910_v12 = vld [vmem:[#allocation41_spill] sm:$0xff] }
 0x3ff   : > { %3581 = vmatmul.bf16.gmra.mxu2 %v7898_v7  ;;  %v3435_v38 = vpop.f32.mrf.mxu3 }
 0x402   : > { %v3386_v13 = vpop.f32.mrf.mxu2  ;;  %v3290_v56 = vpop.f32.mrf.mxu0 }
 0x403   : > { %v3387_v14 = vadd.f32 %v3386_v13, %v3338_v4  ;;  %v3340_v43 = vadd.f32 %v3339_v41, %v3290_v56  ;;  %v7909_v4 = vld [vmem:[#allocation40_spill] sm:$0xff] }
 0x405   : > { %v7600_v42 = vadd.f32 %v3435_v38, %v3387_v14  ;;  %v3342_v9 = vpop.f32.mrf.mxu1 }
 0x407   : > { %v3437_v29 = vpop.f32.mrf.mxu3 }
 0x408   : > { %3537 = vmatmul.bf16.gmra.mxu1 %v7901_v24 }
 0x409   : > { %3635 = vmatmul.bf16.gmra.mxu3 %v7903_v36 }
 0x40a   : > { %v3388_v1 = vpop.f32.mrf.mxu2  ;;  %v3293_v11 = vpop.f32.mrf.mxu0 }
 0x40b   : > { %v3389_v57 = vadd.f32 %v3388_v1, %v3340_v43  ;;  %v3343_v28 = vadd.f32 %v3342_v9, %v3293_v11 }
 0x40d   : > { %v7602_v39 = vadd.f32 %v3437_v29, %v3389_v57  ;;  %3488 = vmatmul.bf16.gmra.mxu0 %v7900_v32  ;;  %v3344_v44 = vpop.f32.mrf.mxu1 }
 0x40f   : > { %3586 = vmatmul.bf16.gmra.mxu2 %v7902_v54  ;;  %v3440_v37 = vpop.f32.mrf.mxu3 }
 0x412   : > { %v3391_v25 = vpop.f32.mrf.mxu2  ;;  %v3295_v3 = vpop.f32.mrf.mxu0 }
 0x413   : > { %v3392_v27 = vadd.f32 %v3391_v25, %v3343_v28  ;;  %v3345_v22 = vadd.f32 %v3344_v44, %v3295_v3 }
 0x415   : > { %v7608_v31 = vadd.f32 %v3440_v37, %v3392_v27  ;;  %v3347_v16 = vpop.f32.mrf.mxu1 }
 0x417   : > { %v3442_v19 = vpop.f32.mrf.mxu3 }
 0x418   : > { %3542 = vmatmul.bf16.gmra.mxu1 %v7905_v63 }
 0x419   : > { %3640 = vmatmul.bf16.gmra.mxu3 %v7907_v48 }
 0x41a   : > { %v3393_v17 = vpop.f32.mrf.mxu2  ;;  %v3298_v58 = vpop.f32.mrf.mxu0 }
 0x41b   : > { %v3394_v52 = vadd.f32 %v3393_v17, %v3345_v22  ;;  %v3348_v8 = vadd.f32 %v3347_v16, %v3298_v58 }
 0x41d   : > { %v7610_v23 = vadd.f32 %v3442_v19, %v3394_v52  ;;  %3493 = vmatmul.bf16.gmra.mxu0 %v7904_v34  ;;  %v3349_v46 = vpop.f32.mrf.mxu1 }
 0x41f   : > { %3591 = vmatmul.bf16.gmra.mxu2 %v7906_v0  ;;  %v3445_v50 = vpop.f32.mrf.mxu3 }
 0x422   : > { %v3396_v33 = vpop.f32.mrf.mxu2  ;;  %v3300_v61 = vpop.f32.mrf.mxu0 }
 0x423   : > { %v3397_v49 = vadd.f32 %v3396_v33, %v3348_v8  ;;  %v3350_v2 = vadd.f32 %v3349_v46, %v3300_v61 }
 0x425   : > { %v7616_v51 = vadd.f32 %v3445_v50, %v3397_v49  ;;  %v3352_v47 = vpop.f32.mrf.mxu1 }
 0x427   : > { %v3447_v62 = vpop.f32.mrf.mxu3 }
 0x428   : > { %3547 = vmatmul.bf16.gmra.mxu1 %v7909_v4 }
 0x429   : > { %3645 = vmatmul.bf16.gmra.mxu3 %v7911_v6 }
 0x42a   : > { %v3398_v60 = vpop.f32.mrf.mxu2  ;;  %v3303_v20 = vpop.f32.mrf.mxu0 }
 0x42b   : > { %v3399_v30 = vadd.f32 %v3398_v60, %v3350_v2  ;;  %v3353_v55 = vadd.f32 %v3352_v47, %v3303_v20 }
 0x42d   : > { %v7618_v18 = vadd.f32 %v3447_v62, %v3399_v30  ;;  %3498 = vmatmul.bf16.gmra.mxu0 %v7908_v21  ;;  %v3354_v38 = vpop.f32.mrf.mxu1 }
 0x42f   : > { %3596 = vmatmul.bf16.gmra.mxu2 %v7910_v12  ;;  %v3450_v13 = vpop.f32.mrf.mxu3 }
 0x432   : > { %v3401_v7 = vpop.f32.mrf.mxu2  ;;  %v3305_v14 = vpop.f32.mrf.mxu0 }
 0x433   : > { %v3402_v40 = vadd.f32 %v3401_v7, %v3353_v55  ;;  %v3355_v41 = vadd.f32 %v3354_v38, %v3305_v14 }
 0x435   : > { %v7624_v56 = vadd.f32 %v3450_v13, %v3402_v40  ;;  %v3513_v11 = vpop.f32.mrf.mxu1 }
 0x437   : > { %v3452_v57 = vpop.f32.mrf.mxu3 }
 0x43a   : > { %v3403_v43 = vpop.f32.mrf.mxu2  ;;  %v3464_v29 = vpop.f32.mrf.mxu0 }
 0x43b   : > { %v3404_v1 = vadd.f32 %v3403_v43, %v3355_v41  ;;  %v3465_v28 = vadd.f32 %v3464_v29, %v7568_v5 }
 0x43d   : > { %v7626_v9 = vadd.f32 %v3452_v57, %v3404_v1  ;;  %v3514_v32 = vadd.f32 %v3513_v11, %v3465_v28  ;;  %v3515_v27 = vpop.f32.mrf.mxu1 }
 0x43f   : > { %v3611_v36 = vpop.f32.mrf.mxu3 }
 0x442   : > { %v3562_v24 = vpop.f32.mrf.mxu2  ;;  %v3466_v25 = vpop.f32.mrf.mxu0 }
 0x443   : > { %v3563_v54 = vadd.f32 %v3562_v24, %v3514_v32  ;;  %v3467_v3 = vadd.f32 %v3466_v25, %v7570_v15 }
 0x445   : > { %v3612_v37 = vadd.f32 %v3611_v36, %v3563_v54  ;;  %v3516_v44 = vadd.f32 %v3515_v27, %v3467_v3  ;;  %v3518_v58 = vpop.f32.mrf.mxu1 }
 0x447   : > { %3654 = vst [vmem:[%s6354_s24 + $0x18] sm:$0xff] %v3612_v37  ;;  %v3613_v52 = vpop.f32.mrf.mxu3 }
 0x44a   : > { %v3564_v22 = vpop.f32.mrf.mxu2  ;;  %v3469_v19 = vpop.f32.mrf.mxu0 }
 0x44b   : > { %v3565_v17 = vadd.f32 %v3564_v22, %v3516_v44  ;;  %v3470_v5 = vadd.f32 %v3469_v19, %v7576_v45 }
 0x44d   : > { %v3614_v16 = vadd.f32 %v3613_v52, %v3565_v17  ;;  %v3519_v8 = vadd.f32 %v3518_v58, %v3470_v5  ;;  %v3520_v33 = vpop.f32.mrf.mxu1 }
 0x44f   : > { %3658 = vst [vmem:[%s6354_s24 + $0x38] sm:$0xff] %v3614_v16  ;;  %v3616_v0 = vpop.f32.mrf.mxu3 }
 0x452   : > { %v3567_v34 = vpop.f32.mrf.mxu2  ;;  %v3471_v48 = vpop.f32.mrf.mxu0 }
 0x453   : > { %v3568_v63 = vadd.f32 %v3567_v34, %v3519_v8  ;;  %v3472_v49 = vadd.f32 %v3471_v48, %v7578_v26 }
 0x455   : > { %v3617_v15 = vadd.f32 %v3616_v0, %v3568_v63  ;;  %v3521_v50 = vadd.f32 %v3520_v33, %v3472_v49  ;;  %v3523_v30 = vpop.f32.mrf.mxu1 }
 0x457   : > { %3662 = vst [vmem:[%s6354_s24 + $0x58] sm:$0xff] %v3617_v15  ;;  %v3618_v2 = vpop.f32.mrf.mxu3 }
 0x45a   : > { %v3569_v61 = vpop.f32.mrf.mxu2  ;;  %v3474_v60 = vpop.f32.mrf.mxu0 }
 0x45b   : > { %v3570_v46 = vadd.f32 %v3569_v61, %v3521_v50  ;;  %v3475_v62 = vadd.f32 %v3474_v60, %v7584_v53 }
 0x45d   : > { %v3619_v45 = vadd.f32 %v3618_v2, %v3570_v46  ;;  %v3524_v20 = vadd.f32 %v3523_v30, %v3475_v62  ;;  %v3525_v12 = vpop.f32.mrf.mxu1 }
 0x45f   : > { %3666 = vst [vmem:[%s6354_s24 + $0x78] sm:$0xff] %v3619_v45  ;;  %v3621_v21 = vpop.f32.mrf.mxu3 }
 0x462   : > { %v3572_v47 = vpop.f32.mrf.mxu2  ;;  %v3476_v4 = vpop.f32.mrf.mxu0 }
 0x463   : > { %v3573_v55 = vadd.f32 %v3572_v47, %v3524_v20  ;;  %v3477_v6 = vadd.f32 %v3476_v4, %v7586_v10 }
 0x465   : > { %v3622_v26 = vadd.f32 %v3621_v21, %v3573_v55  ;;  %v3526_v7 = vadd.f32 %v3525_v12, %v3477_v6  ;;  %v3528_v41 = vpop.f32.mrf.mxu1 }
 0x467   : > { %3670 = vst [vmem:[%s6354_s24 + $0x98] sm:$0xff] %v3622_v26  ;;  %v3623_v14 = vpop.f32.mrf.mxu3 }
 0x46a   : > { %v3574_v40 = vpop.f32.mrf.mxu2  ;;  %v3479_v38 = vpop.f32.mrf.mxu0 }
 0x46b   : > { %v3575_v13 = vadd.f32 %v3574_v40, %v3526_v7  ;;  %v3480_v43 = vadd.f32 %v3479_v38, %v7592_v35 }
 0x46d   : > { %v3624_v53 = vadd.f32 %v3623_v14, %v3575_v13  ;;  %v3529_v1 = vadd.f32 %v3528_v41, %v3480_v43  ;;  %v3530_v32 = vpop.f32.mrf.mxu1 }
 0x46f   : > { %3674 = vst [vmem:[%s6354_s24 + $0xb8] sm:$0xff] %v3624_v53  ;;  %v3626_v11 = vpop.f32.mrf.mxu3 }
 0x472   : > { %v3577_v57 = vpop.f32.mrf.mxu2  ;;  %v3481_v28 = vpop.f32.mrf.mxu0 }
 0x473   : > { %v3578_v29 = vadd.f32 %v3577_v57, %v3529_v1  ;;  %v3482_v24 = vadd.f32 %v3481_v28, %v7594_v59 }
 0x475   : > { %v3627_v10 = vadd.f32 %v3626_v11, %v3578_v29  ;;  %v3531_v54 = vadd.f32 %v3530_v32, %v3482_v24  ;;  %v3533_v3 = vpop.f32.mrf.mxu1 }
 0x477   : > { %3678 = vst [vmem:[%s6354_s24 + $0xd8] sm:$0xff] %v3627_v10  ;;  %v3628_v27 = vpop.f32.mrf.mxu3 }
 0x47a   : > { %v3579_v36 = vpop.f32.mrf.mxu2  ;;  %v3484_v37 = vpop.f32.mrf.mxu0 }
 0x47b   : > { %v3580_v25 = vadd.f32 %v3579_v36, %v3531_v54  ;;  %v3485_v44 = vadd.f32 %v3484_v37, %v7600_v42 }
 0x47d   : > { %v3629_v35 = vadd.f32 %v3628_v27, %v3580_v25  ;;  %v3534_v22 = vadd.f32 %v3533_v3, %v3485_v44  ;;  %v3535_v16 = vpop.f32.mrf.mxu1 }
 0x47f   : > { %3682 = vst [vmem:[%s6354_s24 + $0xf8] sm:$0xff] %v3629_v35  ;;  %v3631_v19 = vpop.f32.mrf.mxu3 }
 0x482   : > { %v3582_v17 = vpop.f32.mrf.mxu2  ;;  %v3486_v58 = vpop.f32.mrf.mxu0 }
 0x483   : > { %v3583_v52 = vadd.f32 %v3582_v17, %v3534_v22  ;;  %v3487_v5 = vadd.f32 %v3486_v58, %v7602_v39 }
 0x485   : > { %v3632_v59 = vadd.f32 %v3631_v19, %v3583_v52  ;;  %v3536_v8 = vadd.f32 %v3535_v16, %v3487_v5  ;;  %v3538_v33 = vpop.f32.mrf.mxu1 }
 0x487   : > { %3686 = vst [vmem:[%s6354_s24 + $0x118] sm:$0xff] %v3632_v59  ;;  %v3633_v0 = vpop.f32.mrf.mxu3 }
 0x48a   : > { %v3584_v34 = vpop.f32.mrf.mxu2  ;;  %v3489_v48 = vpop.f32.mrf.mxu0 }
 0x48b   : > { %v3585_v63 = vadd.f32 %v3584_v34, %v3536_v8  ;;  %v3490_v15 = vadd.f32 %v3489_v48, %v7608_v31 }
 0x48d   : > { %v3634_v42 = vadd.f32 %v3633_v0, %v3585_v63  ;;  %v3539_v49 = vadd.f32 %v3538_v33, %v3490_v15  ;;  %v3540_v60 = vpop.f32.mrf.mxu1 }
 0x48f   : > { %3690 = vst [vmem:[%s6354_s24 + $0x138] sm:$0xff] %v3634_v42  ;;  %v3636_v46 = vpop.f32.mrf.mxu3 }
 0x492   : > { %v3587_v50 = vpop.f32.mrf.mxu2  ;;  %v3491_v2 = vpop.f32.mrf.mxu0 }
 0x493   : > { %v3588_v61 = vadd.f32 %v3587_v50, %v3539_v49  ;;  %v3492_v30 = vadd.f32 %v3491_v2, %v7610_v23 }
 0x495   : > { %v3637_v39 = vadd.f32 %v3636_v46, %v3588_v61  ;;  %v3541_v45 = vadd.f32 %v3540_v60, %v3492_v30  ;;  %v3543_v21 = vpop.f32.mrf.mxu1 }
 0x497   : > { %3694 = vst [vmem:[%s6354_s24 + $0x158] sm:$0xff] %v3637_v39  ;;  %v3638_v47 = vpop.f32.mrf.mxu3 }
 0x49a   : > { %v3589_v62 = vpop.f32.mrf.mxu2  ;;  %v3494_v55 = vpop.f32.mrf.mxu0 }
 0x49b   : > { %v3590_v20 = vadd.f32 %v3589_v62, %v3541_v45  ;;  %v3495_v4 = vadd.f32 %v3494_v55, %v7616_v51 }
 0x49d   : > { %v3639_v31 = vadd.f32 %v3638_v47, %v3590_v20  ;;  %v3544_v12 = vadd.f32 %v3543_v21, %v3495_v4  ;;  %v3545_v13 = vpop.f32.mrf.mxu1 }
 0x49f   : > { %3698 = vst [vmem:[%s6354_s24 + $0x178] sm:$0xff] %v3639_v31  ;;  %v3641_v7 = vpop.f32.mrf.mxu3 }
 0x4a2   : > { %v3592_v26 = vpop.f32.mrf.mxu2  ;;  %v3496_v40 = vpop.f32.mrf.mxu0 }
 0x4a3   : > { %v3593_v6 = vadd.f32 %v3592_v26, %v3544_v12  ;;  %v3497_v14 = vadd.f32 %v3496_v40, %v7618_v18 }
 0x4a5   : > { %v3642_v23 = vadd.f32 %v3641_v7, %v3593_v6  ;;  %v3546_v38 = vadd.f32 %v3545_v13, %v3497_v14  ;;  %v3548_v29 = vpop.f32.mrf.mxu1 }
 0x4a7   : > { %3702 = vst [vmem:[%s6354_s24 + $0x198] sm:$0xff] %v3642_v23  ;;  %v3643_v43 = vpop.f32.mrf.mxu3 }
 0x4aa   : > { %v3594_v41 = vpop.f32.mrf.mxu2  ;;  %v3499_v1 = vpop.f32.mrf.mxu0 }
 0x4ab   : > { %v3595_v53 = vadd.f32 %v3594_v41, %v3546_v38  ;;  %v3500_v57 = vadd.f32 %v3499_v1, %v7624_v56 }
 0x4ad   : > { %v3644_v51 = vadd.f32 %v3643_v43, %v3595_v53  ;;  %v3549_v11 = vadd.f32 %v3548_v29, %v3500_v57  ;;  %v3550_v36 = vpop.f32.mrf.mxu1 }
 0x4af   : > { %3706 = vst [vmem:[%s6354_s24 + $0x1b8] sm:$0xff] %v3644_v51  ;;  %v3646_v10 = vpop.f32.mrf.mxu3 }
 0x4b2   : > { %v3597_v28 = vpop.f32.mrf.mxu2  ;;  %v3501_v24 = vpop.f32.mrf.mxu0 }
 0x4b3   : > { %v3598_v32 = vadd.f32 %v3597_v28, %v3549_v11  ;;  %v3502_v54 = vadd.f32 %v3501_v24, %v7626_v9 }
 0x4b5   : > { %v3647_v18 = vadd.f32 %v3646_v10, %v3598_v32  ;;  %v3551_v56 = vadd.f32 %v3550_v36, %v3502_v54 }
 0x4b7   : > { %3710 = vst [vmem:[%s6354_s24 + $0x1d8] sm:$0xff] %v3647_v18  ;;  %v3648_v37 = vpop.f32.mrf.mxu3 }
 0x4ba   : > { %v3599_v25 = vpop.f32.mrf.mxu2 }
 0x4bb   : > { %v3600_v27 = vadd.f32 %v3599_v25, %v3551_v56 }
 0x4bd   : > { %v3649_v3 = vadd.f32 %v3648_v37, %v3600_v27 }
 0x4bf   : > { %3714 = vst [vmem:[%s6354_s24 + $0x1f8] sm:$0xff] %v3649_v3 }
 0x4c0   : > { %5220 = shalt.err (!%p5217_p5)
}
 0x4c1   : > { %s5273_s28 = smov 512   ;;  %s5274_s24 = smov 32  }
 0x4c2   : > { %5136 = dma.vmem_to_hbm [thread:$0]  (%p5330_p4), %s3732_s5, 8192, %s3734_s7, %s3716_s12, %s5273_s28, %s5273_s28, %s5274_s24  }
 0x4c3 PF: > { %p5142_p6 = scmp.ge.s32.totalorder %s5271_s14, 2  ;;  %s3748_s26 = sand.u32 1, %s5251_s9  }
 0x4c4   : > { %s3749_s27 = scalar_lea.sflag [#allocation3], %s3748_s26 }
 0x4c5   : > { %p5139_p7 = pnand %p5142_p6, %p5337_p8 }
 0x4c7   : > { %p5140_p9 = pneg %p5139_p7 }
 0x4c9   : > { %5246 = dma.done.wait (%p5140_p9), %s3749_s27, 8192  }
 0x4ca   : > { %5248 = vsyncadd (%p5140_p9), %s3749_s27, 4294959104  ;;  %s15_s14 = sadd.s32 1, %s5271_s14   ;;  %s7912_s9 = smov %s5255_s10 }
 0x4cb   : > { %p12_p10 = scmp.ge.s32.totalorder %s15_s14, 6   ;;  %s7913_s10 = smov %s5259_s11 }
 0x4cc   : > { %s7914_s11 = smov %s5343_s22  ;;  %s7915_s12 = smov %s5267_s13 }
 0x4cd   : > { %s7916_s13 = smov %s7918_s17  ;;  %14 = sbr.rel (!%p12_p10) target bundleno = 4 (0x4), region = 66 }
 0x4d2   :  { %3755 = vsyncpa [#allocation3], 1 }
 0x4d3   :  { %3757 = vsyncpa [#allocation3 + $0x1], 1 }

</bundles_post_ra>
